<compile_context>
chip_gen: v6e
topology: v6e:2x2x1
jax: 0.10.0
libtpu: 0.0.40
codegen_flags: <defaults>
</compile_context>

<pallas_src>
import numpy as np
import jax
import jax.numpy as jnp
from jax.experimental import pallas as pl
from jax.experimental.pallas import tpu as pltpu

_INV_T = 2.5  # 1 / 0.4, the Laplacian kernel bandwidth


def _make_per_sample_kernel(n_valid):
    def kernel(logits_ref, target_ref, stats_ref):
        logits = logits_ref[...]                       # (C, TN) f32
        target = target_ref[...]                       # (1, TN) i32
        c, tn = logits.shape

        col_max = jnp.max(logits, axis=0, keepdims=True)          # (1, TN)
        ex = jnp.exp(logits - col_max)
        sumexp = jnp.sum(ex, axis=0, keepdims=True)               # (1, TN)
        p = 1.0 / sumexp                                          # max softmax prob

        row_idx = jax.lax.broadcasted_iota(jnp.int32, (c, tn), 0)
        # first index achieving the max (matches torch/np argmax tie-breaking)
        label = jnp.min(jnp.where(logits == col_max, row_idx, c),
                        axis=0, keepdims=True)
        corr = (label == target).astype(jnp.float32)              # (1, TN)

        picked = jnp.sum(jnp.where(row_idx == target, logits, 0.0),
                         axis=0, keepdims=True)
        ce = col_max + jnp.log(sumexp) - picked                   # per-sample CE

        # padding mask: global sample index < n_valid (n_valid is a static int)
        gidx = (pl.program_id(0) * tn
                + jax.lax.broadcasted_iota(jnp.int32, (1, tn), 1))
        valid = (gidx < n_valid).astype(jnp.float32)

        corr = corr * valid
        ce = ce * valid
        u = jnp.exp(p * _INV_T)                                   # O(N) EUP work
        v = jnp.exp(p * (-_INV_T))
        a = corr * (1.0 - p)                                      # correct-sample weight
        b = (1.0 - corr) * p * valid                              # incorrect-sample weight

        stats_ref[0:1, :] = p
        stats_ref[1:2, :] = corr
        stats_ref[2:3, :] = ce
        stats_ref[3:4, :] = u
        stats_ref[4:5, :] = v
        stats_ref[5:6, :] = a
        stats_ref[6:7, :] = b
        stats_ref[7:8, :] = jnp.zeros_like(p)
    return kernel


def _pair_kernel(cols_ref, stats_ref, cc_ref, ii_ref, ci_ref):
    # cols_ref : (TI, 4) columns [u, v, a, b] for the row tile (i axis)
    # stats_ref: (8, TJ) lane-dense stats for the column tile (j axis)
    # *_ref outputs: (1, 8, 128) per-row-tile partials, accumulated over j.
    @pl.when(pl.program_id(1) == 0)
    def _():
        cc_ref[...] = jnp.zeros_like(cc_ref)
        ii_ref[...] = jnp.zeros_like(ii_ref)
        ci_ref[...] = jnp.zeros_like(ci_ref)

    cols = cols_ref[...]                           # (TI, 4)
    sj = stats_ref[...]                            # (8, TJ)

    u_col = cols[:, 0:1]                           # (TI, 1)
    v_col = cols[:, 1:2]
    a_col = cols[:, 2:3]
    b_col = cols[:, 3:4]
    u_row = sj[3:4, :]                             # (1, TJ)
    v_row = sj[4:5, :]
    a_row = sj[5:6, :]
    b_row = sj[6:7, :]

    # exp(-|p_i - p_j| / 0.4) == min(exp(-p_i/0.4)*exp(p_j/0.4),
    #                                exp( p_i/0.4)*exp(-p_j/0.4))
    # -> no transcendentals in the O(N^2) inner loop (VPU only).
    kmat = jnp.minimum(v_col * u_row, u_col * v_row)          # (TI, TJ)

    r_a = jnp.sum(kmat * a_row, axis=1, keepdims=True)        # (TI, 1)
    r_b = jnp.sum(kmat * b_row, axis=1, keepdims=True)        # (TI, 1)

    cc_ref[...] += jnp.sum(a_col * r_a)            # correct / correct
    ii_ref[...] += jnp.sum(b_col * r_b)            # incorrect / incorrect
    ci_ref[...] += jnp.sum(a_col * r_b)            # correct / incorrect


def _largest_divisor_tile(n, cap):
    t = min(n, cap)
    while n % t != 0:
        t -= 128
    return t


def mmce_weighted_loss(x, target, lamda=1.0):
    # Flatten exactly like the PyTorch module: (B,C,*) -> (B, HW, C) -> (N, C),
    # but keep the samples on the lane axis -> logits as (C, N).
    if x.ndim > 2:
        b, c = x.shape[0], x.shape[1]
        hw = int(np.prod(x.shape[2:]))
        n = b * hw
        logits_cn = jnp.transpose(x.reshape(b, c, hw), (1, 0, 2)).reshape(c, n)
    else:
        n, c = x.shape
        logits_cn = jnp.transpose(x)
    logits_cn = logits_cn.astype(jnp.float32)
    targets = target.reshape(1, n).astype(jnp.int32)

    n_pad = ((n + 127) // 128) * 128
    if n_pad != n:
        logits_cn = jnp.pad(logits_cn, ((0, 0), (0, n_pad - n)))
        targets = jnp.pad(targets, ((0, 0), (0, n_pad - n)))

    tn_s = _largest_divisor_tile(n_pad, 2048)      # per-sample kernel tile
    ti = _largest_divisor_tile(n_pad, 256)         # pair-kernel row tile
    tj = _largest_divisor_tile(n_pad, 1024)        # pair-kernel column tile
    num_i = n_pad // ti

    # --- kernel 1: per-sample stats, fused lane-dense (8, N) output ---------
    stats = pl.pallas_call(
        _make_per_sample_kernel(n),
        grid=(n_pad // tn_s,),
        in_specs=[
            pl.BlockSpec((c, tn_s), lambda i: (0, i)),
            pl.BlockSpec((1, tn_s), lambda i: (0, i)),
        ],
        out_specs=pl.BlockSpec((8, tn_s), lambda i: (0, i)),
        out_shape=jax.ShapeDtypeStruct((8, n_pad), jnp.float32),
        compiler_params=pltpu.CompilerParams(dimension_semantics=("parallel",)),
    )(logits_cn, targets)

    # Tiny O(N) relayout of the 4 rows needed as columns by the pair kernel
    # (keeps the N^2 kernel free of in-kernel relayouts): (N, 4) = [u, v, a, b].
    cols = jnp.transpose(stats[3:7, :])

    # --- kernel 2: pairwise MMD sums, 2-D tiled, per-row-tile partials ------
    cc, ii, ci = pl.pallas_call(
        _pair_kernel,
        grid=(num_i, n_pad // tj),
        in_specs=[
            pl.BlockSpec((ti, 4), lambda i, j: (i, 0)),
            pl.BlockSpec((8, tj), lambda i, j: (0, j)),
        ],
        out_specs=(
            pl.BlockSpec((1, 8, 128), lambda i, j: (i, 0, 0)),
            pl.BlockSpec((1, 8, 128), lambda i, j: (i, 0, 0)),
            pl.BlockSpec((1, 8, 128), lambda i, j: (i, 0, 0)),
        ),
        out_shape=(
            jax.ShapeDtypeStruct((num_i, 8, 128), jnp.float32),
            jax.ShapeDtypeStruct((num_i, 8, 128), jnp.float32),
            jax.ShapeDtypeStruct((num_i, 8, 128), jnp.float32),
        ),
        compiler_params=pltpu.CompilerParams(
            dimension_semantics=("parallel", "arbitrary")),
    )(cols, stats)

    s_cc = jnp.sum(cc[:, 0, 0])
    s_ii = jnp.sum(ii[:, 0, 0])
    s_ci = jnp.sum(ci[:, 0, 0])

    corr = stats[1, :]
    ce = stats[2, :]

    m = jnp.sum(corr)                       # number of correct predictions (float)
    nn = jnp.float32(n) - m                 # number of incorrect predictions
    cond = ((m > 0.5) & (nn > 0.5)).astype(jnp.float32)   # cond_k * cond_k_p
    kk = jnp.maximum(m, 1.0)                # guards only matter when cond == 0
    kp = jnp.maximum(nn, 1.0)
    cc_val = s_cc / (kk * kk)               # mean over k x k correct pairs
    ii_val = s_ii / (kp * kp)               # mean over k_p x k_p incorrect pairs
    ci_val = s_ci / (kk * kp)               # mean over k x k_p cross pairs
    mmd = (cc_val / (m * m + 1e-5)
           + ii_val / (nn * nn + 1e-5)
           - 2.0 * ci_val / (m * nn + 1e-5))
    ce_mean = jnp.sum(ce) / jnp.float32(n)
    # TODO(synk): when all predictions are (in)correct, torch uses topk with k=2 / N-2
    #             before zeroing the term via cond; here the term is zeroed directly.
    return ce_mean + lamda * jnp.maximum(cond * jnp.sqrt(mmd + 1e-10), 0.0)


def _reference_numpy(x_nchw, target_nhw, lamda=1.0):
    """Direct float64 NumPy transcription of the PyTorch forward (assumes both classes present)."""
    x = np.asarray(x_nchw, dtype=np.float64)
    t = np.asarray(target_nhw).reshape(-1)
    b, c = x.shape[0], x.shape[1]
    logits = x.reshape(b, c, -1).transpose(0, 2, 1).reshape(-1, c)
    mx = logits.max(axis=1, keepdims=True)
    e = np.exp(logits - mx)
    probs = e / e.sum(axis=1, keepdims=True)
    p = probs.max(axis=1)
    labels = probs.argmax(axis=1)
    correct = (labels == t).astype(np.float64)
    k = int(correct.sum())
    kp = int((1.0 - correct).sum())
    cp = np.sort(p * correct)[::-1][:k]
    ip = np.sort(p * (1.0 - correct))[::-1][:kp]

    def kern(a, bb):
        return np.exp(-np.abs(a[:, None] - bb[None, :]) / 0.4)

    cc = np.mean(kern(cp, cp) * np.outer(1.0 - cp, 1.0 - cp))
    ii = np.mean(kern(ip, ip) * np.outer(ip, ip))
    ci = np.mean(kern(cp, ip) * np.outer(1.0 - cp, ip))
    m = correct.sum()
    nn = (1.0 - correct).sum()
    mmd = cc / (m * m + 1e-5) + ii / (nn * nn + 1e-5) - 2.0 * ci / (m * nn + 1e-5)
    ce = np.mean(mx[:, 0] + np.log(e.sum(axis=1)) - logits[np.arange(len(t)), t])
    return ce + lamda * max(np.sqrt(mmd + 1e-10), 0.0)


if __name__ == "__main__":
    key = jax.random.PRNGKey(0)
    kx, kt = jax.random.split(key)
    B, C, H, W = 2, 4, 16, 16                      # N = 2*16*16 = 512 samples
    x = jax.random.normal(kx, (B, C, H, W), dtype=jnp.float32)
    target = jax.random.randint(kt, (B, H, W), 0, C, dtype=jnp.int32)

    loss = jax.jit(mmce_weighted_loss)(x, target)
    loss = jax.block_until_ready(loss)

    ref = _reference_numpy(np.asarray(x), np.asarray(target))
    assert np.isfinite(float(loss))
    assert np.allclose(float(loss), ref, rtol=2e-3, atol=2e-4), (float(loss), ref)

    print("KERNEL_OK")
</pallas_src>

<mosaic_0001>
module attributes {stable_mosaic.version = 11 : i64} {
  func.func @kernel(%arg0: i32, %arg1: memref<4x512xf32, #tpu.memory_space<vmem>>, %arg2: memref<1x512xi32, #tpu.memory_space<vmem>>, %arg3: memref<8x512xf32, #tpu.memory_space<vmem>>) attributes {dimension_semantics = [#tpu.dimension_semantics<parallel>], iteration_bounds = array<i64: 1>, scalar_prefetch = 0 : i64, scratch_operands = 0 : i64, tpu.core_type = #tpu.core_type<tc>, window_params = [{transform_indices = @transform_0, window_bounds = array<i64: 4, 512>}, {transform_indices = @transform_1, window_bounds = array<i64: 1, 512>}, {transform_indices = @transform_2, window_bounds = array<i64: 8, 512>}]} {
    %c0 = arith.constant 0 : index
    %c0_0 = arith.constant 0 : index
    %0 = vector.load %arg1[%c0, %c0_0] : memref<4x512xf32, #tpu.memory_space<vmem>>, vector<4x512xf32>
    %c0_1 = arith.constant 0 : index
    %c0_2 = arith.constant 0 : index
    %1 = vector.load %arg2[%c0_1, %c0_2] : memref<1x512xi32, #tpu.memory_space<vmem>>, vector<1x512xi32>
    %cst = arith.constant dense<0xFF800000> : vector<512xf32>
    %2 = vector.multi_reduction <maximumf>, %0, %cst [0] : vector<4x512xf32> to vector<512xf32>
    %3 = vector.shape_cast %2 : vector<512xf32> to vector<1x512xf32>
    %4 = vector.broadcast %3 : vector<1x512xf32> to vector<4x512xf32>
    %5 = arith.subf %0, %4 : vector<4x512xf32>
    %6 = math.exp %5 : vector<4x512xf32>
    %cst_3 = arith.constant dense<0.000000e+00> : vector<512xf32>
    %7 = vector.multi_reduction <add>, %6, %cst_3 [0] : vector<4x512xf32> to vector<512xf32>
    %8 = vector.shape_cast %7 : vector<512xf32> to vector<1x512xf32>
    %cst_4 = arith.constant 1.000000e+00 : f32
    %9 = vector.broadcast %cst_4 : f32 to vector<1x512xf32>
    %10 = arith.divf %9, %8 : vector<1x512xf32>
    %11 = tpu.iota {dimensions = array<i32: 0>} : vector<4x512xi32>
    %12 = vector.broadcast %3 : vector<1x512xf32> to vector<4x512xf32>
    %13 = arith.cmpf oeq, %0, %12 : vector<4x512xf32>
    %c4_i32 = arith.constant 4 : i32
    %14 = vector.broadcast %c4_i32 : i32 to vector<4x512xi32>
    %15 = arith.select %13, %11, %14 : vector<4x512xi1>, vector<4x512xi32>
    %cst_5 = arith.constant dense<2147483647> : vector<512xi32>
    %16 = vector.multi_reduction <minsi>, %15, %cst_5 [0] : vector<4x512xi32> to vector<512xi32>
    %17 = vector.shape_cast %16 : vector<512xi32> to vector<1x512xi32>
    %18 = arith.cmpi eq, %17, %1 : vector<1x512xi32>
    %19 = arith.extui %18 : vector<1x512xi1> to vector<1x512xi32>
    %20 = arith.sitofp %19 : vector<1x512xi32> to vector<1x512xf32>
    %21 = vector.broadcast %1 : vector<1x512xi32> to vector<4x512xi32>
    %22 = arith.cmpi eq, %11, %21 : vector<4x512xi32>
    %cst_6 = arith.constant 0.000000e+00 : f32
    %23 = vector.broadcast %cst_6 : f32 to vector<4x512xf32>
    %24 = arith.select %22, %0, %23 : vector<4x512xi1>, vector<4x512xf32>
    %cst_7 = arith.constant dense<0.000000e+00> : vector<512xf32>
    %25 = vector.multi_reduction <add>, %24, %cst_7 [0] : vector<4x512xf32> to vector<512xf32>
    %26 = vector.shape_cast %25 : vector<512xf32> to vector<1x512xf32>
    %27 = math.log %8 : vector<1x512xf32>
    %28 = arith.addf %3, %27 : vector<1x512xf32>
    %29 = arith.subf %28, %26 : vector<1x512xf32>
    %c512_i32 = arith.constant 512 : i32
    %30 = arith.muli %arg0, %c512_i32 : i32
    %31 = tpu.iota {dimensions = array<i32: 1>} : vector<1x512xi32>
    %32 = vector.broadcast %30 : i32 to vector<1x512xi32>
    %33 = arith.addi %32, %31 : vector<1x512xi32>
    %c512_i32_8 = arith.constant 512 : i32
    %34 = vector.broadcast %c512_i32_8 : i32 to vector<1x512xi32>
    %35 = arith.cmpi slt, %33, %34 : vector<1x512xi32>
    %36 = arith.extui %35 : vector<1x512xi1> to vector<1x512xi32>
    %37 = arith.sitofp %36 : vector<1x512xi32> to vector<1x512xf32>
    %38 = arith.mulf %20, %37 : vector<1x512xf32>
    %39 = arith.mulf %29, %37 : vector<1x512xf32>
    %cst_9 = arith.constant 2.500000e+00 : f32
    %40 = vector.broadcast %cst_9 : f32 to vector<1x512xf32>
    %41 = arith.mulf %10, %40 : vector<1x512xf32>
    %42 = math.exp %41 : vector<1x512xf32>
    %cst_10 = arith.constant -2.500000e+00 : f32
    %43 = vector.broadcast %cst_10 : f32 to vector<1x512xf32>
    %44 = arith.mulf %10, %43 : vector<1x512xf32>
    %45 = math.exp %44 : vector<1x512xf32>
    %cst_11 = arith.constant 1.000000e+00 : f32
    %46 = vector.broadcast %cst_11 : f32 to vector<1x512xf32>
    %47 = arith.subf %46, %10 : vector<1x512xf32>
    %48 = arith.mulf %38, %47 : vector<1x512xf32>
    %cst_12 = arith.constant 1.000000e+00 : f32
    %49 = vector.broadcast %cst_12 : f32 to vector<1x512xf32>
    %50 = arith.subf %49, %38 : vector<1x512xf32>
    %51 = arith.mulf %50, %10 : vector<1x512xf32>
    %52 = arith.mulf %51, %37 : vector<1x512xf32>
    %c0_13 = arith.constant 0 : index
    %c0_14 = arith.constant 0 : index
    %53 = vector.load %arg3[%c0_13, %c0_14] : memref<8x512xf32, #tpu.memory_space<vmem>>, vector<1x512xf32>
    tpu.vector_store %arg3[%c0_13, %c0_14], %10 {strides = array<i32>} : memref<8x512xf32, #tpu.memory_space<vmem>>, vector<1x512xf32>,
    %c1 = arith.constant 1 : index
    %c0_15 = arith.constant 0 : index
    %54 = vector.load %arg3[%c1, %c0_15] : memref<8x512xf32, #tpu.memory_space<vmem>>, vector<1x512xf32>
    tpu.vector_store %arg3[%c1, %c0_15], %38 {strides = array<i32>} : memref<8x512xf32, #tpu.memory_space<vmem>>, vector<1x512xf32>,
    %c2 = arith.constant 2 : index
    %c0_16 = arith.constant 0 : index
    %55 = vector.load %arg3[%c2, %c0_16] : memref<8x512xf32, #tpu.memory_space<vmem>>, vector<1x512xf32>
    tpu.vector_store %arg3[%c2, %c0_16], %39 {strides = array<i32>} : memref<8x512xf32, #tpu.memory_space<vmem>>, vector<1x512xf32>,
    %c3 = arith.constant 3 : index
    %c0_17 = arith.constant 0 : index
    %56 = vector.load %arg3[%c3, %c0_17] : memref<8x512xf32, #tpu.memory_space<vmem>>, vector<1x512xf32>
    tpu.vector_store %arg3[%c3, %c0_17], %42 {strides = array<i32>} : memref<8x512xf32, #tpu.memory_space<vmem>>, vector<1x512xf32>,
    %c4 = arith.constant 4 : index
    %c0_18 = arith.constant 0 : index
    %57 = vector.load %arg3[%c4, %c0_18] : memref<8x512xf32, #tpu.memory_space<vmem>>, vector<1x512xf32>
    tpu.vector_store %arg3[%c4, %c0_18], %45 {strides = array<i32>} : memref<8x512xf32, #tpu.memory_space<vmem>>, vector<1x512xf32>,
    %c5 = arith.constant 5 : index
    %c0_19 = arith.constant 0 : index
    %58 = vector.load %arg3[%c5, %c0_19] : memref<8x512xf32, #tpu.memory_space<vmem>>, vector<1x512xf32>
    tpu.vector_store %arg3[%c5, %c0_19], %48 {strides = array<i32>} : memref<8x512xf32, #tpu.memory_space<vmem>>, vector<1x512xf32>,
    %c6 = arith.constant 6 : index
    %c0_20 = arith.constant 0 : index
    %59 = vector.load %arg3[%c6, %c0_20] : memref<8x512xf32, #tpu.memory_space<vmem>>, vector<1x512xf32>
    tpu.vector_store %arg3[%c6, %c0_20], %52 {strides = array<i32>} : memref<8x512xf32, #tpu.memory_space<vmem>>, vector<1x512xf32>,
    %cst_21 = arith.constant 0.000000e+00 : f32
    %60 = vector.broadcast %cst_21 : f32 to vector<1x512xf32>
    %c7 = arith.constant 7 : index
    %c0_22 = arith.constant 0 : index
    %61 = vector.load %arg3[%c7, %c0_22] : memref<8x512xf32, #tpu.memory_space<vmem>>, vector<1x512xf32>
    tpu.vector_store %arg3[%c7, %c0_22], %60 {strides = array<i32>} : memref<8x512xf32, #tpu.memory_space<vmem>>, vector<1x512xf32>,
    return
  }
  func.func @transform_0(%arg0: i32) -> (i32, i32) {
    %c0_i32 = arith.constant 0 : i32
    %c0_i32_0 = arith.constant 0 : i32
    return %c0_i32, %arg0 : i32, i32
  }
  func.func @transform_1(%arg0: i32) -> (i32, i32) {
    %c0_i32 = arith.constant 0 : i32
    %c0_i32_0 = arith.constant 0 : i32
    return %c0_i32, %arg0 : i32, i32
  }
  func.func @transform_2(%arg0: i32) -> (i32, i32) {
    %c0_i32 = arith.constant 0 : i32
    %c0_i32_0 = arith.constant 0 : i32
    return %c0_i32, %arg0 : i32, i32
  }
}

module attributes {stable_mosaic.version = 11 : i64} {
  func.func @_pair_kernel(%arg0: i32, %arg1: i32, %arg2: memref<256x4xf32, #tpu.memory_space<vmem>>, %arg3: memref<8x512xf32, #tpu.memory_space<vmem>>, %arg4: memref<1x8x128xf32, #tpu.memory_space<vmem>>, %arg5: memref<1x8x128xf32, #tpu.memory_space<vmem>>, %arg6: memref<1x8x128xf32, #tpu.memory_space<vmem>>) attributes {dimension_semantics = [#tpu.dimension_semantics<parallel>, #tpu.dimension_semantics<arbitrary>], iteration_bounds = array<i64: 2, 1>, scalar_prefetch = 0 : i64, scratch_operands = 0 : i64, tpu.core_type = #tpu.core_type<tc>, window_params = [{transform_indices = @transform_0, window_bounds = array<i64: 256, 4>}, {transform_indices = @transform_1, window_bounds = array<i64: 8, 512>}, {transform_indices = @transform_2, window_bounds = array<i64: 1, 8, 128>}, {transform_indices = @transform_3, window_bounds = array<i64: 1, 8, 128>}, {transform_indices = @transform_4, window_bounds = array<i64: 1, 8, 128>}]} {
    %c0_i32 = arith.constant 0 : i32
    %0 = arith.cmpi eq, %arg1, %c0_i32 : i32
    %1 = arith.extui %0 : i1 to i32
    %c0_i32_0 = arith.constant 0 : i32
    %2 = arith.cmpi ne, %1, %c0_i32_0 : i32
    scf.if %2 {
      %cst_26 = arith.constant 0.000000e+00 : f32
      %55 = vector.broadcast %cst_26 : f32 to vector<1x8x128xf32>
      %c0_27 = arith.constant 0 : index
      %c0_28 = arith.constant 0 : index
      %c0_29 = arith.constant 0 : index
      %56 = vector.load %arg4[%c0_27, %c0_28, %c0_29] : memref<1x8x128xf32, #tpu.memory_space<vmem>>, vector<1x8x128xf32>
      tpu.vector_store %arg4[%c0_27, %c0_28, %c0_29], %55 {strides = array<i32>} : memref<1x8x128xf32, #tpu.memory_space<vmem>>, vector<1x8x128xf32>,
      %cst_30 = arith.constant 0.000000e+00 : f32
      %57 = vector.broadcast %cst_30 : f32 to vector<1x8x128xf32>
      %c0_31 = arith.constant 0 : index
      %c0_32 = arith.constant 0 : index
      %c0_33 = arith.constant 0 : index
      %58 = vector.load %arg5[%c0_31, %c0_32, %c0_33] : memref<1x8x128xf32, #tpu.memory_space<vmem>>, vector<1x8x128xf32>
      tpu.vector_store %arg5[%c0_31, %c0_32, %c0_33], %57 {strides = array<i32>} : memref<1x8x128xf32, #tpu.memory_space<vmem>>, vector<1x8x128xf32>,
      %cst_34 = arith.constant 0.000000e+00 : f32
      %59 = vector.broadcast %cst_34 : f32 to vector<1x8x128xf32>
      %c0_35 = arith.constant 0 : index
      %c0_36 = arith.constant 0 : index
      %c0_37 = arith.constant 0 : index
      %60 = vector.load %arg6[%c0_35, %c0_36, %c0_37] : memref<1x8x128xf32, #tpu.memory_space<vmem>>, vector<1x8x128xf32>
      tpu.vector_store %arg6[%c0_35, %c0_36, %c0_37], %59 {strides = array<i32>} : memref<1x8x128xf32, #tpu.memory_space<vmem>>, vector<1x8x128xf32>,
    } else {
    }
    %c0 = arith.constant 0 : index
    %c0_1 = arith.constant 0 : index
    %3 = vector.load %arg2[%c0, %c0_1] : memref<256x4xf32, #tpu.memory_space<vmem>>, vector<256x4xf32>
    %c0_2 = arith.constant 0 : index
    %c0_3 = arith.constant 0 : index
    %4 = vector.load %arg3[%c0_2, %c0_3] : memref<8x512xf32, #tpu.memory_space<vmem>>, vector<8x512xf32>
    %5 = vector.extract_strided_slice %3 {offsets = [0, 0], sizes = [256, 1], strides = [1, 1]} : vector<256x4xf32> to vector<256x1xf32>
    %6 = vector.extract_strided_slice %3 {offsets = [0, 1], sizes = [256, 1], strides = [1, 1]} : vector<256x4xf32> to vector<256x1xf32>
    %7 = vector.extract_strided_slice %3 {offsets = [0, 2], sizes = [256, 1], strides = [1, 1]} : vector<256x4xf32> to vector<256x1xf32>
    %8 = vector.extract_strided_slice %3 {offsets = [0, 3], sizes = [256, 1], strides = [1, 1]} : vector<256x4xf32> to vector<256x1xf32>
    %9 = vector.extract_strided_slice %4 {offsets = [3, 0], sizes = [1, 512], strides = [1, 1]} : vector<8x512xf32> to vector<1x512xf32>
    %10 = vector.extract_strided_slice %4 {offsets = [4, 0], sizes = [1, 512], strides = [1, 1]} : vector<8x512xf32> to vector<1x512xf32>
    %11 = vector.extract_strided_slice %4 {offsets = [5, 0], sizes = [1, 512], strides = [1, 1]} : vector<8x512xf32> to vector<1x512xf32>
    %12 = vector.extract_strided_slice %4 {offsets = [6, 0], sizes = [1, 512], strides = [1, 1]} : vector<8x512xf32> to vector<1x512xf32>
    %13 = vector.broadcast %6 : vector<256x1xf32> to vector<256x512xf32>
    %14 = vector.broadcast %9 : vector<1x512xf32> to vector<256x512xf32>
    %15 = arith.mulf %13, %14 : vector<256x512xf32>
    %16 = vector.broadcast %5 : vector<256x1xf32> to vector<256x512xf32>
    %17 = vector.broadcast %10 : vector<1x512xf32> to vector<256x512xf32>
    %18 = arith.mulf %16, %17 : vector<256x512xf32>
    %19 = arith.minimumf %15, %18 : vector<256x512xf32>
    %20 = vector.broadcast %11 : vector<1x512xf32> to vector<256x512xf32>
    %21 = arith.mulf %19, %20 : vector<256x512xf32>
    %cst = arith.constant dense<0.000000e+00> : vector<256xf32>
    %22 = vector.multi_reduction <add>, %21, %cst [1] : vector<256x512xf32> to vector<256xf32>
    %23 = vector.shape_cast %22 : vector<256xf32> to vector<256x1xf32>
    %24 = vector.broadcast %12 : vector<1x512xf32> to vector<256x512xf32>
    %25 = arith.mulf %19, %24 : vector<256x512xf32>
    %cst_4 = arith.constant dense<0.000000e+00> : vector<256xf32>
    %26 = vector.multi_reduction <add>, %25, %cst_4 [1] : vector<256x512xf32> to vector<256xf32>
    %27 = vector.shape_cast %26 : vector<256xf32> to vector<256x1xf32>
    %c0_5 = arith.constant 0 : index
    %c0_6 = arith.constant 0 : index
    %c0_7 = arith.constant 0 : index
    %28 = vector.load %arg4[%c0_5, %c0_6, %c0_7] : memref<1x8x128xf32, #tpu.memory_space<vmem>>, vector<1x8x128xf32>
    %29 = arith.mulf %7, %23 : vector<256x1xf32>
    %30 = vector.shape_cast %29 : vector<256x1xf32> to vector<1x256x1xf32>
    %cst_8 = arith.constant dense<0.000000e+00> : vector<1xf32>
    %31 = vector.multi_reduction <add>, %30, %cst_8 [1, 2] : vector<1x256x1xf32> to vector<1xf32>
    %32 = vector.shape_cast %31 : vector<1xf32> to vector<1x1x1xf32>
    %33 = vector.extract %32[0, 0, 0] : f32 from vector<1x1x1xf32>
    %34 = vector.broadcast %33 : f32 to vector<1x8x128xf32>
    %35 = arith.addf %28, %34 : vector<1x8x128xf32>
    %c0_9 = arith.constant 0 : index
    %c0_10 = arith.constant 0 : index
    %c0_11 = arith.constant 0 : index
    %36 = vector.load %arg4[%c0_9, %c0_10, %c0_11] : memref<1x8x128xf32, #tpu.memory_space<vmem>>, vector<1x8x128xf32>
    tpu.vector_store %arg4[%c0_9, %c0_10, %c0_11], %35 {strides = array<i32>} : memref<1x8x128xf32, #tpu.memory_space<vmem>>, vector<1x8x128xf32>,
    %c0_12 = arith.constant 0 : index
    %c0_13 = arith.constant 0 : index
    %c0_14 = arith.constant 0 : index
    %37 = vector.load %arg5[%c0_12, %c0_13, %c0_14] : memref<1x8x128xf32, #tpu.memory_space<vmem>>, vector<1x8x128xf32>
    %38 = arith.mulf %8, %27 : vector<256x1xf32>
    %39 = vector.shape_cast %38 : vector<256x1xf32> to vector<1x256x1xf32>
    %cst_15 = arith.constant dense<0.000000e+00> : vector<1xf32>
    %40 = vector.multi_reduction <add>, %39, %cst_15 [1, 2] : vector<1x256x1xf32> to vector<1xf32>
    %41 = vector.shape_cast %40 : vector<1xf32> to vector<1x1x1xf32>
    %42 = vector.extract %41[0, 0, 0] : f32 from vector<1x1x1xf32>
    %43 = vector.broadcast %42 : f32 to vector<1x8x128xf32>
    %44 = arith.addf %37, %43 : vector<1x8x128xf32>
    %c0_16 = arith.constant 0 : index
    %c0_17 = arith.constant 0 : index
    %c0_18 = arith.constant 0 : index
    %45 = vector.load %arg5[%c0_16, %c0_17, %c0_18] : memref<1x8x128xf32, #tpu.memory_space<vmem>>, vector<1x8x128xf32>
    tpu.vector_store %arg5[%c0_16, %c0_17, %c0_18], %44 {strides = array<i32>} : memref<1x8x128xf32, #tpu.memory_space<vmem>>, vector<1x8x128xf32>,
    %c0_19 = arith.constant 0 : index
    %c0_20 = arith.constant 0 : index
    %c0_21 = arith.constant 0 : index
    %46 = vector.load %arg6[%c0_19, %c0_20, %c0_21] : memref<1x8x128xf32, #tpu.memory_space<vmem>>, vector<1x8x128xf32>
    %47 = arith.mulf %7, %27 : vector<256x1xf32>
    %48 = vector.shape_cast %47 : vector<256x1xf32> to vector<1x256x1xf32>
    %cst_22 = arith.constant dense<0.000000e+00> : vector<1xf32>
    %49 = vector.multi_reduction <add>, %48, %cst_22 [1, 2] : vector<1x256x1xf32> to vector<1xf32>
    %50 = vector.shape_cast %49 : vector<1xf32> to vector<1x1x1xf32>
    %51 = vector.extract %50[0, 0, 0] : f32 from vector<1x1x1xf32>
    %52 = vector.broadcast %51 : f32 to vector<1x8x128xf32>
    %53 = arith.addf %46, %52 : vector<1x8x128xf32>
    %c0_23 = arith.constant 0 : index
    %c0_24 = arith.constant 0 : index
    %c0_25 = arith.constant 0 : index
    %54 = vector.load %arg6[%c0_23, %c0_24, %c0_25] : memref<1x8x128xf32, #tpu.memory_space<vmem>>, vector<1x8x128xf32>
    tpu.vector_store %arg6[%c0_23, %c0_24, %c0_25], %53 {strides = array<i32>} : memref<1x8x128xf32, #tpu.memory_space<vmem>>, vector<1x8x128xf32>,
    return
  }
  func.func @transform_0(%arg0: i32, %arg1: i32) -> (i32, i32) {
    %c0_i32 = arith.constant 0 : i32
    %c0_i32_0 = arith.constant 0 : i32
    return %arg0, %c0_i32 : i32, i32
  }
  func.func @transform_1(%arg0: i32, %arg1: i32) -> (i32, i32) {
    %c0_i32 = arith.constant 0 : i32
    %c0_i32_0 = arith.constant 0 : i32
    return %c0_i32, %arg1 : i32, i32
  }
  func.func @transform_2(%arg0: i32, %arg1: i32) -> (i32, i32, i32) {
    %c0_i32 = arith.constant 0 : i32
    %c0_i32_0 = arith.constant 0 : i32
    %c0_i32_1 = arith.constant 0 : i32
    return %arg0, %c0_i32, %c0_i32_0 : i32, i32, i32
  }
  func.func @transform_3(%arg0: i32, %arg1: i32) -> (i32, i32, i32) {
    %c0_i32 = arith.constant 0 : i32
    %c0_i32_0 = arith.constant 0 : i32
    %c0_i32_1 = arith.constant 0 : i32
    return %arg0, %c0_i32, %c0_i32_0 : i32, i32, i32
  }
  func.func @transform_4(%arg0: i32, %arg1: i32) -> (i32, i32, i32) {
    %c0_i32 = arith.constant 0 : i32
    %c0_i32_0 = arith.constant 0 : i32
    %c0_i32_1 = arith.constant 0 : i32
    return %arg0, %c0_i32, %c0_i32_0 : i32, i32, i32
  }
}

</mosaic_0001>

<bundles_post_ra>
// kernel: mmce_weighted_loss.2
= control target key start
LH: loop header
LB: loop body
LE: loop exit
PB: predicated region body
PF: predicated region fallthrough
CT: control target
= control target key end

     0   :  { %vm20_vm0 = vcmask 1043456   ;;  %v105_v2 = vlaneseq  ;;  %v601_v9 = vmov 839922192   ;;  %v602_v18 = vmov 0.0   ;;  %s835_s0 = inlined_call_operand.vmem [shape: f32[4,512], index: 0, kind: input, shape index: {}]   ;;  %s836_s2 = inlined_call_operand.vmem [shape: f32[8,512], index: 2, kind: output, shape index: {}]   ;;  %s837_s1 = inlined_call_operand.vmem [shape: s32[1,512], index: 1, kind: input, shape index: {}]  }
   0x1   :  { %v622_v0 = vld [vmem:[%s835_s0] sm:$0xff]  ;;  %v627_v1 = vld [vmem:[%s835_s0 + $0x8] sm:$0xff]  ;;  %v110_v10 = vunpack.c.l.s4 %v601_v9  ;;  %v603_v29 = vmov 1966171168  }
   0x2   :  { %v631_v3 = vcombine.high %v622_v0, %v622_v0  ;;  %v635_v4 = vcombine.high %v627_v1, %v627_v1  ;;  %v21_v5 = vsel %vm20_vm0, %v622_v0, -inf  ;;  %v35_v6 = vsel %vm20_vm0, %v627_v1, -inf  ;;  %v13_v45 = vld [vmem:[%s837_s1] sm:$0xf] }
   0x3   :  { %v22_v7 = vrot.slane %v21_v5, 4  ;;  %v36_v8 = vrot.slane %v35_v6, 4  ;;  %vm645_vm1 = vcmp.lt.s32.totalorder %v105_v2, 512  ;;  %v655_v23 = vshrl.u32 %v105_v2, 7 }
   0x4   :  { %v28_v11 = vsel %vm20_vm0, %v631_v3, -inf  ;;  %v42_v12 = vsel %vm20_vm0, %v635_v4, -inf  ;;  %559 = vst.msk [vmem:[%s836_s2 + $0x7] ss:$8 sm:$0xf] %vm645_vm1, %v602_v18  ;;  %v111_v24 = vunpack.c.0.s8 %v110_v10  ;;  %v322_v30 = vunpack.c.l.s4 %v603_v29 }
   0x5   :  { %v23_v14 = vmax.f32 %v21_v5, %v22_v7  ;;  %v29_v15 = vrot.slane %v28_v11, 4  ;;  %v37_v16 = vmax.f32 %v35_v6, %v36_v8  ;;  %v43_v17 = vrot.slane %v42_v12, 4 }
   0x6   :  { %v114_v35 = vsub.s32 %v111_v24, %v655_v23  ;;  %v323_v40 = vunpack.c.0.s8 %v322_v30  ;;  %v162_v41 = vsub.s32 0, %v655_v23  ;;  %v166_v42 = vsub.s32 1, %v655_v23 }
   0x7   :  { %v24_v19 = vrot.slane %v23_v14, 2  ;;  %v30_v20 = vmax.f32 %v28_v11, %v29_v15  ;;  %v38_v21 = vrot.slane %v37_v16, 2  ;;  %v44_v22 = vmax.f32 %v42_v12, %v43_v17 }
   0x8   :  { %v115_v46 = vrot.slane %v655_v23, %v114_v35  ;;  %v170_v47 = vsub.s32 2, %v655_v23  ;;  %v678_v50 = vsub.s32 %v323_v40, %v655_v23  ;;  %v680_v51 = vrot.slane %v13_v45, %v162_v41 }
   0x9   :  { %v25_v25 = vmax.f32 %v23_v14, %v24_v19  ;;  %v31_v26 = vrot.slane %v30_v20, 2  ;;  %v39_v27 = vmax.f32 %v37_v16, %v38_v21  ;;  %v45_v28 = vrot.slane %v44_v22, 2 }
   0xa   :  { %v682_v52 = vrot.slane %v13_v45, %v166_v42  ;;  %v688_v57 = vrot.slane %v13_v45, %v170_v47  ;;  %v174_v58 = vsub.s32 3, %v655_v23  ;;  %vm188_vm4 = vcmp.eq.s32.totalorder %v655_v23, %v680_v51 }
   0xb   :  { %v26_v31 = vrot.slane %v25_v25, 1  ;;  %v32_v32 = vmax.f32 %v30_v20, %v31_v26  ;;  %v40_v33 = vrot.slane %v39_v27, 1  ;;  %v46_v34 = vmax.f32 %v44_v22, %v45_v28 }
   0xc   :  { %vm189_vm5 = vcmp.eq.s32.totalorder %v655_v23, %v682_v52  ;;  %v175_v10 = vrot.slane %v13_v45, %v174_v58  ;;  %vm190_vm8 = vcmp.eq.s32.totalorder %v655_v23, %v688_v57  ;;  %v192_v15 = vsel %vm188_vm4, %v622_v0, 0.0 }
   0xd   :  { %v658_v36 = vmax.f32 %v25_v25, %v26_v31  ;;  %v33_v37 = vrot.slane %v32_v32, 1  ;;  %v660_v38 = vmax.f32 %v39_v27, %v40_v33  ;;  %v47_v39 = vrot.slane %v46_v34, 1 }
   0xe   :  { %vm191_vm11 = vcmp.eq.s32.totalorder %v655_v23, %v175_v10  ;;  %v193_v22 = vsel %vm189_vm5, %v631_v3, 0.0  ;;  %v196_v27 = vsel %vm20_vm0, %v192_v15, 0.0 }
   0xf   :  { %v664_v43 = vmax.f32 %v32_v32, %v33_v37  ;;  %v666_v44 = vmax.f32 %v46_v34, %v47_v39  ;;  %v195_v3 = vsel %vm191_vm11, %v635_v4, 0.0  ;;  %v203_v33 = vsel %vm20_vm0, %v193_v22, 0.0 }
  0x10   :  { %v197_v34 = vrot.slane %v196_v27, 4 }
  0x11   :  { %v53_v48 = vcombine.low %v658_v36, %v664_v43  ;;  %v54_v49 = vcombine.low %v660_v38, %v666_v44 }
  0x12   :  { %v198_v22 = vadd.f32 %v197_v34, %v196_v27 }
  0x13   :  { %v57_v53 = vsub.f32 %v622_v0, %v53_v48  ;;  %v58_v54 = vsub.f32 %v627_v1, %v54_v49  ;;  %vm107_vm2 = vcmp.eq.f32.partialorder %v622_v0, %v53_v48  ;;  %vm108_vm3 = vcmp.eq.f32.partialorder %v627_v1, %v54_v49 }
  0x14   :  { %v116_v55 = vsel %vm107_vm2, %v115_v46, 4  ;;  %v117_v56 = vsel %vm108_vm3, %v115_v46, 4  ;;  %v194_v0 = vsel %vm190_vm8, %v627_v1, 0.0 }
  0x15   :  { %v59_v59 = vmul.f32 1.442695, %v57_v53  ;;  %v61_v60 = vmul.f32 1.442695, %v58_v54  ;;  %v118_v61 = vcombine.high %v116_v55, %v116_v55  ;;  %v119_v62 = vcombine.high %v117_v56, %v117_v56 }
  0x16   :  { %v120_v63 = vsel %vm20_vm0, %v116_v55, 2147483647  ;;  %v140_v2 = vsel %vm20_vm0, %v117_v56, 2147483647  ;;  %v210_v39 = vsel %vm20_vm0, %v194_v0, 0.0 }
  0x17   :  { %565 = vpow2.f32 %v59_v59  ;;  %v121_v5 = vrot.slane %v120_v63, 4  ;;  %v130_v6 = vsel %vm20_vm0, %v118_v61, 2147483647  ;;  %v141_v7 = vrot.slane %v140_v2, 4 }
  0x18   :  { %567 = vpow2.f32 %v61_v60  ;;  %v131_v8 = vrot.slane %v130_v6, 4  ;;  %v150_v9 = vsel %vm20_vm0, %v119_v62, 2147483647  ;;  %v217_v61 = vsel %vm20_vm0, %v195_v3, 0.0 }
  0x19   :  { %vm122_vm6 = vcmp.lt.s32.totalorder %v120_v63, %v121_v5  ;;  %vm142_vm7 = vcmp.lt.s32.totalorder %v140_v2, %v141_v7  ;;  %v151_v11 = vrot.slane %v150_v9, 4 }
  0x1a   :  { %v123_v12 = vsel %vm122_vm6, %v120_v63, %v121_v5  ;;  %vm132_vm9 = vcmp.lt.s32.totalorder %v130_v6, %v131_v8  ;;  %v143_v14 = vsel %vm142_vm7, %v140_v2, %v141_v7  ;;  %v204_v7 = vrot.slane %v203_v33, 4 }
  0x1b   :  { %v124_v16 = vrot.slane %v123_v12, 2  ;;  %v133_v17 = vsel %vm132_vm9, %v130_v6, %v131_v8  ;;  %v144_v19 = vrot.slane %v143_v14, 2  ;;  %vm152_vm10 = vcmp.lt.s32.totalorder %v150_v9, %v151_v11 }
  0x1c   :  { %v134_v20 = vrot.slane %v133_v17, 2  ;;  %v153_v21 = vsel %vm152_vm10, %v150_v9, %v151_v11  ;;  %v211_v8 = vrot.slane %v210_v39, 4 }
  0x1d   :  { %vm125_vm12 = vcmp.lt.s32.totalorder %v123_v12, %v124_v16  ;;  %vm145_vm13 = vcmp.lt.s32.totalorder %v143_v14, %v144_v19  ;;  %v154_v24 = vrot.slane %v153_v21, 2 }
  0x1e   :  { %v126_v25 = vsel %vm125_vm12, %v123_v12, %v124_v16  ;;  %vm135_vm14 = vcmp.lt.s32.totalorder %v133_v17, %v134_v20  ;;  %v146_v26 = vsel %vm145_vm13, %v143_v14, %v144_v19  ;;  %v218_v12 = vrot.slane %v217_v61, 4 }
  0x1f   :  { %v127_v28 = vrot.slane %v126_v25, 1  ;;  %v136_v29 = vsel %vm135_vm14, %v133_v17, %v134_v20  ;;  %v147_v30 = vrot.slane %v146_v26, 1  ;;  %vm155_vm15 = vcmp.lt.s32.totalorder %v153_v21, %v154_v24 }
  0x20   :  { %v137_v31 = vrot.slane %v136_v29, 1  ;;  %v156_v32 = vsel %vm155_vm15, %v153_v21, %v154_v24  ;;  %v205_v24 = vadd.f32 %v204_v7, %v203_v33 }
  0x21   :  { %vm128_vm2 = vcmp.lt.s32.totalorder %v126_v25, %v127_v28  ;;  %vm148_vm3 = vcmp.lt.s32.totalorder %v146_v26, %v147_v30  ;;  %v157_v1 = vrot.slane %v156_v32, 1 }
  0x22   :  { %v129_v35 = vsel %vm128_vm2, %v126_v25, %v127_v28  ;;  %vm138_vm4 = vcmp.lt.s32.totalorder %v136_v29, %v137_v31  ;;  %v149_v37 = vsel %vm148_vm3, %v146_v26, %v147_v30  ;;  %v212_v26 = vadd.f32 %v211_v8, %v210_v39 }
  0x23   :  { %v139_v40 = vsel %vm138_vm4, %v136_v29, %v137_v31  ;;  %vm158_vm5 = vcmp.lt.s32.totalorder %v156_v32, %v157_v1  ;;  %vm176_vm6 = vcmp.eq.s32.totalorder %v129_v35, %v680_v51  ;;  %vm178_vm7 = vcmp.eq.s32.totalorder %v149_v37, %v688_v57 }
  0x24   :  { %v566_v41 = vpop.eup %565  ;;  %v159_v23 = vsel %vm158_vm5, %v156_v32, %v157_v1  ;;  %vm177_vm8 = vcmp.eq.s32.totalorder %v139_v40, %v682_v52  ;;  %v724_v4 = vsel %vm176_vm6, 1.0, %v602_v18  ;;  %v727_v42 = vsel %vm178_vm7, 1.0, %v602_v18 }
  0x25   :  { %v568_v45 = vpop.eup %567  ;;  %v65_v46 = vcombine.high %v566_v41, %v566_v41  ;;  %v69_v47 = vsel %vm20_vm0, %v566_v41, 0.0  ;;  %vm179_vm9 = vcmp.eq.s32.totalorder %v159_v23, %v175_v10  ;;  %v731_v48 = vsel %vm177_vm8, 1.0, %v602_v18 }
  0x26   :  { %v66_v49 = vcombine.high %v568_v45, %v568_v45  ;;  %v70_v51 = vrot.slane %v69_v47, 4  ;;  %v83_v53 = vsel %vm20_vm0, %v568_v45, 0.0  ;;  %v735_v52 = vsel %vm179_vm9, 1.0, %v602_v18 }
  0x27   :  { %v76_v54 = vsel %vm20_vm0, %v65_v46, 0.0  ;;  %v84_v55 = vrot.slane %v83_v53, 4  ;;  %v354_v56 = vcombine.low %v724_v4, %v731_v48  ;;  %v355_v57 = vcombine.low %v727_v42, %v735_v52 }
  0x28   :  { %v71_v58 = vadd.f32 %v70_v51, %v69_v47  ;;  %v77_v59 = vrot.slane %v76_v54, 4  ;;  %v90_v60 = vsel %vm20_vm0, %v66_v49, 0.0  ;;  %v219_v28 = vadd.f32 %v218_v12, %v217_v61 }
  0x29   :  { %v85_v62 = vadd.f32 %v84_v55, %v83_v53  ;;  %v91_v63 = vrot.slane %v90_v60, 4  ;;  %v362_v18 = vrot.slane %v354_v56, %v678_v50  ;;  %v369_v2 = vrot.slane %v355_v57, %v678_v50 }
  0x2a   :  { %v72_v5 = vrot.slane %v71_v58, 2  ;;  %v78_v6 = vadd.f32 %v77_v59, %v76_v54  ;;  %v199_v1 = vrot.slane %v198_v22, 2  ;;  %v206_v35 = vrot.slane %v205_v24, 2 }
  0x2b   :  { %v86_v9 = vrot.slane %v85_v62, 2  ;;  %v92_v10 = vadd.f32 %v91_v63, %v90_v60  ;;  %v370_v11 = vcombine.low %v362_v18, %v369_v2  ;;  %v213_v33 = vrot.slane %v212_v26, 2 }
  0x2c   :  { %v73_v14 = vadd.f32 %v72_v5, %v71_v58  ;;  %v79_v15 = vrot.slane %v78_v6, 2  ;;  %v220_v34 = vrot.slane %v219_v28, 2  ;;  %v200_v37 = vadd.f32 %v199_v1, %v198_v22 }
  0x2d   :  { %v87_v16 = vadd.f32 %v86_v9, %v85_v62  ;;  %v93_v17 = vrot.slane %v92_v10, 2  ;;  %v377_v19 = vrot.slane %v370_v11, %v678_v50  ;;  %v207_v40 = vadd.f32 %v206_v35, %v205_v24 }
  0x2e   :  { %v74_v20 = vrot.slane %v73_v14, 1  ;;  %v80_v21 = vadd.f32 %v79_v15, %v78_v6  ;;  %v214_v41 = vadd.f32 %v213_v33, %v212_v26  ;;  %v221_v39 = vadd.f32 %v220_v34, %v219_v28 }
  0x2f   :  { %v88_v0 = vrot.slane %v87_v16, 1  ;;  %v94_v25 = vadd.f32 %v93_v17, %v92_v10  ;;  %553 = vst.msk [vmem:[%s836_s2 + $0x1] ss:$8 sm:$0xf] %vm645_vm1, %v377_v19  ;;  %v201_v23 = vrot.slane %v200_v37, 1  ;;  %v208_v45 = vrot.slane %v207_v40, 1 }
  0x30   :  { %v75_v29 = vadd.f32 %v74_v20, %v73_v14  ;;  %v81_v30 = vrot.slane %v80_v21, 1  ;;  %v215_v46 = vrot.slane %v214_v41, 1  ;;  %v222_v47 = vrot.slane %v221_v39, 1 }
  0x31   :  { %v89_v31 = vadd.f32 %v88_v0, %v87_v16  ;;  %v95_v32 = vrot.slane %v94_v25, 1  ;;  %v303_v49 = vsub.f32 1.0, %v724_v4  ;;  %v305_v51 = vsub.f32 1.0, %v727_v42 }
  0x32   :  { %v82_v3 = vadd.f32 %v81_v30, %v80_v21  ;;  %569 = vrcp.f32 %v75_v29  ;;  %v202_v53 = vadd.f32 %v201_v23, %v200_v37  ;;  %v209_v54 = vadd.f32 %v208_v45, %v207_v40 }
  0x33   :  { %v96_v27 = vadd.f32 %v95_v32, %v94_v25  ;;  %571 = vrcp.f32 %v89_v31  ;;  %v756_v56 = vadd.f32 %v215_v46, %v214_v41  ;;  %v758_v57 = vadd.f32 %v222_v47, %v221_v39 }
  0x34   :  { %573 = vrcp.f32 %v82_v3  ;;  %v304_v58 = vsub.f32 1.0, %v731_v48  ;;  %v306_v59 = vsub.f32 1.0, %v735_v52 }
  0x35   :  { %575 = vrcp.f32 %v96_v27 }
  0x36   :  { %577 = vlog2.f32 %v75_v29 }
  0x37   :  { %579 = vlog2.f32 %v82_v3 }
  0x38   :  { %581 = vlog2.f32 %v89_v31 }
  0x39   :  { %583 = vlog2.f32 %v96_v27 }
  0x3f   :  { %v754_v55 = vpop.eup %569 }
  0x40   :  { %v572_v60 = vpop.eup %571  ;;  %v271_v61 = vmul.f32 2.5, %v754_v55  ;;  %v283_v62 = vmul.f32 -2.5, %v754_v55  ;;  %v295_v63 = vsub.f32 1.0, %v754_v55  ;;  %v766_v18 = vmul.f32 %v754_v55, %v303_v49 }
  0x41   :  { %v574_v2 = vpop.eup %573  ;;  %v273_v5 = vmul.f32 2.5, %v572_v60  ;;  %v285_v6 = vmul.f32 -2.5, %v572_v60  ;;  %v297_v7 = vsub.f32 1.0, %v572_v60  ;;  %v768_v8 = vmul.f32 %v572_v60, %v305_v51 }
  0x42   :  { %v576_v9 = vpop.eup %575  ;;  %v319_v10 = vcombine.low %v754_v55, %v574_v2  ;;  %v272_v11 = vmul.f32 2.5, %v574_v2  ;;  %v275_v12 = vmul.f32 1.442695, %v271_v61  ;;  %v284_v14 = vmul.f32 -2.5, %v574_v2 }
  0x43   :  { %v578_v15 = vpop.eup %577  ;;  %v320_v16 = vcombine.low %v572_v60, %v576_v9  ;;  %v274_v17 = vmul.f32 2.5, %v576_v9  ;;  %v279_v19 = vmul.f32 1.442695, %v273_v5  ;;  %v286_v20 = vmul.f32 -2.5, %v576_v9 }
  0x44   :  { %v580_v21 = vpop.eup %579  ;;  %v327_v22 = vrot.slane %v319_v10, %v678_v50  ;;  %v225_v24 = vmul.f32 0.6931472, %v578_v15  ;;  %585 = vpow2.f32 %v275_v12  ;;  %v277_v0 = vmul.f32 1.442695, %v272_v11 }
  0x45   :  { %v582_v25 = vpop.eup %581  ;;  %v334_v26 = vrot.slane %v320_v16, %v678_v50  ;;  %v227_v28 = vmul.f32 0.6931472, %v580_v21  ;;  %587 = vpow2.f32 %v279_v19  ;;  %v281_v29 = vmul.f32 1.442695, %v274_v17 }
  0x46   :  { %v584_v30 = vpop.eup %583  ;;  %v229_v31 = vmul.f32 0.6931472, %v582_v25  ;;  %v232_v32 = vadd.f32 %v225_v24, %v658_v36  ;;  %589 = vpow2.f32 %v277_v0  ;;  %v287_v3 = vmul.f32 1.442695, %v283_v62 }
  0x47   :  { %v335_v1 = vcombine.low %v327_v22, %v334_v26  ;;  %v231_v35 = vmul.f32 0.6931472, %v584_v30  ;;  %v233_v27 = vadd.f32 %v227_v28, %v664_v43  ;;  %591 = vpow2.f32 %v281_v29 }
  0x48   :  { %v234_v33 = vadd.f32 %v229_v31, %v660_v38  ;;  %v236_v34 = vsub.f32 %v232_v32, %v202_v53  ;;  %593 = vpow2.f32 %v287_v3  ;;  %v289_v37 = vmul.f32 1.442695, %v284_v14 }
  0x49   :  { %v342_v40 = vrot.slane %v335_v1, %v678_v50  ;;  %v235_v41 = vadd.f32 %v231_v35, %v666_v44  ;;  %v237_v39 = vsub.f32 %v233_v27, %v209_v54  ;;  %v291_v23 = vmul.f32 1.442695, %v285_v6 }
  0x4a   :  { %v238_v36 = vsub.f32 %v234_v33, %v756_v56  ;;  %595 = vpow2.f32 %v289_v37  ;;  %v293_v45 = vmul.f32 1.442695, %v286_v20  ;;  %v296_v46 = vsub.f32 1.0, %v574_v2 }
  0x4b   :  { %348 = vst.msk [vmem:[%s836_s2] ss:$8 sm:$0xf] %vm645_vm1, %v342_v40  ;;  %v239_v38 = vsub.f32 %v235_v41, %v758_v57  ;;  %v386_v43 = vcombine.low %v236_v34, %v237_v39  ;;  %597 = vpow2.f32 %v291_v23  ;;  %v298_v47 = vsub.f32 1.0, %v576_v9 }
  0x4c   :  { %599 = vpow2.f32 %v293_v45  ;;  %v299_v44 = vmul.f32 %v724_v4, %v295_v63  ;;  %v300_v49 = vmul.f32 %v731_v48, %v296_v46  ;;  %v301_v51 = vmul.f32 %v727_v42, %v297_v7 }
  0x4d   :  { %v387_v53 = vcombine.low %v238_v36, %v239_v38  ;;  %v394_v54 = vrot.slane %v386_v43, %v678_v50  ;;  %v302_v55 = vmul.f32 %v735_v52, %v298_v47  ;;  %v308_v56 = vmul.f32 %v574_v2, %v304_v58 }
  0x4e   :  { %v482_v60 = vcombine.low %v299_v44, %v300_v49  ;;  %v310_v57 = vmul.f32 %v576_v9, %v306_v59 }
  0x4f   :  { %v401_v61 = vrot.slane %v387_v53, %v678_v50  ;;  %v483_v62 = vcombine.low %v301_v51, %v302_v55  ;;  %v514_v4 = vcombine.low %v766_v18, %v308_v56 }
  0x50   :  { %v490_v63 = vrot.slane %v482_v60, %v678_v50  ;;  %v515_v42 = vcombine.low %v768_v8, %v310_v57 }
  0x51   :  { %v586_v5 = vpop.eup %585  ;;  %v402_v6 = vcombine.low %v394_v54, %v401_v61  ;;  %v497_v7 = vrot.slane %v483_v62, %v678_v50  ;;  %v522_v48 = vrot.slane %v514_v4, %v678_v50 }
  0x52   :  { %v588_v58 = vpop.eup %587  ;;  %v529_v2 = vrot.slane %v515_v42, %v678_v50 }
  0x53   :  { %v590_v52 = vpop.eup %589  ;;  %v409_v59 = vrot.slane %v402_v6, %v678_v50  ;;  %v498_v9 = vcombine.low %v490_v63, %v497_v7 }
  0x54   :  { %v592_v10 = vpop.eup %591  ;;  %v418_v11 = vcombine.low %v586_v5, %v590_v52  ;;  %v530_v18 = vcombine.low %v522_v48, %v529_v2 }
  0x55   :  { %v594_v12 = vpop.eup %593  ;;  %554 = vst.msk [vmem:[%s836_s2 + $0x2] ss:$8 sm:$0xf] %vm645_vm1, %v409_v59  ;;  %v419_v8 = vcombine.low %v588_v58, %v592_v10  ;;  %v505_v14 = vrot.slane %v498_v9, %v678_v50 }
  0x56   :  { %v426_v15 = vrot.slane %v418_v11, %v678_v50  ;;  %v537_v16 = vrot.slane %v530_v18, %v678_v50 }
  0x57   :  { %v596_v17 = vpop.eup %595  ;;  %v433_v19 = vrot.slane %v419_v8, %v678_v50  ;;  %557 = vst.msk [vmem:[%s836_s2 + $0x5] ss:$8 sm:$0xf] %vm645_vm1, %v505_v14 }
  0x58   :  { %v598_v20 = vpop.eup %597  ;;  %v450_v21 = vcombine.low %v594_v12, %v596_v17  ;;  %558 = vst.msk [vmem:[%s836_s2 + $0x6] ss:$8 sm:$0xf] %vm645_vm1, %v537_v16 }
  0x59   :  { %v600_v22 = vpop.eup %599  ;;  %v434_v24 = vcombine.low %v426_v15, %v433_v19 }
  0x5a   :  { %v451_v0 = vcombine.low %v598_v20, %v600_v22  ;;  %v458_v25 = vrot.slane %v450_v21, %v678_v50 }
  0x5b   :  { %v441_v26 = vrot.slane %v434_v24, %v678_v50 }
  0x5c   :  { %v465_v28 = vrot.slane %v451_v0, %v678_v50 }
  0x5d   :  { %555 = vst.msk [vmem:[%s836_s2 + $0x3] ss:$8 sm:$0xf] %vm645_vm1, %v441_v26 }
  0x5e   :  { %v466_v29 = vcombine.low %v458_v25, %v465_v28 }
  0x60   :  { %v473_v30 = vrot.slane %v466_v29, %v678_v50 }
  0x62   :  { %556 = vst.msk [vmem:[%s836_s2 + $0x4] ss:$8 sm:$0xf] %vm645_vm1, %v473_v30 }

// kernel: mmce_weighted_loss.3
= control target key start
LH: loop header
LB: loop body
LE: loop exit
PB: predicated region body
PF: predicated region fallthrough
CT: control target
= control target key end

     0   :  { %s2529_s15 = smov 0   ;;  %s2531_s16 = smov 0   ;;  %s4941_s0 = inlined_call_operand.vmem [shape: f32[512,4], index: 0, kind: input, shape index: {}]   ;;  %s4942_s1 = inlined_call_operand.vmem [shape: f32[8,512], index: 1, kind: input, shape index: {}]   ;;  %s4943_s2 = inlined_call_operand.vmem [shape: f32[2,8,128], index: 2, kind: output, shape index: {0}]   ;;  %s4944_s3 = inlined_call_operand.vmem [shape: f32[2,8,128], index: 3, kind: output, shape index: {1}]   ;;  %s4945_s4 = inlined_call_operand.vmem [shape: f32[2,8,128], index: 4, kind: output, shape index: {2}]  }
   0x1   :  { %s2533_s17 = smov 0  }
   0x2 LB: > { %s27_s18 = sadd.s32 1, %s2494_s16  ;;  %p2397_p0 = scmp.ge.s32.totalorder %s2498_s17, 1  ;;  %s2498_s17 = sphi %s2533_s17, %s15_s17   ;;  %s2494_s16 = sphi %s2531_s16, %s5433_s16   ;;  %s2490_s15 = sphi %s2529_s15, %s5432_s15  }
   0x3   : > { %p29_p1 = scmp.ge.s32.totalorder %s27_s18, 2  ;;  %p191_p2 = scmp.lt.s32.totalorder %s2498_s17, 3 }
   0x5   : > { %s5435_s18 = smov (%p29_p1, %s27_s18), 0  ;;  %p192_p3 = pnand %p2397_p0, %p191_p2 }
   0x7   : > { %195 = sbr.rel (%p192_p3) target bundleno = 993 (0x3e1), region = 28 }
   0xc   : > { %s2398_s19 = sshll.u32 %s2490_s15, 5  ;;  %v2500_v0 = vmov 1   ;;  %v2501_v33 = vmov 0   ;;  %v456_v44 = vlaneseq  ;;  %v292_v51 = vld [vmem:[%s4942_s1] sm:$0xff]  ;;  %v293_v52 = vld [vmem:[%s4942_s1 + $0x8] sm:$0xff]  ;;  %v294_v53 = vld [vmem:[%s4942_s1 + $0x10] sm:$0xff] }
   0xd   : > { %2441 = vset.pattern.permute.xlu1 %v2500_v0  ;;  %2440 = vset.pattern.permute.xlu0 %v2500_v0  ;;  %p230_p4 = scmp.lt.s32.totalorder %s2398_s19, 63  ;;  %v295_v57 = vld [vmem:[%s4942_s1 + $0x18] sm:$0xff]  ;;  %s2502_s6 = smov 126   ;;  %vm1769_vm0 = vcmask 7168  }
   0xe   : > { %v457_v47 = vshrl.u32 %v456_v44, 7  ;;  %s2503_s7 = smov 125   ;;  %p241_p5 = scmp.lt.s32.totalorder %s2490_s15, 1 }
   0xf   : > { %s5437_s19 = smov (!%p230_p4, %s2398_s19), 63 }
  0x10   : > { %s2399_s20 = sshll.u32 %s5437_s19, 3  ;;  %v458_v50 = vsub.s32 3, %v457_v47  ;;  %v730_v54 = vsub.s32 4, %v457_v47  ;;  %v1002_v58 = vsub.s32 5, %v457_v47  ;;  %v1306_v59 = vsub.s32 6, %v457_v47  ;;  %s5439_s15 = smov (!%p241_p5, %s2490_s15), 1 }
  0x11   : > { %s2553_s23 = scalar_lea.vmem %s4941_s0, %s2399_s20  ;;  %s2400_s8 = sshll.u32 %s5439_s15, 3 }
  0x12   : > { %v2556_v1 = vld [vmem:[%s2553_s23 + $0x10] sm:$0xff]  ;;  %v2559_v2 = vld [vmem:[%s2553_s23] sm:$0xff]  ;;  %v2564_v3 = vld [vmem:[%s2553_s23 + $0x18] sm:$0xff]  ;;  %v2639_v60 = vrot.slane %v292_v51, %v458_v50  ;;  %v2641_v61 = vrot.slane %v293_v52, %v458_v50  ;;  %v2643_v62 = vrot.slane %v294_v53, %v458_v50  ;;  %v2645_v63 = vrot.slane %v292_v51, %v730_v54  ;;  %s244_s12 = scalar_lea.vmem %s4943_s2, %s2400_s8  ;;  %s248_s20 = scalar_lea.vmem %s4944_s3, %s2400_s8 }
  0x13   : > { %308 = vperm.xlu1 %2441, %v2556_v1   ;;  %298 = vperm.xlu0 %2440, %v2559_v2   ;;  %v261_v4 = vld [vmem:[%s2553_s23 + $0x8] sm:$0xff]  ;;  %v264_v6 = vld [vmem:[%s2553_s23 + $0x20] sm:$0xff]  ;;  %v267_v7 = vld [vmem:[%s2553_s23 + $0x38] sm:$0xff]  ;;  %v2647_v0 = vrot.slane %v293_v52, %v730_v54  ;;  %s252_s24 = scalar_lea.vmem %s4945_s4, %s2400_s8 }
  0x14   : > { %v2569_v5 = vld [vmem:[%s2553_s23 + $0x28] sm:$0xff]  ;;  %v266_v8 = vld [vmem:[%s2553_s23 + $0x30] sm:$0xff]  ;;  %v268_v10 = vld [vmem:[%s2553_s23 + $0x40] sm:$0xff] }
  0x15   : > { %v269_v9 = vld [vmem:[%s2553_s23 + $0x48] sm:$0xff]  ;;  %v271_v11 = vld [vmem:[%s2553_s23 + $0x58] sm:$0xff]  ;;  %v270_v12 = vld [vmem:[%s2553_s23 + $0x50] sm:$0xff] }
  0x16   : > { %v273_v13 = vld [vmem:[%s2553_s23 + $0x68] sm:$0xff]  ;;  %v272_v14 = vld [vmem:[%s2553_s23 + $0x60] sm:$0xff]  ;;  %v275_v15 = vld [vmem:[%s2553_s23 + $0x78] sm:$0xff] }
  0x17   : > { %313 = vperm.xlu1 %2441, %v2564_v3   ;;  %303 = vperm.xlu0 %2440, %v261_v4   ;;  %v274_v16 = vld [vmem:[%s2553_s23 + $0x70] sm:$0xff]  ;;  %v277_v17 = vld [vmem:[%s2553_s23 + $0x88] sm:$0xff]  ;;  %v276_v18 = vld [vmem:[%s2553_s23 + $0x80] sm:$0xff] }
  0x18   : > { %v279_v19 = vld [vmem:[%s2553_s23 + $0x98] sm:$0xff]  ;;  %v278_v20 = vld [vmem:[%s2553_s23 + $0x90] sm:$0xff]  ;;  %v281_v21 = vld [vmem:[%s2553_s23 + $0xa8] sm:$0xff] }
  0x19   : > { %v280_v22 = vld [vmem:[%s2553_s23 + $0xa0] sm:$0xff]  ;;  %v283_v23 = vld [vmem:[%s2553_s23 + $0xb8] sm:$0xff]  ;;  %v282_v24 = vld [vmem:[%s2553_s23 + $0xb0] sm:$0xff] }
  0x1a   : > { %v285_v25 = vld [vmem:[%s2553_s23 + $0xc8] sm:$0xff]  ;;  %v284_v26 = vld [vmem:[%s2553_s23 + $0xc0] sm:$0xff]  ;;  %v287_v27 = vld [vmem:[%s2553_s23 + $0xd8] sm:$0xff] }
  0x1b   : > { %323 = vperm.xlu1 %2441, %v2569_v5   ;;  %318 = vperm.xlu0 %2440, %v264_v6   ;;  %v286_v28 = vld [vmem:[%s2553_s23 + $0xd0] sm:$0xff]  ;;  %v289_v29 = vld [vmem:[%s2553_s23 + $0xe8] sm:$0xff]  ;;  %v288_v30 = vld [vmem:[%s2553_s23 + $0xe0] sm:$0xff] }
  0x1c   : > { %v291_v31 = vld [vmem:[%s2553_s23 + $0xf8] sm:$0xff]  ;;  %v290_v32 = vld [vmem:[%s2553_s23 + $0xf0] sm:$0xff] }
  0x1f   : > { %333 = vperm.xlu1 %2441, %v267_v7   ;;  %328 = vperm.xlu0 %2440, %v266_v8  }
  0x23   : > { %343 = vperm.xlu1 %2441, %v269_v9   ;;  %338 = vperm.xlu0 %2440, %v268_v10  }
  0x27   : > { %353 = vperm.xlu1 %2441, %v271_v11   ;;  %348 = vperm.xlu0 %2440, %v270_v12  }
  0x2b   : > { %363 = vperm.xlu1 %2441, %v273_v13   ;;  %358 = vperm.xlu0 %2440, %v272_v14  }
  0x2f   : > { %373 = vperm.xlu1 %2441, %v275_v15   ;;  %368 = vperm.xlu0 %2440, %v274_v16  }
  0x33   : > { %383 = vperm.xlu1 %2441, %v277_v17   ;;  %378 = vperm.xlu0 %2440, %v276_v18  }
  0x37   : > { %393 = vperm.xlu1 %2441, %v279_v19   ;;  %388 = vperm.xlu0 %2440, %v278_v20  }
  0x3b   : > { %403 = vperm.xlu1 %2441, %v281_v21   ;;  %398 = vperm.xlu0 %2440, %v280_v22  }
  0x3f   : > { %413 = vperm.xlu1 %2441, %v283_v23   ;;  %408 = vperm.xlu0 %2440, %v282_v24  }
  0x43   : > { %423 = vperm.xlu1 %2441, %v285_v25   ;;  %418 = vperm.xlu0 %2440, %v284_v26  }
  0x47   : > { %433 = vperm.xlu1 %2441, %v287_v27   ;;  %428 = vperm.xlu0 %2440, %v286_v28  }
  0x4b   : > { %443 = vperm.xlu1 %2441, %v289_v29   ;;  %438 = vperm.xlu0 %2440, %v288_v30  }
  0x4f   : > { %453 = vperm.xlu1 %2441, %v291_v31   ;;  %448 = vperm.xlu0 %2440, %v290_v32  }
  0x53   : > { %2443 = vset.pattern.permute.xlu1 %v2501_v33  ;;  %2442 = vset.pattern.permute.xlu0 %v2501_v33 }
  0x54   : > { %605 = vperm.xlu1 %2443, %v261_v4   ;;  %601 = vperm.xlu0 %2442, %v2559_v2   ;;  %v2651_v2 = vrot.slane %v295_v57, %v458_v50 }
  0x58   : > { %609 = vperm.xlu1 %2443, %v2556_v1   ;;  %613 = vperm.xlu0 %2442, %v2564_v3   ;;  %v2649_v1 = vrot.slane %v294_v53, %v730_v54 }
  0x5c   : > { %617 = vperm.xlu1 %2443, %v264_v6   ;;  %621 = vperm.xlu0 %2442, %v2569_v5   ;;  %v2657_v5 = vrot.slane %v295_v57, %v730_v54  ;;  %v2659_v6 = vrot.slane %v292_v51, %v1002_v58 }
  0x60   : > { %625 = vperm.xlu1 %2443, %v266_v8   ;;  %629 = vperm.xlu0 %2442, %v267_v7   ;;  %v2661_v7 = vrot.slane %v293_v52, %v1002_v58  ;;  %v2663_v8 = vrot.slane %v294_v53, %v1002_v58 }
  0x64   : > { %633 = vperm.xlu1 %2443, %v268_v10   ;;  %637 = vperm.xlu0 %2442, %v269_v9   ;;  %v2665_v9 = vrot.slane %v295_v57, %v1002_v58  ;;  %v2667_v10 = vrot.slane %v292_v51, %v1306_v59 }
  0x66   : > { %5044 = vst [vmem:[#allocation2_spill] sm:$0xff] %v2667_v10 }
  0x68   : > { %641 = vperm.xlu1 %2443, %v270_v12   ;;  %645 = vperm.xlu0 %2442, %v271_v11   ;;  %v2669_v11 = vrot.slane %v293_v52, %v1306_v59  ;;  %v2671_v12 = vrot.slane %v294_v53, %v1306_v59 }
  0x6a   : > { %5045 = vst [vmem:[#allocation3_spill] sm:$0xff] %v2669_v11  ;;  %5046 = vst [vmem:[#allocation4_spill] sm:$0xff] %v2671_v12 }
  0x6c   : > { %649 = vperm.xlu1 %2443, %v272_v14   ;;  %653 = vperm.xlu0 %2442, %v273_v13  }
  0x70   : > { %657 = vperm.xlu1 %2443, %v274_v16   ;;  %661 = vperm.xlu0 %2442, %v275_v15   ;;  %v2682_v16 = vrot.slane %v295_v57, %v1306_v59 }
  0x72   : > { %5047 = vst [vmem:[#allocation5_spill] sm:$0xff] %v2682_v16 }
  0x74   : > { %665 = vperm.xlu1 %2443, %v276_v18   ;;  %669 = vperm.xlu0 %2442, %v277_v17  }
  0x78   : > { %673 = vperm.xlu1 %2443, %v278_v20   ;;  %677 = vperm.xlu0 %2442, %v279_v19  }
  0x7c   : > { %681 = vperm.xlu1 %2443, %v280_v22   ;;  %685 = vperm.xlu0 %2442, %v281_v21  }
  0x80   : > { %689 = vperm.xlu1 %2443, %v282_v24   ;;  %693 = vperm.xlu0 %2442, %v283_v23  }
  0x84   : > { %697 = vperm.xlu1 %2443, %v284_v26   ;;  %701 = vperm.xlu0 %2442, %v285_v25  }
  0x88   : > { %705 = vperm.xlu1 %2443, %v286_v28   ;;  %709 = vperm.xlu0 %2442, %v287_v27  }
  0x8c   : > { %713 = vperm.xlu1 %2443, %v288_v30   ;;  %717 = vperm.xlu0 %2442, %v289_v29  }
  0x8e   : > { %v309_v34 = vpop.permute.xlu1 %308  ;;  %v299_v35 = vpop.permute.xlu0 %298 }
  0x8f   : > { %v2674_v13 = vmul.f32 %v2639_v60, %v309_v34  ;;  %v2677_v14 = vmul.f32 %v2641_v61, %v309_v34  ;;  %v2680_v15 = vmul.f32 %v2643_v62, %v309_v34  ;;  %v2685_v17 = vmul.f32 %v2639_v60, %v299_v35 }
  0x90   : > { %721 = vperm.xlu1 %2443, %v290_v32   ;;  %725 = vperm.xlu0 %2442, %v291_v31   ;;  %v2688_v18 = vmul.f32 %v2641_v61, %v299_v35  ;;  %v2691_v19 = vmul.f32 %v2643_v62, %v299_v35  ;;  %v2694_v20 = vmul.f32 %v2651_v2, %v299_v35 }
  0x91   : > { %v2710_v26 = vmul.f32 %v2651_v2, %v309_v34 }
  0x92   : > { %v314_v36 = vpop.permute.xlu1 %313  ;;  %v304_v37 = vpop.permute.xlu0 %303 }
  0x93   : > { %v2697_v21 = vmul.f32 %v2639_v60, %v314_v36  ;;  %v2700_v22 = vmul.f32 %v2641_v61, %v314_v36  ;;  %v2703_v23 = vmul.f32 %v2643_v62, %v314_v36  ;;  %v2713_v27 = vmul.f32 %v2639_v60, %v304_v37 }
  0x94   : > { %v2716_v28 = vmul.f32 %v2641_v61, %v304_v37  ;;  %v2719_v29 = vmul.f32 %v2643_v62, %v304_v37  ;;  %v2722_v30 = vmul.f32 %v2651_v2, %v304_v37  ;;  %v2737_v34 = vmul.f32 %v2651_v2, %v314_v36 }
  0x96   : > { %v2603_v38 = vpop.permute.xlu1 %323  ;;  %v2605_v39 = vpop.permute.xlu0 %318 }
  0x97   : > { %v2726_v31 = vmul.f32 %v2639_v60, %v2603_v38  ;;  %v2730_v32 = vmul.f32 %v2641_v61, %v2603_v38  ;;  %v2734_v33 = vmul.f32 %v2643_v62, %v2603_v38  ;;  %v2741_v35 = vmul.f32 %v2639_v60, %v2605_v39 }
  0x98   : > { %v2745_v37 = vmul.f32 %v2641_v61, %v2605_v39  ;;  %v2749_v44 = vmul.f32 %v2643_v62, %v2605_v39  ;;  %v2753_v47 = vmul.f32 %v2651_v2, %v2605_v39  ;;  %v2773_v39 = vmul.f32 %v2651_v2, %v2603_v38 }
  0x9a   : > { %v2607_v40 = vpop.permute.xlu1 %333  ;;  %v2609_v41 = vpop.permute.xlu0 %328 }
  0x9b   : > { %v2757_v36 = vmul.f32 %v2639_v60, %v2607_v40  ;;  %v2761_v50 = vmul.f32 %v2641_v61, %v2607_v40  ;;  %v2765_v51 = vmul.f32 %v2643_v62, %v2607_v40  ;;  %v2777_v54 = vmul.f32 %v2639_v60, %v2609_v41 }
  0x9c   : > { %v2781_v57 = vmul.f32 %v2641_v61, %v2609_v41  ;;  %v2785_v58 = vmul.f32 %v2643_v62, %v2609_v41  ;;  %v2789_v59 = vmul.f32 %v2651_v2, %v2609_v41  ;;  %v2805_v11 = vmul.f32 %v2651_v2, %v2607_v40 }
  0x9e   : > { %v2611_v42 = vpop.permute.xlu1 %343  ;;  %v2613_v43 = vpop.permute.xlu0 %338  ;;  %5051 = vst [vmem:[#allocation9_spill] sm:$0xff] %v2805_v11 }
  0x9f   : > { %v2793_v38 = vmul.f32 %v2639_v60, %v2611_v42  ;;  %v2797_v16 = vmul.f32 %v2641_v61, %v2611_v42  ;;  %v2801_v12 = vmul.f32 %v2643_v62, %v2611_v42  ;;  %v2809_v41 = vmul.f32 %v2639_v60, %v2613_v43 }
  0xa0   : > { %v2813_v10 = vmul.f32 %v2641_v61, %v2613_v43 }
  0xa1   : > { %5048 = vst [vmem:[#allocation6_spill] sm:$0xff] %v2793_v38  ;;  %5049 = vst [vmem:[#allocation7_spill] sm:$0xff] %v2797_v16  ;;  %v2817_v38 = vmul.f32 %v2643_v62, %v2613_v43  ;;  %v2821_v16 = vmul.f32 %v2651_v2, %v2613_v43 }
  0xa2   : > { %v2615_v45 = vpop.permute.xlu1 %353  ;;  %v2617_v46 = vpop.permute.xlu0 %348  ;;  %5050 = vst [vmem:[#allocation8_spill] sm:$0xff] %v2801_v12  ;;  %5052 = vst [vmem:[#allocation10_spill] sm:$0xff] %v2809_v41 }
  0xa3   : > { %5053 = vst [vmem:[#allocation11_spill] sm:$0xff] %v2813_v10  ;;  %5054 = vst [vmem:[#allocation12_spill] sm:$0xff] %v2817_v38  ;;  %v2825_v40 = vmul.f32 %v2639_v60, %v2615_v45  ;;  %v2829_v12 = vmul.f32 %v2641_v61, %v2615_v45  ;;  %v2833_v41 = vmul.f32 %v2643_v62, %v2615_v45 }
  0xa4   : > { %v2839_v38 = vmul.f32 %v2651_v2, %v2611_v42  ;;  %v2843_v43 = vmul.f32 %v2639_v60, %v2617_v46 }
  0xa5   : > { %5055 = vst [vmem:[#allocation13_spill] sm:$0xff] %v2825_v40  ;;  %5056 = vst [vmem:[#allocation14_spill] sm:$0xff] %v2829_v12  ;;  %v2847_v40 = vmul.f32 %v2641_v61, %v2617_v46  ;;  %v2851_v12 = vmul.f32 %v2643_v62, %v2617_v46 }
  0xa6   : > { %v2619_v48 = vpop.permute.xlu1 %363  ;;  %v2621_v49 = vpop.permute.xlu0 %358  ;;  %5057 = vst [vmem:[#allocation15_spill] sm:$0xff] %v2833_v41  ;;  %5058 = vst [vmem:[#allocation16_spill] sm:$0xff] %v2839_v38  ;;  %v2855_v41 = vmul.f32 %v2651_v2, %v2617_v46 }
  0xa7   : > { %5059 = vst [vmem:[#allocation17_spill] sm:$0xff] %v2843_v43  ;;  %5060 = vst [vmem:[#allocation18_spill] sm:$0xff] %v2847_v40  ;;  %v2859_v42 = vmul.f32 %v2639_v60, %v2619_v48  ;;  %v2863_v38 = vmul.f32 %v2641_v61, %v2619_v48  ;;  %v2867_v43 = vmul.f32 %v2643_v62, %v2619_v48 }
  0xa8   : > { %5061 = vst [vmem:[#allocation19_spill] sm:$0xff] %v2851_v12  ;;  %5062 = vst [vmem:[#allocation20_spill] sm:$0xff] %v2855_v41  ;;  %v2871_v40 = vmul.f32 %v2651_v2, %v2615_v45  ;;  %v2875_v46 = vmul.f32 %v2639_v60, %v2621_v49  ;;  %v2879_v41 = vmul.f32 %v2641_v61, %v2621_v49 }
  0xa9   : > { %5063 = vst [vmem:[#allocation21_spill] sm:$0xff] %v2859_v42  ;;  %5064 = vst [vmem:[#allocation22_spill] sm:$0xff] %v2863_v38  ;;  %v2883_v42 = vmul.f32 %v2643_v62, %v2621_v49  ;;  %v2887_v38 = vmul.f32 %v2651_v2, %v2621_v49 }
  0xaa   : > { %v2632_v55 = vpop.permute.xlu1 %373  ;;  %v2634_v56 = vpop.permute.xlu0 %368  ;;  %5065 = vst [vmem:[#allocation23_spill] sm:$0xff] %v2867_v43  ;;  %5066 = vst [vmem:[#allocation24_spill] sm:$0xff] %v2871_v40 }
  0xab   : > { %5067 = vst [vmem:[#allocation25_spill] sm:$0xff] %v2875_v46  ;;  %5068 = vst [vmem:[#allocation26_spill] sm:$0xff] %v2879_v41  ;;  %v2891_v45 = vmul.f32 %v2639_v60, %v2632_v55  ;;  %v2895_v43 = vmul.f32 %v2641_v61, %v2632_v55  ;;  %v2899_v46 = vmul.f32 %v2643_v62, %v2632_v55 }
  0xac   : > { %5069 = vst [vmem:[#allocation27_spill] sm:$0xff] %v2883_v42  ;;  %5070 = vst [vmem:[#allocation28_spill] sm:$0xff] %v2887_v38  ;;  %v2903_v42 = vmul.f32 %v2651_v2, %v2619_v48  ;;  %v2907_v49 = vmul.f32 %v2639_v60, %v2634_v56 }
  0xad   : > { %5071 = vst [vmem:[#allocation29_spill] sm:$0xff] %v2891_v45  ;;  %5072 = vst [vmem:[#allocation30_spill] sm:$0xff] %v2895_v43  ;;  %v2911_v45 = vmul.f32 %v2641_v61, %v2634_v56  ;;  %v2915_v43 = vmul.f32 %v2643_v62, %v2634_v56 }
  0xae   : > { %v2653_v3 = vpop.permute.xlu1 %383  ;;  %v2655_v4 = vpop.permute.xlu0 %378  ;;  %5073 = vst [vmem:[#allocation31_spill] sm:$0xff] %v2899_v46  ;;  %5074 = vst [vmem:[#allocation32_spill] sm:$0xff] %v2903_v42  ;;  %v2919_v46 = vmul.f32 %v2651_v2, %v2634_v56 }
  0xaf   : > { %5075 = vst [vmem:[#allocation33_spill] sm:$0xff] %v2907_v49  ;;  %5076 = vst [vmem:[#allocation34_spill] sm:$0xff] %v2911_v45  ;;  %v2923_v48 = vmul.f32 %v2639_v60, %v2653_v3  ;;  %v2927_v42 = vmul.f32 %v2641_v61, %v2653_v3  ;;  %v2931_v49 = vmul.f32 %v2643_v62, %v2653_v3 }
  0xb0   : > { %5077 = vst [vmem:[#allocation35_spill] sm:$0xff] %v2915_v43  ;;  %5078 = vst [vmem:[#allocation36_spill] sm:$0xff] %v2919_v46  ;;  %v2935_v45 = vmul.f32 %v2651_v2, %v2632_v55  ;;  %v2939_v56 = vmul.f32 %v2639_v60, %v2655_v4  ;;  %v2943_v46 = vmul.f32 %v2641_v61, %v2655_v4 }
  0xb1   : > { %5079 = vst [vmem:[#allocation37_spill] sm:$0xff] %v2923_v48  ;;  %5080 = vst [vmem:[#allocation38_spill] sm:$0xff] %v2927_v42  ;;  %v2947_v48 = vmul.f32 %v2643_v62, %v2655_v4  ;;  %v2951_v42 = vmul.f32 %v2651_v2, %v2655_v4 }
  0xb2   : > { %v2705_v24 = vpop.permute.xlu1 %393  ;;  %v2707_v25 = vpop.permute.xlu0 %388  ;;  %5081 = vst [vmem:[#allocation39_spill] sm:$0xff] %v2931_v49  ;;  %5082 = vst [vmem:[#allocation40_spill] sm:$0xff] %v2935_v45 }
  0xb3   : > { %5083 = vst [vmem:[#allocation41_spill] sm:$0xff] %v2939_v56  ;;  %5084 = vst [vmem:[#allocation42_spill] sm:$0xff] %v2943_v46  ;;  %v2955_v55 = vmul.f32 %v2639_v60, %v2705_v24  ;;  %v2959_v49 = vmul.f32 %v2641_v61, %v2705_v24  ;;  %v2963_v56 = vmul.f32 %v2643_v62, %v2705_v24 }
  0xb4   : > { %5085 = vst [vmem:[#allocation43_spill] sm:$0xff] %v2947_v48  ;;  %5086 = vst [vmem:[#allocation44_spill] sm:$0xff] %v2951_v42  ;;  %v2967_v48 = vmul.f32 %v2651_v2, %v2653_v3  ;;  %v2971_v4 = vmul.f32 %v2639_v60, %v2707_v25 }
  0xb5   : > { %5087 = vst [vmem:[#allocation45_spill] sm:$0xff] %v2955_v55  ;;  %5088 = vst [vmem:[#allocation46_spill] sm:$0xff] %v2959_v49  ;;  %v2975_v55 = vmul.f32 %v2641_v61, %v2707_v25  ;;  %v2979_v49 = vmul.f32 %v2643_v62, %v2707_v25 }
  0xb6   : > { %v2767_v52 = vpop.permute.xlu1 %403  ;;  %v2769_v53 = vpop.permute.xlu0 %398  ;;  %5089 = vst [vmem:[#allocation47_spill] sm:$0xff] %v2963_v56  ;;  %5090 = vst [vmem:[#allocation48_spill] sm:$0xff] %v2967_v48  ;;  %v2983_v56 = vmul.f32 %v2651_v2, %v2707_v25 }
  0xb7   : > { %5091 = vst [vmem:[#allocation49_spill] sm:$0xff] %v2971_v4  ;;  %5092 = vst [vmem:[#allocation50_spill] sm:$0xff] %v2975_v55  ;;  %v2987_v3 = vmul.f32 %v2639_v60, %v2767_v52  ;;  %v2991_v48 = vmul.f32 %v2641_v61, %v2767_v52  ;;  %v2995_v4 = vmul.f32 %v2643_v62, %v2767_v52 }
  0xb8   : > { %5093 = vst [vmem:[#allocation51_spill] sm:$0xff] %v2979_v49  ;;  %5094 = vst [vmem:[#allocation52_spill] sm:$0xff] %v2983_v56  ;;  %v2999_v55 = vmul.f32 %v2651_v2, %v2705_v24  ;;  %v3003_v25 = vmul.f32 %v2639_v60, %v2769_v53  ;;  %v3007_v56 = vmul.f32 %v2641_v61, %v2769_v53 }
  0xb9   : > { %5095 = vst [vmem:[#allocation53_spill] sm:$0xff] %v2987_v3  ;;  %5096 = vst [vmem:[#allocation54_spill] sm:$0xff] %v2991_v48  ;;  %v3011_v3 = vmul.f32 %v2643_v62, %v2769_v53  ;;  %v3015_v48 = vmul.f32 %v2651_v2, %v2769_v53 }
  0xba   : > { %v2835_v10 = vpop.permute.xlu1 %413  ;;  %v409_v11 = vpop.permute.xlu0 %408  ;;  %5097 = vst [vmem:[#allocation55_spill] sm:$0xff] %v2995_v4  ;;  %5098 = vst [vmem:[#allocation56_spill] sm:$0xff] %v2999_v55 }
  0xbb   : > { %5099 = vst [vmem:[#allocation57_spill] sm:$0xff] %v3003_v25  ;;  %5100 = vst [vmem:[#allocation58_spill] sm:$0xff] %v3007_v56  ;;  %v3019_v24 = vmul.f32 %v2639_v60, %v2835_v10  ;;  %v3023_v4 = vmul.f32 %v2641_v61, %v2835_v10  ;;  %v3027_v25 = vmul.f32 %v2643_v62, %v2835_v10 }
  0xbc   : > { %5101 = vst [vmem:[#allocation59_spill] sm:$0xff] %v3011_v3  ;;  %5102 = vst [vmem:[#allocation60_spill] sm:$0xff] %v3015_v48  ;;  %v3031_v3 = vmul.f32 %v2651_v2, %v2767_v52  ;;  %v3034_v53 = vmul.f32 %v2639_v60, %v409_v11  ;;  %v3037_v48 = vmul.f32 %v2641_v61, %v409_v11 }
  0xbd   : > { %5103 = vst [vmem:[#allocation61_spill] sm:$0xff] %v3019_v24  ;;  %5104 = vst [vmem:[#allocation62_spill] sm:$0xff] %v3023_v4  ;;  %v3040_v24 = vmul.f32 %v2643_v62, %v409_v11  ;;  %v3043_v4 = vmul.f32 %v2651_v2, %v409_v11 }
  0xbe   : > { %v424_v41 = vpop.permute.xlu1 %423  ;;  %v419_v40 = vpop.permute.xlu0 %418  ;;  %5105 = vst [vmem:[#allocation63_spill] sm:$0xff] %v3027_v25  ;;  %5106 = vst [vmem:[#allocation64_spill] sm:$0xff] %v3031_v3 }
  0xbf   : > { %5107 = vst [vmem:[#allocation65_spill] sm:$0xff] %v3034_v53  ;;  %5108 = vst [vmem:[#allocation66_spill] sm:$0xff] %v3037_v48  ;;  %v3046_v25 = vmul.f32 %v2639_v60, %v424_v41  ;;  %v3049_v49 = vmul.f32 %v2641_v61, %v424_v41  ;;  %v3052_v52 = vmul.f32 %v2643_v62, %v424_v41 }
  0xc0   : > { %5109 = vst [vmem:[#allocation67_spill] sm:$0xff] %v3040_v24  ;;  %5110 = vst [vmem:[#allocation68_spill] sm:$0xff] %v3043_v4  ;;  %v3056_v53 = vmul.f32 %v2651_v2, %v2835_v10  ;;  %v3059_v48 = vmul.f32 %v2639_v60, %v419_v40  ;;  %v3062_v24 = vmul.f32 %v2641_v61, %v419_v40 }
  0xc1   : > { %5111 = vst [vmem:[#allocation69_spill] sm:$0xff] %v3046_v25  ;;  %5112 = vst [vmem:[#allocation70_spill] sm:$0xff] %v3049_v49  ;;  %v3065_v11 = vmul.f32 %v2643_v62, %v419_v40  ;;  %v3068_v25 = vmul.f32 %v2651_v2, %v419_v40  ;;  %v3080_v4 = vmul.f32 %v2651_v2, %v424_v41 }
  0xc2   : > { %v434_v46 = vpop.permute.xlu1 %433  ;;  %v429_v45 = vpop.permute.xlu0 %428  ;;  %5113 = vst [vmem:[#allocation71_spill] sm:$0xff] %v3052_v52  ;;  %5114 = vst [vmem:[#allocation72_spill] sm:$0xff] %v3056_v53 }
  0xc3   : > { %5115 = vst [vmem:[#allocation73_spill] sm:$0xff] %v3059_v48  ;;  %5116 = vst [vmem:[#allocation74_spill] sm:$0xff] %v3062_v24  ;;  %v3071_v49 = vmul.f32 %v2639_v60, %v434_v46  ;;  %v3074_v52 = vmul.f32 %v2641_v61, %v434_v46  ;;  %v3077_v10 = vmul.f32 %v2643_v62, %v434_v46 }
  0xc4   : > { %5117 = vst [vmem:[#allocation75_spill] sm:$0xff] %v3065_v11  ;;  %5118 = vst [vmem:[#allocation76_spill] sm:$0xff] %v3068_v25  ;;  %v3083_v24 = vmul.f32 %v2639_v60, %v429_v45  ;;  %v3086_v40 = vmul.f32 %v2641_v61, %v429_v45  ;;  %v3089_v25 = vmul.f32 %v2643_v62, %v429_v45 }
  0xc5   : > { %5119 = vst [vmem:[#allocation77_spill] sm:$0xff] %v3071_v49  ;;  %5120 = vst [vmem:[#allocation78_spill] sm:$0xff] %v3074_v52  ;;  %v3092_v49 = vmul.f32 %v2651_v2, %v429_v45 }
  0xc6   : > { %v444_v56 = vpop.permute.xlu1 %443  ;;  %v439_v55 = vpop.permute.xlu0 %438  ;;  %5121 = vst [vmem:[#allocation79_spill] sm:$0xff] %v3077_v10  ;;  %5122 = vst [vmem:[#allocation80_spill] sm:$0xff] %v3080_v4 }
  0xc7   : > { %5123 = vst [vmem:[#allocation81_spill] sm:$0xff] %v3083_v24  ;;  %5124 = vst [vmem:[#allocation82_spill] sm:$0xff] %v3086_v40  ;;  %v3095_v52 = vmul.f32 %v2639_v60, %v444_v56  ;;  %v3098_v10 = vmul.f32 %v2641_v61, %v444_v56  ;;  %v3101_v41 = vmul.f32 %v2643_v62, %v444_v56 }
  0xc8   : > { %5125 = vst [vmem:[#allocation83_spill] sm:$0xff] %v3089_v25  ;;  %5126 = vst [vmem:[#allocation84_spill] sm:$0xff] %v3092_v49  ;;  %v3104_v24 = vmul.f32 %v2651_v2, %v434_v46  ;;  %v3107_v40 = vmul.f32 %v2639_v60, %v439_v55  ;;  %v3110_v25 = vmul.f32 %v2641_v61, %v439_v55 }
  0xc9   : > { %5127 = vst [vmem:[#allocation85_spill] sm:$0xff] %v3095_v52  ;;  %5128 = vst [vmem:[#allocation86_spill] sm:$0xff] %v3098_v10  ;;  %v3113_v45 = vmul.f32 %v2643_v62, %v439_v55  ;;  %v3116_v52 = vmul.f32 %v2651_v2, %v439_v55 }
  0xca   : > { %v454_v53 = vpop.permute.xlu1 %453  ;;  %v449_v48 = vpop.permute.xlu0 %448  ;;  %5129 = vst [vmem:[#allocation87_spill] sm:$0xff] %v3101_v41  ;;  %5130 = vst [vmem:[#allocation88_spill] sm:$0xff] %v3104_v24 }
  0xcb   : > { %5131 = vst [vmem:[#allocation89_spill] sm:$0xff] %v3107_v40  ;;  %5132 = vst [vmem:[#allocation90_spill] sm:$0xff] %v3110_v25  ;;  %v3119_v10 = vmul.f32 %v2639_v60, %v454_v53  ;;  %v3122_v41 = vmul.f32 %v2641_v61, %v454_v53  ;;  %v3125_v46 = vmul.f32 %v2643_v62, %v454_v53 }
  0xcc   : > { %5133 = vst [vmem:[#allocation91_spill] sm:$0xff] %v3113_v45  ;;  %5134 = vst [vmem:[#allocation92_spill] sm:$0xff] %v3116_v52  ;;  %v3128_v40 = vmul.f32 %v2651_v2, %v444_v56  ;;  %v3131_v25 = vmul.f32 %v2639_v60, %v449_v48  ;;  %v3134_v45 = vmul.f32 %v2641_v61, %v449_v48 }
  0xcd   : > { %5135 = vst [vmem:[#allocation93_spill] sm:$0xff] %v3119_v10  ;;  %5136 = vst [vmem:[#allocation94_spill] sm:$0xff] %v3122_v41  ;;  %v3137_v55 = vmul.f32 %v2643_v62, %v449_v48  ;;  %v3140_v24 = vmul.f32 %v2651_v2, %v449_v48 }
  0xce   : > { %5137 = vst [vmem:[#allocation95_spill] sm:$0xff] %v3125_v46  ;;  %5138 = vst [vmem:[#allocation96_spill] sm:$0xff] %v3128_v40 }
  0xcf   : > { %5139 = vst [vmem:[#allocation97_spill] sm:$0xff] %v3131_v25  ;;  %5140 = vst [vmem:[#allocation98_spill] sm:$0xff] %v3134_v45  ;;  %v606_v52 = vpop.permute.xlu1 %605  ;;  %v602_v10 = vpop.permute.xlu0 %601 }
  0xd0   : > { %5141 = vst [vmem:[#allocation99_spill] sm:$0xff] %v3137_v55  ;;  %5142 = vst [vmem:[#allocation100_spill] sm:$0xff] %v3140_v24  ;;  %v748_v41 = vmul.f32 %v2645_v63, %v606_v52  ;;  %v749_v46 = vmul.f32 %v2647_v0, %v606_v52  ;;  %v750_v56 = vmul.f32 %v2649_v1, %v606_v52 }
  0xd1   : > { %v744_v60 = vmul.f32 %v2645_v63, %v602_v10  ;;  %v745_v25 = vmul.f32 %v2647_v0, %v602_v10  ;;  %v746_v61 = vmul.f32 %v2649_v1, %v602_v10  ;;  %v751_v62 = vmul.f32 %v2657_v5, %v606_v52 }
  0xd2   : > { %v747_v55 = vmul.f32 %v2657_v5, %v602_v10  ;;  %v3151_v45 = vmin.f32 %v2713_v27, %v748_v41  ;;  %v3154_v48 = vmin.f32 %v2716_v28, %v749_v46  ;;  %v3157_v24 = vmin.f32 %v2719_v29, %v750_v56 }
  0xd3   : > { %v3160_v40 = vmin.f32 %v2685_v17, %v744_v60  ;;  %v610_v49 = vpop.permute.xlu1 %609  ;;  %v614_v4 = vpop.permute.xlu0 %613  ;;  %v3163_v11 = vmin.f32 %v2722_v30, %v751_v62  ;;  %v3166_v52 = vmin.f32 %v2688_v18, %v745_v25  ;;  %v3169_v27 = vmin.f32 %v2691_v19, %v746_v61 }
  0xd4   : > { %5143 = vst [vmem:[#allocation101_spill] sm:$0xff] %v3151_v45  ;;  %5144 = vst [vmem:[#allocation102_spill] sm:$0xff] %v3154_v48  ;;  %v3172_v28 = vmul.f32 %v2651_v2, %v454_v53  ;;  %v752_v29 = vmul.f32 %v2645_v63, %v610_v49  ;;  %v753_v10 = vmul.f32 %v2647_v0, %v610_v49 }
  0xd5   : > { %5145 = vst [vmem:[#allocation103_spill] sm:$0xff] %v3157_v24  ;;  %5146 = vst [vmem:[#allocation104_spill] sm:$0xff] %v3160_v40  ;;  %v754_v17 = vmul.f32 %v2649_v1, %v610_v49  ;;  %v3178_v41 = vmin.f32 %v2694_v20, %v747_v55  ;;  %v756_v30 = vmul.f32 %v2645_v63, %v614_v4 }
  0xd6   : > { %5147 = vst [vmem:[#allocation105_spill] sm:$0xff] %v3163_v11  ;;  %5148 = vst [vmem:[#allocation106_spill] sm:$0xff] %v3166_v52  ;;  %v757_v18 = vmul.f32 %v2647_v0, %v614_v4  ;;  %v1020_v19 = vmul.f32 %v2659_v6, %v3151_v45  ;;  %v1021_v2 = vmul.f32 %v2661_v7, %v3154_v48 }
  0xd7   : > { %5149 = vst [vmem:[#allocation107_spill] sm:$0xff] %v3169_v27  ;;  %5150 = vst [vmem:[#allocation108_spill] sm:$0xff] %v3172_v28  ;;  %v758_v25 = vmul.f32 %v2649_v1, %v614_v4  ;;  %v1022_v53 = vmul.f32 %v2663_v8, %v3157_v24  ;;  %v1016_v46 = vmul.f32 %v2659_v6, %v3160_v40  ;;  %v618_v55 = vpop.permute.xlu1 %617  ;;  %v3193_v56 = vpop.permute.xlu0 %621 }
  0xd8   : > { %5151 = vst [vmem:[#allocation109_spill] sm:$0xff] %v3178_v41  ;;  %v1017_v20 = vmul.f32 %v2661_v7, %v3166_v52  ;;  %v1023_v60 = vmul.f32 %v2665_v9, %v3163_v11  ;;  %v1149_v61 = vadd.f32 %v1021_v2, %v1020_v19  ;;  %v1018_v62 = vmul.f32 %v2663_v8, %v3169_v27 }
  0xd9   : > { %v755_v48 = vmul.f32 %v2657_v5, %v610_v49  ;;  %v760_v24 = vmul.f32 %v2645_v63, %v618_v55  ;;  %v761_v45 = vmul.f32 %v2647_v0, %v618_v55  ;;  %v762_v40 = vmul.f32 %v2649_v1, %v618_v55 }
  0xda   : > { %v1019_v52 = vmul.f32 %v2665_v9, %v3178_v41  ;;  %v3207_v28 = vmul.f32 %v2645_v63, %v3193_v56  ;;  %v3211_v19 = vmul.f32 %v2647_v0, %v3193_v56  ;;  %v1150_v2 = vadd.f32 %v1149_v61, %v1022_v53 }
  0xdb   : > { %v1144_v11 = vadd.f32 %v1017_v20, %v1016_v46  ;;  %v3214_v49 = vmin.f32 %v2674_v13, %v752_v29  ;;  %v3217_v27 = vmin.f32 %v2677_v14, %v753_v10  ;;  %v3220_v3 = vmin.f32 %v2680_v15, %v754_v17  ;;  %v3225_v42 = vpop.permute.xlu1 %625  ;;  %v3227_v43 = vpop.permute.xlu0 %629 }
  0xdc   : > { %v3223_v41 = vmin.f32 %v2710_v26, %v755_v48  ;;  %v1151_v38 = vadd.f32 %v1150_v2, %v1023_v60  ;;  %v759_v53 = vmul.f32 %v2657_v5, %v614_v4  ;;  %v3231_v13 = vmin.f32 %v2697_v21, %v756_v30 }
  0xdd   : > { %5152 = vst [vmem:[#allocation110_spill] sm:$0xff] %v3214_v49  ;;  %5153 = vst [vmem:[#allocation111_spill] sm:$0xff] %v3217_v27  ;;  %v1145_v12 = vadd.f32 %v1144_v11, %v1018_v62  ;;  %v766_v14 = vmul.f32 %v2649_v1, %v3193_v56  ;;  %v3237_v15 = vmul.f32 %v2645_v63, %v3225_v42 }
  0xde   : > { %5154 = vst [vmem:[#allocation112_spill] sm:$0xff] %v3220_v3  ;;  %5155 = vst [vmem:[#allocation113_spill] sm:$0xff] %v3223_v41  ;;  %v3241_v26 = vmul.f32 %v2647_v0, %v3225_v42  ;;  %v3245_v48 = vmul.f32 %v2649_v1, %v3225_v42  ;;  %v3249_v4 = vmul.f32 %v2645_v63, %v3227_v43  ;;  %1152 = vadd.xlane.f32.xlu0 %v1151_v38 }
  0xdf   : > { %5156 = vst [vmem:[#allocation114_spill] sm:$0xff] %v3231_v13  ;;  %v3253_v21 = vmul.f32 %v2647_v0, %v3227_v43  ;;  %v1146_v11 = vadd.f32 %v1145_v12, %v1019_v52  ;;  %v1024_v29 = vmul.f32 %v2659_v6, %v3214_v49  ;;  %v3259_v10 = vmul.f32 %v2649_v1, %v3227_v43  ;;  %v3268_v20 = vpop.permute.xlu1 %633  ;;  %v3270_v12 = vpop.permute.xlu0 %637 }
  0xe0   : > { %v1025_v17 = vmul.f32 %v2661_v7, %v3217_v27  ;;  %v1026_v30 = vmul.f32 %v2663_v8, %v3220_v3  ;;  %v3266_v46 = vmin.f32 %v2700_v22, %v757_v18  ;;  %v1027_v38 = vmul.f32 %v2665_v9, %v3223_v41 }
  0xe1   : > { %1147 = vadd.xlane.f32.xlu1 %v1146_v11  ;;  %v3275_v52 = vmin.f32 %v2703_v23, %v758_v25  ;;  %v3278_v60 = vmin.f32 %v2737_v34, %v759_v53  ;;  %v1028_v61 = vmul.f32 %v2659_v6, %v3231_v13  ;;  %v3284_v22 = vmul.f32 %v2645_v63, %v3268_v20 }
  0xe2   : > { %5157 = vst [vmem:[#allocation115_spill] sm:$0xff] %v3266_v46  ;;  %v3288_v18 = vmul.f32 %v2647_v0, %v3268_v20  ;;  %v3292_v62 = vmul.f32 %v2649_v1, %v3268_v20  ;;  %v763_v23 = vmul.f32 %v2657_v5, %v618_v55  ;;  %v3297_v34 = vmul.f32 %v2645_v63, %v3270_v12 }
  0xe3   : > { %5158 = vst [vmem:[#allocation116_spill] sm:$0xff] %v3275_v52  ;;  %5159 = vst [vmem:[#allocation117_spill] sm:$0xff] %v3278_v60  ;;  %v3301_v25 = vmul.f32 %v2647_v0, %v3270_v12  ;;  %v1154_v2 = vadd.f32 %v1025_v17, %v1024_v29  ;;  %v1029_v53 = vmul.f32 %v2661_v7, %v3266_v46  ;;  %v3319_v27 = vpop.permute.xlu1 %641  ;;  %v3321_v46 = vpop.permute.xlu0 %645 }
  0xe4   : > { %v3307_v11 = vmul.f32 %v2649_v1, %v3270_v12  ;;  %v1030_v41 = vmul.f32 %v2663_v8, %v3275_v52  ;;  %v3312_v55 = vmin.f32 %v2741_v35, %v760_v24  ;;  %v3315_v13 = vmin.f32 %v2745_v37, %v761_v45 }
  0xe5   : > { %v1155_v3 = vadd.f32 %v1154_v2, %v1026_v30  ;;  %v1031_v29 = vmul.f32 %v2665_v9, %v3278_v60  ;;  %v1159_v17 = vadd.f32 %v1029_v53, %v1028_v61  ;;  %v3324_v49 = vmin.f32 %v2749_v44, %v762_v40 }
  0xe6   : > { %v3328_v52 = vmul.f32 %v2645_v63, %v3319_v27  ;;  %v3332_v35 = vmul.f32 %v2647_v0, %v3319_v27  ;;  %v3336_v37 = vmul.f32 %v2649_v1, %v3319_v27  ;;  %v3339_v24 = vmin.f32 %v2753_v47, %v763_v23 }
  0xe7   : > { %5160 = vst [vmem:[#allocation118_spill] sm:$0xff] %v3324_v49  ;;  %v1156_v45 = vadd.f32 %v1155_v3, %v1027_v38  ;;  %v1160_v30 = vadd.f32 %v1159_v17, %v1030_v41  ;;  %v3343_v44 = vmul.f32 %v2645_v63, %v3321_v46  ;;  %v3347_v40 = vmul.f32 %v2647_v0, %v3321_v46  ;;  %v3369_v17 = vpop.permute.xlu1 %649  ;;  %v3371_v60 = vpop.permute.xlu0 %653 }
  0xe8   : > { %v3351_v61 = vmul.f32 %v2649_v1, %v3321_v46  ;;  %v1032_v2 = vmul.f32 %v2659_v6, %v3312_v55  ;;  %v1033_v47 = vmul.f32 %v2661_v7, %v3315_v13  ;;  %v1034_v3 = vmul.f32 %v2663_v8, %v3324_v49 }
  0xe9   : > { %1157 = vadd.xlane.f32.xlu0 %v1156_v45  ;;  %v1161_v41 = vadd.f32 %v1160_v30, %v1031_v29  ;;  %v767_v38 = vmul.f32 %v2657_v5, %v3193_v56  ;;  %v3363_v23 = vmin.f32 %v2726_v31, %v3207_v28  ;;  %v3367_v53 = vmin.f32 %v2730_v32, %v3211_v19 }
  0xea   : > { %v1035_v49 = vmul.f32 %v2665_v9, %v3339_v24  ;;  %v1164_v45 = vadd.f32 %v1033_v47, %v1032_v2  ;;  %v3376_v29 = vmin.f32 %v2734_v33, %v766_v14  ;;  %v3380_v56 = vmul.f32 %v2645_v63, %v3369_v17 }
  0xeb   : > { %1162 = vadd.xlane.f32.xlu1 %v1161_v41  ;;  %v3383_v31 = vmin.f32 %v2773_v39, %v767_v38  ;;  %v1036_v32 = vmul.f32 %v2659_v6, %v3363_v23  ;;  %v1037_v28 = vmul.f32 %v2661_v7, %v3367_v53  ;;  %v3391_v19 = vmul.f32 %v2647_v0, %v3369_v17 }
  0xec   : > { %5161 = vst [vmem:[#allocation119_spill] sm:$0xff] %v3376_v29  ;;  %v1165_v33 = vadd.f32 %v1164_v45, %v1034_v3  ;;  %v1038_v14 = vmul.f32 %v2663_v8, %v3376_v29  ;;  %v3397_v30 = vmul.f32 %v2649_v1, %v3369_v17  ;;  %v3401_v39 = vmul.f32 %v2645_v63, %v3371_v60 }
  0xed   : > { %5162 = vst [vmem:[#allocation120_spill] sm:$0xff] %v3383_v31  ;;  %v1039_v2 = vmul.f32 %v2665_v9, %v3383_v31  ;;  %v1169_v47 = vadd.f32 %v1037_v28, %v1036_v32  ;;  %v3407_v41 = vmul.f32 %v2647_v0, %v3371_v60  ;;  %v771_v3 = vmul.f32 %v2657_v5, %v3225_v42 }
  0xee   : > { %v1166_v38 = vadd.f32 %v1165_v33, %v1035_v49  ;;  %v3413_v45 = vmin.f32 %v2777_v54, %v3237_v15  ;;  %v3417_v29 = vmin.f32 %v2781_v57, %v3241_v26  ;;  %v3421_v31 = vmin.f32 %v2785_v58, %v3245_v48  ;;  %v5167_v48 = vld [vmem:[#allocation9_spill] sm:$0xff]  ;;  %v3455_v33 = vpop.permute.xlu0 %661 }
  0xef   : > { %v1170_v32 = vadd.f32 %v1169_v47, %v1038_v14  ;;  %v3424_v28 = vmin.f32 %v2789_v59, %v771_v3  ;;  %v775_v42 = vmul.f32 %v2657_v5, %v3227_v43  ;;  %v3430_v49 = vmin.f32 %v2757_v36, %v3249_v4  ;;  %v3444_v43 = vpop.permute.xlu1 %657 }
  0xf0   : > { %1167 = vadd.xlane.f32.xlu0 %v1166_v38  ;;  %v3434_v54 = vmul.f32 %v2649_v1, %v3371_v60  ;;  %v1040_v57 = vmul.f32 %v2659_v6, %v3413_v45  ;;  %v1041_v58 = vmul.f32 %v2661_v7, %v3417_v29  ;;  %v3442_v59 = vmin.f32 %v2761_v50, %v3253_v21 }
  0xf1   : > { %5163 = vst [vmem:[#allocation121_spill] sm:$0xff] %v3424_v28  ;;  %5164 = vst [vmem:[#allocation122_spill] sm:$0xff] %v3430_v49  ;;  %v1171_v15 = vadd.f32 %v1170_v32, %v1039_v2  ;;  %v1042_v36 = vmul.f32 %v2663_v8, %v3421_v31  ;;  %v3450_v26 = vmin.f32 %v2765_v51, %v3259_v10 }
  0xf2   : > { %5165 = vst [vmem:[#allocation123_spill] sm:$0xff] %v3442_v59  ;;  %v3453_v4 = vmin.f32 %v5167_v48, %v775_v42  ;;  %v1043_v14 = vmul.f32 %v2665_v9, %v3424_v28  ;;  %v1174_v50 = vadd.f32 %v1041_v58, %v1040_v57  ;;  %v1044_v21 = vmul.f32 %v2659_v6, %v3430_v49  ;;  %v5169_v48 = vld [vmem:[#allocation10_spill] sm:$0xff] }
  0xf3   : > { %5166 = vst [vmem:[#allocation124_spill] sm:$0xff] %v3450_v26  ;;  %v1045_v2 = vmul.f32 %v2661_v7, %v3442_v59  ;;  %1172 = vadd.xlane.f32.xlu1 %v1171_v15  ;;  %v1046_v51 = vmul.f32 %v2663_v8, %v3450_v26  ;;  %v3469_v47 = vmul.f32 %v2645_v63, %v3444_v43  ;;  %v5173_v26 = vld [vmem:[#allocation12_spill] sm:$0xff] }
  0xf4   : > { %5168 = vst [vmem:[#allocation9_spill] sm:$0xff] %v3453_v4  ;;  %v1047_v10 = vmul.f32 %v2665_v9, %v3453_v4  ;;  %v3473_v3 = vmul.f32 %v2647_v0, %v3444_v43  ;;  %v1175_v38 = vadd.f32 %v1174_v50, %v1042_v36  ;;  %v3477_v42 = vmul.f32 %v2649_v1, %v3444_v43  ;;  %v5171_v36 = vld [vmem:[#allocation11_spill] sm:$0xff] }
  0xf5   : > { %v1179_v32 = vadd.f32 %v1045_v2, %v1044_v21  ;;  %v3481_v57 = vmul.f32 %v2645_v63, %v3455_v33  ;;  %v3485_v58 = vmul.f32 %v2647_v0, %v3455_v33  ;;  %v779_v15 = vmul.f32 %v2657_v5, %v3268_v20 }
  0xf6   : > { %v3491_v4 = vmin.f32 %v5169_v48, %v3284_v22  ;;  %v3495_v50 = vmin.f32 %v5171_v36, %v3288_v18  ;;  %v1176_v21 = vadd.f32 %v1175_v38, %v1043_v14  ;;  %v3499_v59 = vmin.f32 %v5173_v26, %v3292_v62  ;;  %v5176_v18 = vld [vmem:[#allocation6_spill] sm:$0xff]  ;;  %v5180_v38 = vld [vmem:[#allocation8_spill] sm:$0xff] }
  0xf7   : > { %v1180_v2 = vadd.f32 %v1179_v32, %v1046_v51  ;;  %v783_v28 = vmul.f32 %v2657_v5, %v3270_v12  ;;  %v3504_v49 = vmin.f32 %v2821_v16, %v779_v15  ;;  %v3512_v14 = vmin.f32 %v5176_v18, %v3297_v34  ;;  %v3514_v51 = vpop.permute.xlu1 %665  ;;  %v5178_v16 = vld [vmem:[#allocation7_spill] sm:$0xff]  ;;  %v5182_v48 = vld [vmem:[#allocation16_spill] sm:$0xff] }
  0xf8   : > { %5170 = vst [vmem:[#allocation10_spill] sm:$0xff] %v3491_v4  ;;  %5172 = vst [vmem:[#allocation11_spill] sm:$0xff] %v3495_v50  ;;  %v1048_v20 = vmul.f32 %v2659_v6, %v3491_v4  ;;  %v1049_v22 = vmul.f32 %v2661_v7, %v3495_v50  ;;  %1177 = vadd.xlane.f32.xlu0 %v1176_v21  ;;  %v3518_v12 = vmul.f32 %v2649_v1, %v3455_v33  ;;  %v3535_v21 = vpop.permute.xlu0 %669 }
  0xf9   : > { %5174 = vst [vmem:[#allocation12_spill] sm:$0xff] %v3499_v59  ;;  %5175 = vst [vmem:[#allocation125_spill] sm:$0xff] %v3504_v49  ;;  %v1181_v62 = vadd.f32 %v1180_v2, %v1047_v10  ;;  %v3522_v26 = vmin.f32 %v5178_v16, %v3301_v25  ;;  %v3526_v32 = vmin.f32 %v5180_v38, %v3307_v11 }
  0xfa   : > { %5177 = vst [vmem:[#allocation6_spill] sm:$0xff] %v3512_v14  ;;  %v1050_v34 = vmul.f32 %v2663_v8, %v3499_v59  ;;  %v1184_v15 = vadd.f32 %v1049_v22, %v1048_v20  ;;  %v3531_v36 = vmin.f32 %v5182_v48, %v783_v28  ;;  %v1052_v10 = vmul.f32 %v2659_v6, %v3512_v14  ;;  %v5190_v59 = vld [vmem:[#allocation20_spill] sm:$0xff] }
  0xfb   : > { %5179 = vst [vmem:[#allocation7_spill] sm:$0xff] %v3522_v26  ;;  %5181 = vst [vmem:[#allocation8_spill] sm:$0xff] %v3526_v32  ;;  %1182 = vadd.xlane.f32.xlu1 %v1181_v62  ;;  %v1051_v25 = vmul.f32 %v2665_v9, %v3504_v49  ;;  %v1053_v11 = vmul.f32 %v2661_v7, %v3522_v26  ;;  %v1054_v2 = vmul.f32 %v2663_v8, %v3526_v32  ;;  %v5186_v49 = vld [vmem:[#allocation18_spill] sm:$0xff] }
  0xfc   : > { %5183 = vst [vmem:[#allocation16_spill] sm:$0xff] %v3531_v36  ;;  %v3545_v20 = vmul.f32 %v2645_v63, %v3514_v51  ;;  %v1185_v28 = vadd.f32 %v1184_v15, %v1050_v34  ;;  %v1055_v22 = vmul.f32 %v2665_v9, %v3531_v36  ;;  %v3551_v18 = vmul.f32 %v2647_v0, %v3514_v51  ;;  %v5184_v36 = vld [vmem:[#allocation17_spill] sm:$0xff] }
  0xfd   : > { %v3555_v62 = vmul.f32 %v2649_v1, %v3514_v51  ;;  %v1189_v16 = vadd.f32 %v1053_v11, %v1052_v10  ;;  %v3559_v38 = vmul.f32 %v2645_v63, %v3535_v21  ;;  %v3563_v48 = vmul.f32 %v2647_v0, %v3535_v21  ;;  %v5188_v10 = vld [vmem:[#allocation19_spill] sm:$0xff] }
  0xfe   : > { %v787_v34 = vmul.f32 %v2657_v5, %v3319_v27  ;;  %v1186_v15 = vadd.f32 %v1185_v28, %v1051_v25  ;;  %v3569_v32 = vmin.f32 %v5184_v36, %v3328_v52  ;;  %v3573_v26 = vmin.f32 %v5186_v49, %v3332_v35  ;;  %v5192_v25 = vld [vmem:[#allocation13_spill] sm:$0xff]  ;;  %v5194_v49 = vld [vmem:[#allocation14_spill] sm:$0xff] }
  0xff   : > { %v3577_v11 = vmin.f32 %v5188_v10, %v3336_v37  ;;  %v1190_v14 = vadd.f32 %v1189_v16, %v1054_v2  ;;  %v791_v27 = vmul.f32 %v2657_v5, %v3321_v46  ;;  %v3586_v28 = vmin.f32 %v5192_v25, %v3343_v44  ;;  %v3600_v46 = vpop.permute.xlu1 %673  ;;  %v5196_v2 = vld [vmem:[#allocation15_spill] sm:$0xff]  ;;  %v3611_v10 = vpop.permute.xlu0 %677 }
 0x100   : > { %5185 = vst [vmem:[#allocation17_spill] sm:$0xff] %v3569_v32  ;;  %5187 = vst [vmem:[#allocation18_spill] sm:$0xff] %v3573_v26  ;;  %v3580_v50 = vmin.f32 %v5190_v59, %v787_v34  ;;  %1187 = vadd.xlane.f32.xlu0 %v1186_v15  ;;  %v3590_v52 = vmul.f32 %v2649_v1, %v3535_v21  ;;  %v1056_v35 = vmul.f32 %v2659_v6, %v3569_v32  ;;  %v5198_v34 = vld [vmem:[#allocation24_spill] sm:$0xff] }
 0x101   : > { %5189 = vst [vmem:[#allocation19_spill] sm:$0xff] %v3577_v11  ;;  %5193 = vst [vmem:[#allocation13_spill] sm:$0xff] %v3586_v28  ;;  %v1057_v37 = vmul.f32 %v2661_v7, %v3573_v26  ;;  %v3598_v59 = vmin.f32 %v5194_v49, %v3347_v40  ;;  %v1191_v36 = vadd.f32 %v1190_v14, %v1055_v22  ;;  %v5206_v32 = vld [vmem:[#allocation28_spill] sm:$0xff] }
 0x102   : > { %5191 = vst [vmem:[#allocation20_spill] sm:$0xff] %v3580_v50  ;;  %v1058_v44 = vmul.f32 %v2663_v8, %v3577_v11  ;;  %v3606_v16 = vmin.f32 %v5196_v2, %v3351_v61  ;;  %v3609_v15 = vmin.f32 %v5198_v34, %v791_v27  ;;  %v1059_v25 = vmul.f32 %v2665_v9, %v3580_v50 }
 0x103   : > { %5195 = vst [vmem:[#allocation14_spill] sm:$0xff] %v3598_v59  ;;  %v1194_v40 = vadd.f32 %v1057_v37, %v1056_v35  ;;  %v1060_v49 = vmul.f32 %v2659_v6, %v3586_v28  ;;  %v1061_v14 = vmul.f32 %v2661_v7, %v3598_v59  ;;  %1192 = vadd.xlane.f32.xlu1 %v1191_v36  ;;  %v5200_v59 = vld [vmem:[#allocation25_spill] sm:$0xff]  ;;  %v5204_v28 = vld [vmem:[#allocation27_spill] sm:$0xff] }
 0x104   : > { %5197 = vst [vmem:[#allocation15_spill] sm:$0xff] %v3606_v16  ;;  %5199 = vst [vmem:[#allocation24_spill] sm:$0xff] %v3609_v15  ;;  %v1062_v61 = vmul.f32 %v2663_v8, %v3606_v16  ;;  %v1063_v22 = vmul.f32 %v2665_v9, %v3609_v15  ;;  %v3625_v27 = vmul.f32 %v2645_v63, %v3600_v46 }
 0x105   : > { %v3629_v35 = vmul.f32 %v2647_v0, %v3600_v46  ;;  %v1195_v37 = vadd.f32 %v1194_v40, %v1058_v44  ;;  %v1199_v2 = vadd.f32 %v1061_v14, %v1060_v49  ;;  %v3633_v34 = vmul.f32 %v2649_v1, %v3600_v46  ;;  %v5202_v44 = vld [vmem:[#allocation26_spill] sm:$0xff] }
 0x106   : > { %v3637_v36 = vmul.f32 %v2645_v63, %v3611_v10  ;;  %v3641_v15 = vmul.f32 %v2647_v0, %v3611_v10  ;;  %v795_v16 = vmul.f32 %v2657_v5, %v3369_v17  ;;  %v3647_v50 = vmin.f32 %v5200_v59, %v3380_v56 }
 0x107   : > { %v3651_v40 = vmin.f32 %v5202_v44, %v3391_v19  ;;  %v1196_v49 = vadd.f32 %v1195_v37, %v1059_v25  ;;  %v1200_v14 = vadd.f32 %v1199_v2, %v1062_v61  ;;  %v3655_v11 = vmin.f32 %v5204_v28, %v3397_v30  ;;  %v5208_v19 = vld [vmem:[#allocation21_spill] sm:$0xff]  ;;  %v3670_v25 = vpop.permute.xlu1 %681  ;;  %v5214_v2 = vld [vmem:[#allocation32_spill] sm:$0xff] }
 0x108   : > { %5201 = vst [vmem:[#allocation25_spill] sm:$0xff] %v3647_v50  ;;  %v799_v26 = vmul.f32 %v2657_v5, %v3371_v60  ;;  %v3660_v4 = vmin.f32 %v5206_v32, %v795_v16  ;;  %v1064_v17 = vmul.f32 %v2659_v6, %v3647_v50  ;;  %v3668_v59 = vmin.f32 %v5208_v19, %v3401_v39  ;;  %v5210_v32 = vld [vmem:[#allocation22_spill] sm:$0xff]  ;;  %v5212_v16 = vld [vmem:[#allocation23_spill] sm:$0xff] }
 0x109   : > { %5203 = vst [vmem:[#allocation26_spill] sm:$0xff] %v3651_v40  ;;  %5205 = vst [vmem:[#allocation27_spill] sm:$0xff] %v3655_v11  ;;  %v1065_v56 = vmul.f32 %v2661_v7, %v3651_v40  ;;  %1197 = vadd.xlane.f32.xlu0 %v1196_v49  ;;  %v1201_v30 = vadd.f32 %v1200_v14, %v1063_v22  ;;  %v3674_v60 = vmul.f32 %v2649_v1, %v3611_v10  ;;  %v3691_v49 = vpop.permute.xlu0 %685 }
 0x10a   : > { %5207 = vst [vmem:[#allocation28_spill] sm:$0xff] %v3660_v4  ;;  %5209 = vst [vmem:[#allocation21_spill] sm:$0xff] %v3668_v59  ;;  %v3678_v28 = vmin.f32 %v5210_v32, %v3407_v41  ;;  %v3682_v61 = vmin.f32 %v5212_v16, %v3434_v54  ;;  %v1066_v39 = vmul.f32 %v2663_v8, %v3655_v11  ;;  %v5222_v11 = vld [vmem:[#allocation36_spill] sm:$0xff] }
 0x10b   : > { %v1204_v37 = vadd.f32 %v1065_v56, %v1064_v17  ;;  %v3687_v44 = vmin.f32 %v5214_v2, %v799_v26  ;;  %v1068_v22 = vmul.f32 %v2659_v6, %v3668_v59  ;;  %1202 = vadd.xlane.f32.xlu1 %v1201_v30  ;;  %v1067_v41 = vmul.f32 %v2665_v9, %v3660_v4  ;;  %v5218_v4 = vld [vmem:[#allocation34_spill] sm:$0xff] }
 0x10c   : > { %5211 = vst [vmem:[#allocation22_spill] sm:$0xff] %v3678_v28  ;;  %5213 = vst [vmem:[#allocation23_spill] sm:$0xff] %v3682_v61  ;;  %v1069_v54 = vmul.f32 %v2661_v7, %v3678_v28  ;;  %v1070_v14 = vmul.f32 %v2663_v8, %v3682_v61  ;;  %v3701_v17 = vmul.f32 %v2645_v63, %v3670_v25 }
 0x10d   : > { %5215 = vst [vmem:[#allocation32_spill] sm:$0xff] %v3687_v44  ;;  %v1205_v26 = vadd.f32 %v1204_v37, %v1066_v39  ;;  %v1071_v56 = vmul.f32 %v2665_v9, %v3687_v44  ;;  %v3707_v19 = vmul.f32 %v2647_v0, %v3670_v25  ;;  %v3711_v30 = vmul.f32 %v2649_v1, %v3670_v25  ;;  %v5216_v44 = vld [vmem:[#allocation33_spill] sm:$0xff] }
 0x10e   : > { %v1209_v32 = vadd.f32 %v1069_v54, %v1068_v22  ;;  %v3715_v16 = vmul.f32 %v2645_v63, %v3691_v49  ;;  %v3719_v2 = vmul.f32 %v2647_v0, %v3691_v49  ;;  %v803_v39 = vmul.f32 %v2657_v5, %v3444_v43  ;;  %v5220_v22 = vld [vmem:[#allocation35_spill] sm:$0xff] }
 0x10f   : > { %v1206_v37 = vadd.f32 %v1205_v26, %v1067_v41  ;;  %v3725_v61 = vmin.f32 %v5216_v44, %v3469_v47  ;;  %v3729_v28 = vmin.f32 %v5218_v4, %v3473_v3  ;;  %v3733_v54 = vmin.f32 %v5220_v22, %v3477_v42  ;;  %v5224_v41 = vld [vmem:[#allocation29_spill] sm:$0xff]  ;;  %v5226_v42 = vld [vmem:[#allocation30_spill] sm:$0xff]  ;;  %v3767_v22 = vpop.permute.xlu0 %693 }
 0x110   : > { %v1210_v59 = vadd.f32 %v1209_v32, %v1070_v14  ;;  %v3736_v40 = vmin.f32 %v5222_v11, %v803_v39  ;;  %v807_v43 = vmul.f32 %v2657_v5, %v3455_v33  ;;  %v3742_v26 = vmin.f32 %v5224_v41, %v3481_v57  ;;  %v3756_v33 = vpop.permute.xlu1 %689  ;;  %v5228_v14 = vld [vmem:[#allocation31_spill] sm:$0xff]  ;;  %v5230_v39 = vld [vmem:[#allocation40_spill] sm:$0xff] }
 0x111   : > { %5217 = vst [vmem:[#allocation33_spill] sm:$0xff] %v3725_v61  ;;  %5219 = vst [vmem:[#allocation34_spill] sm:$0xff] %v3729_v28  ;;  %1207 = vadd.xlane.f32.xlu0 %v1206_v37  ;;  %v3746_v4 = vmul.f32 %v2649_v1, %v3691_v49  ;;  %v1072_v47 = vmul.f32 %v2659_v6, %v3725_v61  ;;  %v1073_v3 = vmul.f32 %v2661_v7, %v3729_v28  ;;  %v5238_v61 = vld [vmem:[#allocation44_spill] sm:$0xff] }
 0x112   : > { %5221 = vst [vmem:[#allocation35_spill] sm:$0xff] %v3733_v54  ;;  %5223 = vst [vmem:[#allocation36_spill] sm:$0xff] %v3736_v40  ;;  %v3754_v11 = vmin.f32 %v5226_v42, %v3485_v58  ;;  %v1211_v44 = vadd.f32 %v1210_v59, %v1071_v56  ;;  %v1074_v57 = vmul.f32 %v2663_v8, %v3733_v54 }
 0x113   : > { %5225 = vst [vmem:[#allocation29_spill] sm:$0xff] %v3742_v26  ;;  %v3762_v32 = vmin.f32 %v5228_v14, %v3518_v12  ;;  %v3765_v37 = vmin.f32 %v5230_v39, %v807_v43  ;;  %v1075_v41 = vmul.f32 %v2665_v9, %v3736_v40  ;;  %v1214_v58 = vadd.f32 %v1073_v3, %v1072_v47 }
 0x114   : > { %5227 = vst [vmem:[#allocation30_spill] sm:$0xff] %v3754_v11  ;;  %v1076_v42 = vmul.f32 %v2659_v6, %v3742_v26  ;;  %v1077_v59 = vmul.f32 %v2661_v7, %v3754_v11  ;;  %1212 = vadd.xlane.f32.xlu1 %v1211_v44  ;;  %v3781_v43 = vmul.f32 %v2645_v63, %v3756_v33  ;;  %v5232_v11 = vld [vmem:[#allocation41_spill] sm:$0xff]  ;;  %v5236_v26 = vld [vmem:[#allocation43_spill] sm:$0xff] }
 0x115   : > { %5229 = vst [vmem:[#allocation31_spill] sm:$0xff] %v3762_v32  ;;  %5231 = vst [vmem:[#allocation40_spill] sm:$0xff] %v3765_v37  ;;  %v1078_v12 = vmul.f32 %v2663_v8, %v3762_v32  ;;  %v1079_v56 = vmul.f32 %v2665_v9, %v3765_v37  ;;  %v3785_v47 = vmul.f32 %v2647_v0, %v3756_v33 }
 0x116   : > { %v1215_v3 = vadd.f32 %v1214_v58, %v1074_v57  ;;  %v1219_v14 = vadd.f32 %v1077_v59, %v1076_v42  ;;  %v3789_v39 = vmul.f32 %v2649_v1, %v3756_v33  ;;  %v3793_v44 = vmul.f32 %v2645_v63, %v3767_v22  ;;  %v5234_v57 = vld [vmem:[#allocation42_spill] sm:$0xff] }
 0x117   : > { %v3797_v37 = vmul.f32 %v2647_v0, %v3767_v22  ;;  %v811_v32 = vmul.f32 %v2657_v5, %v3514_v51  ;;  %v3803_v40 = vmin.f32 %v5232_v11, %v3545_v20  ;;  %v3807_v58 = vmin.f32 %v5234_v57, %v3551_v18  ;;  %v5240_v18 = vld [vmem:[#allocation37_spill] sm:$0xff] }
 0x118   : > { %v1216_v42 = vadd.f32 %v1215_v3, %v1075_v41  ;;  %v1220_v59 = vadd.f32 %v1219_v14, %v1078_v12  ;;  %v3811_v54 = vmin.f32 %v5236_v26, %v3555_v62  ;;  %v815_v28 = vmul.f32 %v2657_v5, %v3535_v21  ;;  %v3826_v41 = vpop.permute.xlu1 %697  ;;  %v5246_v14 = vld [vmem:[#allocation48_spill] sm:$0xff] }
 0x119   : > { %5233 = vst [vmem:[#allocation41_spill] sm:$0xff] %v3803_v40  ;;  %5235 = vst [vmem:[#allocation42_spill] sm:$0xff] %v3807_v58  ;;  %v3816_v50 = vmin.f32 %v5238_v61, %v811_v32  ;;  %v1080_v51 = vmul.f32 %v2659_v6, %v3803_v40  ;;  %v1081_v20 = vmul.f32 %v2661_v7, %v3807_v58  ;;  %v5242_v61 = vld [vmem:[#allocation38_spill] sm:$0xff]  ;;  %v5244_v32 = vld [vmem:[#allocation39_spill] sm:$0xff] }
 0x11a   : > { %5237 = vst [vmem:[#allocation43_spill] sm:$0xff] %v3811_v54  ;;  %v3824_v11 = vmin.f32 %v5240_v18, %v3559_v38  ;;  %1217 = vadd.xlane.f32.xlu0 %v1216_v42  ;;  %v1221_v62 = vadd.f32 %v1220_v59, %v1079_v56  ;;  %v3830_v21 = vmul.f32 %v2649_v1, %v3767_v22  ;;  %v3847_v42 = vpop.permute.xlu0 %701 }
 0x11b   : > { %5239 = vst [vmem:[#allocation44_spill] sm:$0xff] %v3816_v50  ;;  %v3834_v26 = vmin.f32 %v5242_v61, %v3563_v48  ;;  %v3838_v12 = vmin.f32 %v5244_v32, %v3590_v52  ;;  %v1082_v38 = vmul.f32 %v2663_v8, %v3811_v54  ;;  %v1224_v3 = vadd.f32 %v1081_v20, %v1080_v51  ;;  %v5254_v54 = vld [vmem:[#allocation52_spill] sm:$0xff] }
 0x11c   : > { %5241 = vst [vmem:[#allocation37_spill] sm:$0xff] %v3824_v11  ;;  %v3843_v57 = vmin.f32 %v5246_v14, %v815_v28  ;;  %v1084_v56 = vmul.f32 %v2659_v6, %v3824_v11  ;;  %1222 = vadd.xlane.f32.xlu1 %v1221_v62  ;;  %v1083_v48 = vmul.f32 %v2665_v9, %v3816_v50  ;;  %v5250_v50 = vld [vmem:[#allocation50_spill] sm:$0xff] }
 0x11d   : > { %5243 = vst [vmem:[#allocation38_spill] sm:$0xff] %v3834_v26  ;;  %5245 = vst [vmem:[#allocation39_spill] sm:$0xff] %v3838_v12  ;;  %v1085_v52 = vmul.f32 %v2661_v7, %v3834_v26  ;;  %v1086_v59 = vmul.f32 %v2663_v8, %v3838_v12  ;;  %v3857_v51 = vmul.f32 %v2645_v63, %v3826_v41 }
 0x11e   : > { %5247 = vst [vmem:[#allocation48_spill] sm:$0xff] %v3843_v57  ;;  %v1225_v28 = vadd.f32 %v1224_v3, %v1082_v38  ;;  %v1087_v20 = vmul.f32 %v2665_v9, %v3843_v57  ;;  %v3863_v18 = vmul.f32 %v2647_v0, %v3826_v41  ;;  %v3867_v62 = vmul.f32 %v2649_v1, %v3826_v41  ;;  %v5248_v57 = vld [vmem:[#allocation49_spill] sm:$0xff] }
 0x11f   : > { %v1229_v61 = vadd.f32 %v1085_v52, %v1084_v56  ;;  %v3871_v32 = vmul.f32 %v2645_v63, %v3847_v42  ;;  %v3875_v14 = vmul.f32 %v2647_v0, %v3847_v42  ;;  %v819_v38 = vmul.f32 %v2657_v5, %v3600_v46  ;;  %v5252_v56 = vld [vmem:[#allocation51_spill] sm:$0xff] }
 0x120   : > { %v1226_v3 = vadd.f32 %v1225_v28, %v1083_v48  ;;  %v3881_v12 = vmin.f32 %v5248_v57, %v3625_v27  ;;  %v3885_v26 = vmin.f32 %v5250_v50, %v3629_v35  ;;  %v3889_v52 = vmin.f32 %v5252_v56, %v3633_v34  ;;  %v5256_v48 = vld [vmem:[#allocation45_spill] sm:$0xff]  ;;  %v5258_v34 = vld [vmem:[#allocation46_spill] sm:$0xff]  ;;  %v3923_v56 = vpop.permute.xlu0 %709 }
 0x121   : > { %v1230_v11 = vadd.f32 %v1229_v61, %v1086_v59  ;;  %v3892_v58 = vmin.f32 %v5254_v54, %v819_v38  ;;  %v823_v46 = vmul.f32 %v2657_v5, %v3611_v10  ;;  %v3898_v28 = vmin.f32 %v5256_v48, %v3637_v36  ;;  %v3912_v10 = vpop.permute.xlu1 %705  ;;  %v5260_v59 = vld [vmem:[#allocation47_spill] sm:$0xff]  ;;  %v5262_v38 = vld [vmem:[#allocation56_spill] sm:$0xff] }
 0x122   : > { %5249 = vst [vmem:[#allocation49_spill] sm:$0xff] %v3881_v12  ;;  %5251 = vst [vmem:[#allocation50_spill] sm:$0xff] %v3885_v26  ;;  %1227 = vadd.xlane.f32.xlu0 %v1226_v3  ;;  %v3902_v50 = vmul.f32 %v2649_v1, %v3847_v42  ;;  %v1088_v27 = vmul.f32 %v2659_v6, %v3881_v12  ;;  %v1089_v35 = vmul.f32 %v2661_v7, %v3885_v26  ;;  %v5269_v12 = vld [vmem:[#allocation60_spill] sm:$0xff] }
 0x123   : > { %5253 = vst [vmem:[#allocation51_spill] sm:$0xff] %v3889_v52  ;;  %5255 = vst [vmem:[#allocation52_spill] sm:$0xff] %v3892_v58  ;;  %v3910_v54 = vmin.f32 %v5258_v34, %v3641_v15  ;;  %v1231_v57 = vadd.f32 %v1230_v11, %v1087_v20  ;;  %v1090_v36 = vmul.f32 %v2663_v8, %v3889_v52 }
 0x124   : > { %5257 = vst [vmem:[#allocation45_spill] sm:$0xff] %v3898_v28  ;;  %v3918_v61 = vmin.f32 %v5260_v59, %v3674_v60  ;;  %v3921_v3 = vmin.f32 %v5262_v38, %v823_v46  ;;  %v1091_v48 = vmul.f32 %v2665_v9, %v3892_v58  ;;  %v1234_v15 = vadd.f32 %v1089_v35, %v1088_v27 }
 0x125   : > { %5259 = vst [vmem:[#allocation46_spill] sm:$0xff] %v3910_v54  ;;  %v1092_v34 = vmul.f32 %v2659_v6, %v3898_v28  ;;  %v1093_v11 = vmul.f32 %v2661_v7, %v3910_v54  ;;  %1232 = vadd.xlane.f32.xlu1 %v1231_v57  ;;  %v3937_v46 = vmul.f32 %v2645_v63, %v3912_v10  ;;  %v5264_v54 = vld [vmem:[#allocation57_spill] sm:$0xff]  ;;  %v5267_v28 = vld [vmem:[#allocation59_spill] sm:$0xff] }
 0x126   : > { %5261 = vst [vmem:[#allocation47_spill] sm:$0xff] %v3918_v61  ;;  %5263 = vst [vmem:[#allocation56_spill] sm:$0xff] %v3921_v3  ;;  %v1094_v60 = vmul.f32 %v2663_v8, %v3918_v61  ;;  %v1095_v20 = vmul.f32 %v2665_v9, %v3921_v3  ;;  %v3941_v27 = vmul.f32 %v2647_v0, %v3912_v10 }
 0x127   : > { %v1235_v35 = vadd.f32 %v1234_v15, %v1090_v36  ;;  %v1239_v59 = vadd.f32 %v1093_v11, %v1092_v34  ;;  %v3945_v38 = vmul.f32 %v2649_v1, %v3912_v10  ;;  %v3949_v57 = vmul.f32 %v2645_v63, %v3923_v56  ;;  %v5265_v36 = vld [vmem:[#allocation58_spill] sm:$0xff] }
 0x128   : > { %v3953_v3 = vmul.f32 %v2647_v0, %v3923_v56  ;;  %v827_v61 = vmul.f32 %v2657_v5, %v3670_v25  ;;  %v3959_v58 = vmin.f32 %v5264_v54, %v3701_v17  ;;  %v3963_v15 = vmin.f32 %v5265_v36, %v3707_v19  ;;  %v5271_v19 = vld [vmem:[#allocation53_spill] sm:$0xff] }
 0x129   : > { %v1236_v34 = vadd.f32 %v1235_v35, %v1091_v48  ;;  %v1240_v11 = vadd.f32 %v1239_v59, %v1094_v60  ;;  %v3967_v52 = vmin.f32 %v5267_v28, %v3711_v30  ;;  %v831_v26 = vmul.f32 %v2657_v5, %v3691_v49  ;;  %v3982_v48 = vpop.permute.xlu1 %713  ;;  %v5277_v59 = vld [vmem:[#allocation64_spill] sm:$0xff] }
 0x12a   : > { %5266 = vst [vmem:[#allocation57_spill] sm:$0xff] %v3963_v15  ;;  %v3972_v40 = vmin.f32 %v5269_v12, %v827_v61  ;;  %v1096_v25 = vmul.f32 %v2659_v6, %v3959_v58  ;;  %v1097_v17 = vmul.f32 %v2661_v7, %v3963_v15  ;;  %v3980_v54 = vmin.f32 %v5271_v19, %v3715_v16  ;;  %v5273_v12 = vld [vmem:[#allocation54_spill] sm:$0xff]  ;;  %v5275_v61 = vld [vmem:[#allocation55_spill] sm:$0xff] }
 0x12b   : > { %5268 = vst [vmem:[#allocation58_spill] sm:$0xff] %v3967_v52  ;;  %1237 = vadd.xlane.f32.xlu0 %v1236_v34  ;;  %v1241_v30 = vadd.f32 %v1240_v11, %v1095_v20  ;;  %v3986_v49 = vmul.f32 %v2649_v1, %v3923_v56  ;;  %v3990_v28 = vmin.f32 %v5273_v12, %v3719_v2  ;;  %v4003_v34 = vpop.permute.xlu0 %717 }
 0x12c   : > { %5270 = vst [vmem:[#allocation59_spill] sm:$0xff] %v3972_v40  ;;  %5272 = vst [vmem:[#allocation60_spill] sm:$0xff] %v3980_v54  ;;  %v3994_v60 = vmin.f32 %v5275_v61, %v3746_v4  ;;  %v1098_v16 = vmul.f32 %v2663_v8, %v3967_v52  ;;  %v1244_v35 = vadd.f32 %v1097_v17, %v1096_v25  ;;  %v5284_v52 = vld [vmem:[#allocation68_spill] sm:$0xff] }
 0x12d   : > { %5274 = vst [vmem:[#allocation53_spill] sm:$0xff] %v3990_v28  ;;  %v3999_v36 = vmin.f32 %v5277_v59, %v831_v26  ;;  %v1100_v20 = vmul.f32 %v2659_v6, %v3980_v54  ;;  %1242 = vadd.xlane.f32.xlu1 %v1241_v30  ;;  %v1099_v2 = vmul.f32 %v2665_v9, %v3972_v40  ;;  %v5280_v40 = vld [vmem:[#allocation66_spill] sm:$0xff] }
 0x12e   : > { %5276 = vst [vmem:[#allocation54_spill] sm:$0xff] %v3994_v60  ;;  %v1101_v4 = vmul.f32 %v2661_v7, %v3990_v28  ;;  %v1102_v11 = vmul.f32 %v2663_v8, %v3994_v60  ;;  %v4013_v25 = vmul.f32 %v2645_v63, %v3982_v48  ;;  %v1245_v26 = vadd.f32 %v1244_v35, %v1098_v16 }
 0x12f   : > { %5278 = vst [vmem:[#allocation55_spill] sm:$0xff] %v3999_v36  ;;  %v1103_v17 = vmul.f32 %v2665_v9, %v3999_v36  ;;  %v4019_v19 = vmul.f32 %v2647_v0, %v3982_v48  ;;  %v4023_v30 = vmul.f32 %v2649_v1, %v3982_v48  ;;  %v4027_v61 = vmul.f32 %v2645_v63, %v4003_v34  ;;  %v5279_v36 = vld [vmem:[#allocation65_spill] sm:$0xff] }
 0x130   : > { %v1249_v12 = vadd.f32 %v1101_v4, %v1100_v20  ;;  %v4031_v59 = vmul.f32 %v2647_v0, %v4003_v34  ;;  %v835_v16 = vmul.f32 %v2657_v5, %v3756_v33  ;;  %v1246_v35 = vadd.f32 %v1245_v26, %v1099_v2  ;;  %v5282_v20 = vld [vmem:[#allocation67_spill] sm:$0xff]  ;;  %v5286_v2 = vld [vmem:[#allocation61_spill] sm:$0xff] }
 0x131   : > { %v4037_v60 = vmin.f32 %v5279_v36, %v3781_v43  ;;  %v4041_v28 = vmin.f32 %v5280_v40, %v3785_v47  ;;  %v4045_v4 = vmin.f32 %v5282_v20, %v3789_v39  ;;  %v839_v33 = vmul.f32 %v2657_v5, %v3767_v22  ;;  %v5288_v39 = vld [vmem:[#allocation62_spill] sm:$0xff]  ;;  %v4068_v22 = vpop.permute.xlu1 %721  ;;  %v4079_v20 = vpop.permute.xlu0 %725 }
 0x132   : > { %v1250_v54 = vadd.f32 %v1249_v12, %v1102_v11  ;;  %v4048_v15 = vmin.f32 %v5284_v52, %v835_v16  ;;  %v4054_v26 = vmin.f32 %v5286_v2, %v3793_v44  ;;  %1247 = vadd.xlane.f32.xlu0 %v1246_v35  ;;  %v4058_v40 = vmul.f32 %v2649_v1, %v4003_v34  ;;  %v5290_v11 = vld [vmem:[#allocation63_spill] sm:$0xff]  ;;  %v5292_v16 = vld [vmem:[#allocation72_spill] sm:$0xff] }
 0x133   : > { %5281 = vst [vmem:[#allocation64_spill] sm:$0xff] %v4041_v28  ;;  %5283 = vst [vmem:[#allocation65_spill] sm:$0xff] %v4045_v4  ;;  %v1104_v43 = vmul.f32 %v2659_v6, %v4037_v60  ;;  %v1105_v47 = vmul.f32 %v2661_v7, %v4041_v28  ;;  %v4066_v52 = vmin.f32 %v5288_v39, %v3797_v37 }
 0x134   : > { %5285 = vst [vmem:[#allocation66_spill] sm:$0xff] %v4048_v15  ;;  %5287 = vst [vmem:[#allocation67_spill] sm:$0xff] %v4054_v26  ;;  %v1251_v36 = vadd.f32 %v1250_v54, %v1103_v17  ;;  %v1106_v44 = vmul.f32 %v2663_v8, %v4045_v4  ;;  %v4074_v12 = vmin.f32 %v5290_v11, %v3830_v21  ;;  %v5297_v4 = vld [vmem:[#allocation76_spill] sm:$0xff] }
 0x135   : > { %5289 = vst [vmem:[#allocation68_spill] sm:$0xff] %v4066_v52  ;;  %v4077_v35 = vmin.f32 %v5292_v16, %v839_v33  ;;  %v1107_v2 = vmul.f32 %v2665_v9, %v4048_v15  ;;  %v1254_v37 = vadd.f32 %v1105_v47, %v1104_v43  ;;  %v1108_v39 = vmul.f32 %v2659_v6, %v4054_v26 }
 0x136   : > { %5291 = vst [vmem:[#allocation61_spill] sm:$0xff] %v4074_v12  ;;  %v1109_v54 = vmul.f32 %v2661_v7, %v4066_v52  ;;  %1252 = vadd.xlane.f32.xlu1 %v1251_v36  ;;  %v1110_v21 = vmul.f32 %v2663_v8, %v4074_v12  ;;  %v4093_v33 = vmul.f32 %v2645_v63, %v4068_v22  ;;  %v5294_v52 = vld [vmem:[#allocation73_spill] sm:$0xff] }
 0x137   : > { %5293 = vst [vmem:[#allocation62_spill] sm:$0xff] %v4077_v35  ;;  %v1111_v17 = vmul.f32 %v2665_v9, %v4077_v35  ;;  %v4097_v43 = vmul.f32 %v2647_v0, %v4068_v22  ;;  %v1255_v47 = vadd.f32 %v1254_v37, %v1106_v44  ;;  %v4101_v16 = vmul.f32 %v2649_v1, %v4068_v22  ;;  %v5295_v44 = vld [vmem:[#allocation74_spill] sm:$0xff] }
 0x138   : > { %v1259_v11 = vadd.f32 %v1109_v54, %v1108_v39  ;;  %v4105_v36 = vmul.f32 %v2645_v63, %v4079_v20  ;;  %v4109_v35 = vmul.f32 %v2647_v0, %v4079_v20  ;;  %v843_v12 = vmul.f32 %v2657_v5, %v3826_v41  ;;  %v5296_v63 = vld [vmem:[#allocation75_spill] sm:$0xff] }
 0x139   : > { %v4115_v15 = vmin.f32 %v5294_v52, %v3857_v51  ;;  %v4119_v37 = vmin.f32 %v5295_v44, %v3863_v18  ;;  %v1256_v39 = vadd.f32 %v1255_v47, %v1107_v2  ;;  %v4123_v26 = vmin.f32 %v5296_v63, %v3867_v62  ;;  %v5298_v18 = vld [vmem:[#allocation69_spill] sm:$0xff] }
 0x13a   : > { %v1260_v54 = vadd.f32 %v1259_v11, %v1110_v21  ;;  %v847_v0 = vmul.f32 %v2657_v5, %v3847_v42  ;;  %v4128_v28 = vmin.f32 %v5297_v4, %v843_v12  ;;  %v4136_v52 = vmin.f32 %v5298_v18, %v3871_v32  ;;  %v5299_v42 = vld [vmem:[#allocation70_spill] sm:$0xff]  ;;  %v5300_v12 = vld [vmem:[#allocation71_spill] sm:$0xff]  ;;  %v5301_v32 = vld [vmem:[#allocation80_spill] sm:$0xff] }
 0x13b   : > { %v1112_v41 = vmul.f32 %v2659_v6, %v4115_v15  ;;  %v1113_v51 = vmul.f32 %v2661_v7, %v4119_v37  ;;  %1257 = vadd.xlane.f32.xlu0 %v1256_v39  ;;  %v4140_v62 = vmul.f32 %v2649_v1, %v4079_v20  ;;  %v4144_v4 = vmin.f32 %v5299_v42, %v3875_v14  ;;  %v5302_v39 = vld [vmem:[#allocation81_spill] sm:$0xff]  ;;  %v5304_v18 = vld [vmem:[#allocation83_spill] sm:$0xff] }
 0x13c   : > { %v1261_v2 = vadd.f32 %v1260_v54, %v1111_v17  ;;  %v4148_v21 = vmin.f32 %v5300_v12, %v3902_v50  ;;  %v1114_v47 = vmul.f32 %v2663_v8, %v4123_v26  ;;  %v4153_v44 = vmin.f32 %v5301_v32, %v847_v0  ;;  %v5305_v12 = vld [vmem:[#allocation84_spill] sm:$0xff] }
 0x13d   : > { %v1264_v11 = vadd.f32 %v1113_v51, %v1112_v41  ;;  %v1116_v17 = vmul.f32 %v2659_v6, %v4136_v52  ;;  %v1115_v1 = vmul.f32 %v2665_v9, %v4128_v28  ;;  %v1117_v14 = vmul.f32 %v2661_v7, %v4144_v4  ;;  %v5303_v41 = vld [vmem:[#allocation82_spill] sm:$0xff] }
 0x13e   : > { %1262 = vadd.xlane.f32.xlu1 %v1261_v2  ;;  %v851_v50 = vmul.f32 %v2657_v5, %v3912_v10  ;;  %v4165_v54 = vmin.f32 %v5302_v39, %v3937_v46  ;;  %v1118_v0 = vmul.f32 %v2663_v8, %v4148_v21  ;;  %v4171_v51 = vmin.f32 %v5303_v41, %v3941_v27 }
 0x13f   : > { %v1265_v63 = vadd.f32 %v1264_v11, %v1114_v47  ;;  %v4175_v2 = vmin.f32 %v5304_v18, %v3945_v38  ;;  %v1269_v42 = vadd.f32 %v1117_v14, %v1116_v17  ;;  %v855_v46 = vmul.f32 %v2657_v5, %v3923_v56  ;;  %v5306_v38 = vld [vmem:[#allocation77_spill] sm:$0xff]  ;;  %v5308_v56 = vld [vmem:[#allocation79_spill] sm:$0xff]  ;;  %v5309_v18 = vld [vmem:[#allocation88_spill] sm:$0xff] }
 0x140   : > { %v4178_v32 = vmin.f32 %v5305_v12, %v851_v50  ;;  %v1120_v10 = vmul.f32 %v2659_v6, %v4165_v54  ;;  %v1119_v11 = vmul.f32 %v2665_v9, %v4153_v44  ;;  %v1121_v27 = vmul.f32 %v2661_v7, %v4171_v51  ;;  %v5307_v50 = vld [vmem:[#allocation78_spill] sm:$0xff] }
 0x141   : > { %v1266_v47 = vadd.f32 %v1265_v63, %v1115_v1  ;;  %v4190_v39 = vmin.f32 %v5306_v38, %v3949_v57  ;;  %v1270_v17 = vadd.f32 %v1269_v42, %v1118_v0  ;;  %v1122_v14 = vmul.f32 %v2663_v8, %v4175_v2 }
 0x142   : > { %v4196_v41 = vmin.f32 %v5307_v50, %v3953_v3  ;;  %v4200_v1 = vmin.f32 %v5308_v56, %v3986_v49  ;;  %v1274_v63 = vadd.f32 %v1121_v27, %v1120_v10  ;;  %v4203_v12 = vmin.f32 %v5309_v18, %v855_v46  ;;  %v5310_v49 = vld [vmem:[#allocation89_spill] sm:$0xff]  ;;  %v5311_v27 = vld [vmem:[#allocation90_spill] sm:$0xff]  ;;  %v5313_v56 = vld [vmem:[#allocation92_spill] sm:$0xff] }
 0x143   : > { %1267 = vadd.xlane.f32.xlu0 %v1266_v47  ;;  %v1124_v57 = vmul.f32 %v2659_v6, %v4190_v39  ;;  %v859_v0 = vmul.f32 %v2657_v5, %v3982_v48  ;;  %v1271_v42 = vadd.f32 %v1270_v17, %v1119_v11  ;;  %v1123_v3 = vmul.f32 %v2665_v9, %v4178_v32  ;;  %v5312_v48 = vld [vmem:[#allocation91_spill] sm:$0xff] }
 0x144   : > { %v1125_v38 = vmul.f32 %v2661_v7, %v4196_v41  ;;  %v4215_v47 = vmin.f32 %v5310_v49, %v4013_v25  ;;  %v1275_v10 = vadd.f32 %v1274_v63, %v1122_v14  ;;  %v1126_v46 = vmul.f32 %v2663_v8, %v4200_v1 }
 0x145   : > { %v4221_v50 = vmin.f32 %v5311_v27, %v4019_v19  ;;  %v4225_v11 = vmin.f32 %v5312_v48, %v4023_v30  ;;  %1272 = vadd.xlane.f32.xlu1 %v1271_v42  ;;  %v4228_v18 = vmin.f32 %v5313_v56, %v859_v0  ;;  %v863_v14 = vmul.f32 %v2657_v5, %v4003_v34  ;;  %v5314_v30 = vld [vmem:[#allocation85_spill] sm:$0xff]  ;;  %v5316_v34 = vld [vmem:[#allocation87_spill] sm:$0xff]  ;;  %v5317_v48 = vld [vmem:[#allocation96_spill] sm:$0xff] }
 0x146   : > { %v1279_v17 = vadd.f32 %v1125_v38, %v1124_v57  ;;  %v1128_v25 = vmul.f32 %v2659_v6, %v4215_v47  ;;  %v1276_v63 = vadd.f32 %v1275_v10, %v1123_v3  ;;  %v1127_v19 = vmul.f32 %v2665_v9, %v4203_v12  ;;  %v5315_v38 = vld [vmem:[#allocation86_spill] sm:$0xff] }
 0x147   : > { %v1129_v49 = vmul.f32 %v2661_v7, %v4221_v50  ;;  %v4240_v42 = vmin.f32 %v5314_v30, %v4027_v61  ;;  %v1130_v0 = vmul.f32 %v2663_v8, %v4225_v11  ;;  %v4246_v27 = vmin.f32 %v5315_v38, %v4031_v59 }
 0x148   : > { %v1280_v57 = vadd.f32 %v1279_v17, %v1126_v46  ;;  %v4250_v3 = vmin.f32 %v5316_v34, %v4058_v40  ;;  %1277 = vadd.xlane.f32.xlu0 %v1276_v63  ;;  %v4253_v56 = vmin.f32 %v5317_v48, %v863_v14  ;;  %v867_v46 = vmul.f32 %v2657_v5, %v4068_v22  ;;  %v5319_v40 = vld [vmem:[#allocation97_spill] sm:$0xff]  ;;  %v5322_v22 = vld [vmem:[#allocation99_spill] sm:$0xff]  ;;  %v5324_v34 = vld [vmem:[#allocation100_spill] sm:$0xff] }
 0x149   : > { %v1284_v10 = vadd.f32 %v1129_v49, %v1128_v25  ;;  %v1132_v61 = vmul.f32 %v2659_v6, %v4240_v42  ;;  %v1131_v59 = vmul.f32 %v2665_v9, %v4228_v18  ;;  %v1133_v30 = vmul.f32 %v2661_v7, %v4246_v27  ;;  %v5320_v49 = vld [vmem:[#allocation98_spill] sm:$0xff] }
 0x14a   : > { %5318 = vst [vmem:[#allocation63_spill] sm:$0xff] %v4253_v56  ;;  %v1281_v17 = vadd.f32 %v1280_v57, %v1127_v19  ;;  %v4265_v63 = vmin.f32 %v5319_v40, %v4093_v33  ;;  %v1134_v14 = vmul.f32 %v2663_v8, %v4250_v3  ;;  %v4271_v38 = vmin.f32 %v5320_v49, %v4097_v43 }
 0x14b   : > { %v1285_v25 = vadd.f32 %v1284_v10, %v1130_v0  ;;  %v4275_v19 = vmin.f32 %v5322_v22, %v4101_v16  ;;  %v1289_v57 = vadd.f32 %v1133_v30, %v1132_v61  ;;  %v4278_v48 = vmin.f32 %v5324_v34, %v867_v46  ;;  %v5326_v16 = vld [vmem:[#allocation93_spill] sm:$0xff]  ;;  %v5328_v30 = vld [vmem:[#allocation94_spill] sm:$0xff] }
 0x14c   : > { %5321 = vst [vmem:[#allocation72_spill] sm:$0xff] %v4271_v38  ;;  %1282 = vadd.xlane.f32.xlu1 %v1281_v17  ;;  %v1136_v33 = vmul.f32 %v2659_v6, %v4265_v63  ;;  %v871_v0 = vmul.f32 %v2657_v5, %v4079_v20  ;;  %v1135_v43 = vmul.f32 %v2665_v9, %v4253_v56  ;;  %v5330_v5 = vld [vmem:[#allocation95_spill] sm:$0xff] }
 0x14d   : > { %5323 = vst [vmem:[#allocation73_spill] sm:$0xff] %v4275_v19  ;;  %5325 = vst [vmem:[#allocation74_spill] sm:$0xff] %v4278_v48  ;;  %v1286_v10 = vadd.f32 %v1285_v25, %v1131_v59  ;;  %v1137_v40 = vmul.f32 %v2661_v7, %v4271_v38  ;;  %v4290_v17 = vmin.f32 %v5326_v16, %v4105_v36  ;;  %v5332_v25 = vld [vmem:[#allocation108_spill] sm:$0xff]  ;;  %v5353_v38 = vld [vmem:[#allocation117_spill] sm:$0xff] }
 0x14e   : > { %v1290_v61 = vadd.f32 %v1289_v57, %v1134_v14  ;;  %v1138_v46 = vmul.f32 %v2663_v8, %v4275_v19  ;;  %v4296_v49 = vmin.f32 %v5328_v30, %v4109_v35  ;;  %v4300_v20 = vmin.f32 %v5330_v5, %v4140_v62  ;;  %v5334_v14 = vld [vmem:[#allocation104_spill] sm:$0xff]  ;;  %v5335_v57 = vld [vmem:[#allocation2_spill] sm:$0xff]  ;;  %v5337_v5 = vld [vmem:[#allocation3_spill] sm:$0xff] }
 0x14f   : > { %5327 = vst [vmem:[#allocation75_spill] sm:$0xff] %v4290_v17  ;;  %1287 = vadd.xlane.f32.xlu0 %v1286_v10  ;;  %v1294_v59 = vadd.f32 %v1137_v40, %v1136_v33  ;;  %v4303_v22 = vmin.f32 %v5332_v25, %v871_v0  ;;  %v1140_v36 = vmul.f32 %v2659_v6, %v4290_v17  ;;  %v5336_v62 = vld [vmem:[#allocation106_spill] sm:$0xff]  ;;  %v5338_v40 = vld [vmem:[#allocation107_spill] sm:$0xff]  ;;  %v5339_v25 = vld [vmem:[#allocation4_spill] sm:$0xff] }
 0x150   : > { %5329 = vst [vmem:[#allocation76_spill] sm:$0xff] %v4296_v49  ;;  %5331 = vst [vmem:[#allocation69_spill] sm:$0xff] %v4300_v20  ;;  %v1320_v34 = vmul.f32 %v5335_v57, %v5334_v14  ;;  %v1291_v16 = vadd.f32 %v1290_v61, %v1135_v43  ;;  %v1139_v35 = vmul.f32 %v2665_v9, %v4278_v48  ;;  %v5340_v48 = vld [vmem:[#allocation101_spill] sm:$0xff] }
 0x151   : > { %5333 = vst [vmem:[#allocation70_spill] sm:$0xff] %v4303_v22  ;;  %v1141_v30 = vmul.f32 %v2661_v7, %v4296_v49  ;;  %v1321_v10 = vmul.f32 %v5337_v5, %v5336_v62  ;;  %v1295_v33 = vadd.f32 %v1294_v59, %v1138_v46  ;;  %v1142_v0 = vmul.f32 %v2663_v8, %v4300_v20  ;;  %v5341_v7 = vld [vmem:[#allocation102_spill] sm:$0xff]  ;;  %v5342_v46 = vld [vmem:[#allocation109_spill] sm:$0xff]  ;;  %v5344_v8 = vld [vmem:[#allocation103_spill] sm:$0xff] }
 0x152   : > { %v1143_v6 = vmul.f32 %v2665_v9, %v4303_v22  ;;  %v1322_v14 = vmul.f32 %v5339_v25, %v5338_v40  ;;  %1292 = vadd.xlane.f32.xlu1 %v1291_v16  ;;  %v1324_v17 = vmul.f32 %v5335_v57, %v5340_v48  ;;  %v1325_v49 = vmul.f32 %v5337_v5, %v5341_v7  ;;  %v5343_v59 = vld [vmem:[#allocation5_spill] sm:$0xff]  ;;  %v5345_v9 = vld [vmem:[#allocation110_spill] sm:$0xff] }
 0x153   : > { %v1299_v43 = vadd.f32 %v1141_v30, %v1140_v36  ;;  %v1448_v61 = vadd.f32 %v1321_v10, %v1320_v34  ;;  %v1296_v62 = vadd.f32 %v1295_v33, %v1139_v35  ;;  %v1323_v19 = vmul.f32 %v5343_v59, %v5342_v46  ;;  %v5346_v34 = vld [vmem:[#allocation111_spill] sm:$0xff]  ;;  %v5347_v48 = vld [vmem:[#allocation105_spill] sm:$0xff]  ;;  %v5348_v35 = vld [vmem:[#allocation112_spill] sm:$0xff] }
 0x154   : > { %v1326_v20 = vmul.f32 %v5339_v25, %v5344_v8  ;;  %v1328_v22 = vmul.f32 %v5335_v57, %v5345_v9  ;;  %v1453_v36 = vadd.f32 %v1325_v49, %v1324_v17  ;;  %v1329_v30 = vmul.f32 %v5337_v5, %v5346_v34  ;;  %v5349_v7 = vld [vmem:[#allocation114_spill] sm:$0xff]  ;;  %v5350_v8 = vld [vmem:[#allocation115_spill] sm:$0xff] }
 0x155   : > { %v1300_v40 = vadd.f32 %v1299_v43, %v1142_v0  ;;  %v1449_v16 = vadd.f32 %v1448_v61, %v1322_v14  ;;  %1297 = vadd.xlane.f32.xlu0 %v1296_v62  ;;  %v1327_v10 = vmul.f32 %v5343_v59, %v5347_v48  ;;  %v1330_v33 = vmul.f32 %v5339_v25, %v5348_v35  ;;  %v5351_v14 = vld [vmem:[#allocation113_spill] sm:$0xff]  ;;  %v5352_v61 = vld [vmem:[#allocation116_spill] sm:$0xff] }
 0x156   : > { %v1332_v46 = vmul.f32 %v5335_v57, %v5349_v7  ;;  %v1333_v56 = vmul.f32 %v5337_v5, %v5350_v8  ;;  %v1454_v0 = vadd.f32 %v1453_v36, %v1326_v20  ;;  %v1331_v17 = vmul.f32 %v5343_v59, %v5351_v14 }
 0x157   : > { %v1301_v9 = vadd.f32 %v1300_v40, %v1143_v6  ;;  %v1458_v49 = vadd.f32 %v1329_v30, %v1328_v22  ;;  %v1450_v43 = vadd.f32 %v1449_v16, %v1323_v19  ;;  %v1334_v62 = vmul.f32 %v5339_v25, %v5352_v61  ;;  %v5354_v22 = vld [vmem:[#allocation118_spill] sm:$0xff] }
 0x158   : > { %v1463_v34 = vadd.f32 %v1333_v56, %v1332_v46  ;;  %v1336_v48 = vmul.f32 %v5335_v57, %v3312_v55  ;;  %v1455_v35 = vadd.f32 %v1454_v0, %v1327_v10  ;;  %v1335_v8 = vmul.f32 %v5343_v59, %v5353_v38  ;;  %v5355_v38 = vld [vmem:[#allocation119_spill] sm:$0xff]  ;;  %v5357_v0 = vld [vmem:[#allocation122_spill] sm:$0xff] }
 0x159   : > { %1302 = vadd.xlane.f32.xlu1 %v1301_v9  ;;  %v1459_v7 = vadd.f32 %v1458_v49, %v1330_v33  ;;  %v1337_v20 = vmul.f32 %v5337_v5, %v3315_v13  ;;  %1451 = vadd.xlane.f32.xlu0 %v1450_v43  ;;  %v1338_v19 = vmul.f32 %v5339_v25, %v5354_v22  ;;  %v5356_v13 = vld [vmem:[#allocation120_spill] sm:$0xff]  ;;  %v5358_v49 = vld [vmem:[#allocation121_spill] sm:$0xff] }
 0x15a   : > { %v1464_v6 = vadd.f32 %v1463_v34, %v1334_v62  ;;  %v1340_v56 = vmul.f32 %v5335_v57, %v3363_v23  ;;  %v1341_v55 = vmul.f32 %v5337_v5, %v3367_v53  ;;  %v1339_v16 = vmul.f32 %v5343_v59, %v3339_v24  ;;  %v5359_v62 = vld [vmem:[#allocation123_spill] sm:$0xff]  ;;  %v5363_v22 = vld [vmem:[#allocation9_spill] sm:$0xff] }
 0x15b   : > { %v1460_v40 = vadd.f32 %v1459_v7, %v1331_v17  ;;  %v1468_v36 = vadd.f32 %v1337_v20, %v1336_v48  ;;  %v1342_v30 = vmul.f32 %v5339_v25, %v5355_v38  ;;  %v1343_v10 = vmul.f32 %v5343_v59, %v5356_v13 }
 0x15c   : > { %v1473_v33 = vadd.f32 %v1341_v55, %v1340_v56  ;;  %v1344_v46 = vmul.f32 %v5335_v57, %v3413_v45  ;;  %v1345_v23 = vmul.f32 %v5337_v5, %v3417_v29  ;;  %v1465_v53 = vadd.f32 %v1464_v6, %v1335_v8  ;;  %v5360_v29 = vld [vmem:[#allocation124_spill] sm:$0xff] }
 0x15d   : > { %1456 = vadd.xlane.f32.xlu1 %v1455_v35  ;;  %v1469_v9 = vadd.f32 %v1468_v36, %v1338_v19  ;;  %v1346_v24 = vmul.f32 %v5339_v25, %v3421_v31  ;;  %v1348_v14 = vmul.f32 %v5335_v57, %v5357_v0  ;;  %1461 = vadd.xlane.f32.xlu0 %v1460_v40  ;;  %v5361_v35 = vld [vmem:[#allocation10_spill] sm:$0xff]  ;;  %v5362_v31 = vld [vmem:[#allocation11_spill] sm:$0xff]  ;;  %v5364_v55 = vld [vmem:[#allocation12_spill] sm:$0xff] }
 0x15e   : > { %v1474_v17 = vadd.f32 %v1473_v33, %v1342_v30  ;;  %v1347_v43 = vmul.f32 %v5343_v59, %v5358_v49  ;;  %v1478_v61 = vadd.f32 %v1345_v23, %v1344_v46  ;;  %v1349_v45 = vmul.f32 %v5337_v5, %v5359_v62  ;;  %v5365_v36 = vld [vmem:[#allocation6_spill] sm:$0xff]  ;;  %v5366_v30 = vld [vmem:[#allocation7_spill] sm:$0xff] }
 0x15f   : > { %v1470_v34 = vadd.f32 %v1469_v9, %v1339_v16  ;;  %v1350_v48 = vmul.f32 %v5339_v25, %v5360_v29  ;;  %v1352_v7 = vmul.f32 %v5335_v57, %v5361_v35  ;;  %v1353_v8 = vmul.f32 %v5337_v5, %v5362_v31  ;;  %v5368_v9 = vld [vmem:[#allocation8_spill] sm:$0xff]  ;;  %v5370_v49 = vld [vmem:[#allocation18_spill] sm:$0xff] }
 0x160   : > { %v1475_v20 = vadd.f32 %v1474_v17, %v1343_v10  ;;  %v1479_v6 = vadd.f32 %v1478_v61, %v1346_v24  ;;  %v1351_v19 = vmul.f32 %v5343_v59, %v5363_v22  ;;  %v1483_v56 = vadd.f32 %v1349_v45, %v1348_v14  ;;  %v5367_v10 = vld [vmem:[#allocation125_spill] sm:$0xff]  ;;  %v5371_v45 = vld [vmem:[#allocation16_spill] sm:$0xff]  ;;  %v5375_v22 = vld [vmem:[#allocation14_spill] sm:$0xff] }
 0x161   : > { %1466 = vadd.xlane.f32.xlu1 %v1465_v53  ;;  %v1354_v40 = vmul.f32 %v5339_v25, %v5364_v55  ;;  %v1488_v16 = vadd.f32 %v1353_v8, %v1352_v7  ;;  %v1356_v38 = vmul.f32 %v5335_v57, %v5365_v36  ;;  %v1357_v13 = vmul.f32 %v5337_v5, %v5366_v30  ;;  %v5369_v14 = vld [vmem:[#allocation17_spill] sm:$0xff]  ;;  %v5374_v31 = vld [vmem:[#allocation20_spill] sm:$0xff]  ;;  %v5376_v55 = vld [vmem:[#allocation15_spill] sm:$0xff] }
 0x162   : > { %1471 = vadd.xlane.f32.xlu0 %v1470_v34  ;;  %v1480_v33 = vadd.f32 %v1479_v6, %v1347_v43  ;;  %v1484_v46 = vadd.f32 %v1483_v56, %v1350_v48  ;;  %v1355_v23 = vmul.f32 %v5343_v59, %v5367_v10  ;;  %v1358_v24 = vmul.f32 %v5339_v25, %v5368_v9  ;;  %v5372_v43 = vld [vmem:[#allocation19_spill] sm:$0xff]  ;;  %v5373_v48 = vld [vmem:[#allocation13_spill] sm:$0xff] }
 0x163   : > { %v1489_v53 = vadd.f32 %v1488_v16, %v1354_v40  ;;  %v1493_v0 = vadd.f32 %v1357_v13, %v1356_v38  ;;  %v1360_v17 = vmul.f32 %v5335_v57, %v5369_v14  ;;  %v1361_v61 = vmul.f32 %v5337_v5, %v5370_v49  ;;  %v5377_v16 = vld [vmem:[#allocation25_spill] sm:$0xff]  ;;  %v5378_v38 = vld [vmem:[#allocation26_spill] sm:$0xff] }
 0x164   : > { %v1485_v62 = vadd.f32 %v1484_v46, %v1351_v19  ;;  %v1359_v34 = vmul.f32 %v5343_v59, %v5371_v45  ;;  %v1362_v29 = vmul.f32 %v5339_v25, %v5372_v43  ;;  %v1364_v35 = vmul.f32 %v5335_v57, %v5373_v48  ;;  %v5379_v46 = vld [vmem:[#allocation24_spill] sm:$0xff]  ;;  %v5382_v14 = vld [vmem:[#allocation22_spill] sm:$0xff]  ;;  %v5384_v43 = vld [vmem:[#allocation23_spill] sm:$0xff] }
 0x165   : > { %1476 = vadd.xlane.f32.xlu1 %v1475_v20  ;;  %v1494_v7 = vadd.f32 %v1493_v0, %v1358_v24  ;;  %v1363_v8 = vmul.f32 %v5343_v59, %v5374_v31  ;;  %v1498_v6 = vadd.f32 %v1361_v61, %v1360_v17  ;;  %v1365_v56 = vmul.f32 %v5337_v5, %v5375_v22  ;;  %v5380_v24 = vld [vmem:[#allocation27_spill] sm:$0xff]  ;;  %v5383_v45 = vld [vmem:[#allocation28_spill] sm:$0xff] }
 0x166   : > { %1481 = vadd.xlane.f32.xlu0 %v1480_v33  ;;  %v1490_v19 = vadd.f32 %v1489_v53, %v1355_v23  ;;  %v1366_v40 = vmul.f32 %v5339_v25, %v5376_v55  ;;  %v1368_v36 = vmul.f32 %v5335_v57, %v5377_v16  ;;  %v1369_v30 = vmul.f32 %v5337_v5, %v5378_v38  ;;  %v5381_v23 = vld [vmem:[#allocation21_spill] sm:$0xff]  ;;  %v5387_v55 = vld [vmem:[#allocation32_spill] sm:$0xff] }
 0x167   : > { %v1495_v20 = vadd.f32 %v1494_v7, %v1359_v34  ;;  %v1499_v13 = vadd.f32 %v1498_v6, %v1362_v29  ;;  %v1367_v10 = vmul.f32 %v5343_v59, %v5379_v46  ;;  %v1503_v9 = vadd.f32 %v1365_v56, %v1364_v35  ;;  %v5385_v7 = vld [vmem:[#allocation33_spill] sm:$0xff]  ;;  %v5386_v6 = vld [vmem:[#allocation34_spill] sm:$0xff] }
 0x168   : > { %v1370_v0 = vmul.f32 %v5339_v25, %v5380_v24  ;;  %v1508_v33 = vadd.f32 %v1369_v30, %v1368_v36  ;;  %v1372_v53 = vmul.f32 %v5335_v57, %v5381_v23  ;;  %v1373_v17 = vmul.f32 %v5337_v5, %v5382_v14  ;;  %v5389_v16 = vld [vmem:[#allocation29_spill] sm:$0xff]  ;;  %v5391_v46 = vld [vmem:[#allocation30_spill] sm:$0xff] }
 0x169   : > { %1486 = vadd.xlane.f32.xlu1 %v1485_v62  ;;  %v1500_v49 = vadd.f32 %v1499_v13, %v1363_v8  ;;  %v1504_v61 = vadd.f32 %v1503_v9, %v1366_v40  ;;  %v1371_v34 = vmul.f32 %v5343_v59, %v5383_v45  ;;  %v1374_v29 = vmul.f32 %v5339_v25, %v5384_v43  ;;  %v5388_v8 = vld [vmem:[#allocation35_spill] sm:$0xff]  ;;  %v5395_v45 = vld [vmem:[#allocation40_spill] sm:$0xff] }
 0x16a   : > { %1491 = vadd.xlane.f32.xlu0 %v1490_v19  ;;  %v1509_v48 = vadd.f32 %v1508_v33, %v1370_v0  ;;  %v1513_v35 = vadd.f32 %v1373_v17, %v1372_v53  ;;  %v1376_v31 = vmul.f32 %v5335_v57, %v5385_v7  ;;  %v1377_v22 = vmul.f32 %v5337_v5, %v5386_v6  ;;  %v5390_v19 = vld [vmem:[#allocation36_spill] sm:$0xff]  ;;  %v5393_v33 = vld [vmem:[#allocation41_spill] sm:$0xff]  ;;  %v5394_v53 = vld [vmem:[#allocation42_spill] sm:$0xff] }
 0x16b   : > { %v1505_v56 = vadd.f32 %v1504_v61, %v1367_v10  ;;  %v1375_v62 = vmul.f32 %v5343_v59, %v5387_v55  ;;  %v1378_v40 = vmul.f32 %v5339_v25, %v5388_v8  ;;  %v1380_v36 = vmul.f32 %v5335_v57, %v5389_v16  ;;  %v5392_v10 = vld [vmem:[#allocation31_spill] sm:$0xff]  ;;  %v5399_v8 = vld [vmem:[#allocation44_spill] sm:$0xff] }
 0x16c   : > { %v1514_v38 = vadd.f32 %v1513_v35, %v1374_v29  ;;  %v1379_v30 = vmul.f32 %v5343_v59, %v5390_v19  ;;  %v1518_v13 = vadd.f32 %v1377_v22, %v1376_v31  ;;  %v1381_v9 = vmul.f32 %v5337_v5, %v5391_v46  ;;  %v5396_v35 = vld [vmem:[#allocation43_spill] sm:$0xff]  ;;  %v5398_v31 = vld [vmem:[#allocation38_spill] sm:$0xff] }
 0x16d   : > { %1496 = vadd.xlane.f32.xlu1 %v1495_v20  ;;  %v1510_v24 = vadd.f32 %v1509_v48, %v1371_v34  ;;  %v1382_v0 = vmul.f32 %v5339_v25, %v5392_v10  ;;  %v1384_v23 = vmul.f32 %v5335_v57, %v5393_v33  ;;  %v1385_v14 = vmul.f32 %v5337_v5, %v5394_v53  ;;  %v5397_v48 = vld [vmem:[#allocation37_spill] sm:$0xff]  ;;  %v5403_v10 = vld [vmem:[#allocation48_spill] sm:$0xff] }
 0x16e   : > { %1501 = vadd.xlane.f32.xlu0 %v1500_v49  ;;  %v1515_v17 = vadd.f32 %v1514_v38, %v1375_v62  ;;  %v1519_v61 = vadd.f32 %v1518_v13, %v1378_v40  ;;  %v1383_v43 = vmul.f32 %v5343_v59, %v5395_v45  ;;  %v1523_v29 = vadd.f32 %v1381_v9, %v1380_v36  ;;  %v5400_v62 = vld [vmem:[#allocation39_spill] sm:$0xff]  ;;  %v5401_v38 = vld [vmem:[#allocation49_spill] sm:$0xff]  ;;  %v5402_v13 = vld [vmem:[#allocation50_spill] sm:$0xff] }
 0x16f   : > { %v1386_v20 = vmul.f32 %v5339_v25, %v5396_v35  ;;  %v1528_v34 = vadd.f32 %v1385_v14, %v1384_v23  ;;  %v1388_v7 = vmul.f32 %v5335_v57, %v5397_v48  ;;  %v1389_v6 = vmul.f32 %v5337_v5, %v5398_v31  ;;  %v5405_v23 = vld [vmem:[#allocation45_spill] sm:$0xff]  ;;  %v5406_v14 = vld [vmem:[#allocation52_spill] sm:$0xff] }
 0x170   : > { %v1520_v22 = vadd.f32 %v1519_v61, %v1379_v30  ;;  %v1524_v55 = vadd.f32 %v1523_v29, %v1382_v0  ;;  %v1387_v49 = vmul.f32 %v5343_v59, %v5399_v8  ;;  %v1390_v40 = vmul.f32 %v5339_v25, %v5400_v62  ;;  %v5404_v0 = vld [vmem:[#allocation51_spill] sm:$0xff]  ;;  %v5407_v29 = vld [vmem:[#allocation46_spill] sm:$0xff]  ;;  %v5409_v48 = vld [vmem:[#allocation57_spill] sm:$0xff] }
 0x171   : > { %1506 = vadd.xlane.f32.xlu1 %v1505_v56  ;;  %v1529_v16 = vadd.f32 %v1528_v34, %v1386_v20  ;;  %v1533_v36 = vadd.f32 %v1389_v6, %v1388_v7  ;;  %v1392_v19 = vmul.f32 %v5335_v57, %v5401_v38  ;;  %v1393_v46 = vmul.f32 %v5337_v5, %v5402_v13 }
 0x172   : > { %1511 = vadd.xlane.f32.xlu0 %v1510_v24  ;;  %v1525_v9 = vadd.f32 %v1524_v55, %v1383_v43  ;;  %v1391_v30 = vmul.f32 %v5343_v59, %v5403_v10  ;;  %v1394_v33 = vmul.f32 %v5339_v25, %v5404_v0  ;;  %v1396_v53 = vmul.f32 %v5335_v57, %v5405_v23  ;;  %v5408_v24 = vld [vmem:[#allocation47_spill] sm:$0xff]  ;;  %v5410_v55 = vld [vmem:[#allocation56_spill] sm:$0xff] }
 0x173   : > { %v1534_v56 = vadd.f32 %v1533_v36, %v1390_v40  ;;  %v1395_v61 = vmul.f32 %v5343_v59, %v5406_v14  ;;  %v1538_v45 = vadd.f32 %v1393_v46, %v1392_v19  ;;  %v1397_v35 = vmul.f32 %v5337_v5, %v5407_v29  ;;  %v5411_v40 = vld [vmem:[#allocation58_spill] sm:$0xff]  ;;  %v5412_v36 = vld [vmem:[#allocation60_spill] sm:$0xff]  ;;  %v5413_v19 = vld [vmem:[#allocation53_spill] sm:$0xff] }
 0x174   : > { %v1530_v20 = vadd.f32 %v1529_v16, %v1387_v49  ;;  %v1398_v43 = vmul.f32 %v5339_v25, %v5408_v24  ;;  %v1400_v34 = vmul.f32 %v5335_v57, %v3959_v58  ;;  %v1401_v7 = vmul.f32 %v5337_v5, %v5409_v48  ;;  %v5418_v29 = vld [vmem:[#allocation65_spill] sm:$0xff]  ;;  %v5419_v24 = vld [vmem:[#allocation67_spill] sm:$0xff]  ;;  %v5420_v48 = vld [vmem:[#allocation66_spill] sm:$0xff] }
 0x175   : > { %1516 = vadd.xlane.f32.xlu1 %v1515_v17  ;;  %v1535_v31 = vadd.f32 %v1534_v56, %v1391_v30  ;;  %v1539_v6 = vadd.f32 %v1538_v45, %v1394_v33  ;;  %v1399_v8 = vmul.f32 %v5343_v59, %v5410_v55  ;;  %v1543_v62 = vadd.f32 %v1397_v35, %v1396_v53  ;;  %v5414_v17 = vld [vmem:[#allocation59_spill] sm:$0xff]  ;;  %v5415_v30 = vld [vmem:[#allocation54_spill] sm:$0xff]  ;;  %v5416_v53 = vld [vmem:[#allocation64_spill] sm:$0xff] }
 0x176   : > { %1521 = vadd.xlane.f32.xlu0 %v1520_v22  ;;  %v1402_v49 = vmul.f32 %v5339_v25, %v5411_v40  ;;  %v1548_v16 = vadd.f32 %v1401_v7, %v1400_v34  ;;  %v1404_v38 = vmul.f32 %v5335_v57, %v5412_v36  ;;  %v1405_v58 = vmul.f32 %v5337_v5, %v5413_v19  ;;  %v5417_v45 = vld [vmem:[#allocation55_spill] sm:$0xff]  ;;  %v5423_v36 = vld [vmem:[#allocation62_spill] sm:$0xff] }
 0x177   : > { %v1540_v13 = vadd.f32 %v1539_v6, %v1395_v61  ;;  %v1544_v46 = vadd.f32 %v1543_v62, %v1398_v43  ;;  %v1403_v10 = vmul.f32 %v5343_v59, %v5414_v17  ;;  %v1406_v0 = vmul.f32 %v5339_v25, %v5415_v30  ;;  %v5421_v6 = vld [vmem:[#allocation68_spill] sm:$0xff] }
 0x178   : > { %v1549_v33 = vadd.f32 %v1548_v16, %v1402_v49  ;;  %v1553_v22 = vadd.f32 %v1405_v58, %v1404_v38  ;;  %v1408_v23 = vmul.f32 %v5335_v57, %v4037_v60  ;;  %v1409_v56 = vmul.f32 %v5337_v5, %v5416_v53 }
 0x179   : > { %1526 = vadd.xlane.f32.xlu1 %v1525_v9  ;;  %v1545_v14 = vadd.f32 %v1544_v46, %v1399_v8  ;;  %v1407_v61 = vmul.f32 %v5343_v59, %v5417_v45  ;;  %v1410_v35 = vmul.f32 %v5339_v25, %v5418_v29  ;;  %v1412_v43 = vmul.f32 %v5335_v57, %v5419_v24  ;;  %v5422_v8 = vld [vmem:[#allocation61_spill] sm:$0xff]  ;;  %v1153_v24 = vpop.xlane.xlu0 %1152 }
 0x17a   : > { %1531 = vadd.xlane.f32.xlu0 %v1530_v20  ;;  %v1554_v34 = vadd.f32 %v1553_v22, %v1406_v0  ;;  %v1411_v7 = vmul.f32 %v5343_v59, %v5420_v48  ;;  %v1558_v60 = vadd.f32 %v1409_v56, %v1408_v23  ;;  %v1413_v55 = vmul.f32 %v5337_v5, %v5421_v6  ;;  %v5426_v6 = vld [vmem:[#allocation73_spill] sm:$0xff] }
 0x17b   : > { %v1550_v9 = vadd.f32 %v1549_v33, %v1403_v10  ;;  %v1414_v62 = vmul.f32 %v5339_v25, %v5422_v8  ;;  %v1416_v40 = vmul.f32 %v5335_v57, %v4115_v15  ;;  %v1417_v49 = vmul.f32 %v5337_v5, %v4119_v37 }
 0x17c   : > { %v1555_v16 = vadd.f32 %v1554_v34, %v1407_v61  ;;  %v1559_v20 = vadd.f32 %v1558_v60, %v1410_v35  ;;  %v1415_v38 = vmul.f32 %v5343_v59, %v5423_v36  ;;  %v1563_v19 = vadd.f32 %v1413_v55, %v1412_v43  ;;  %v5427_v55 = vld [vmem:[#allocation75_spill] sm:$0xff]  ;;  %v5430_v36 = vld [vmem:[#allocation70_spill] sm:$0xff] }
 0x17d   : > { %1536 = vadd.xlane.f32.xlu1 %v1535_v31  ;;  %v1418_v58 = vmul.f32 %v5339_v25, %v4123_v26  ;;  %v1568_v46 = vadd.f32 %v1417_v49, %v1416_v40  ;;  %v1420_v17 = vmul.f32 %v5335_v57, %v4136_v52  ;;  %v1421_v15 = vmul.f32 %v5337_v5, %v4144_v4  ;;  %v5428_v40 = vld [vmem:[#allocation76_spill] sm:$0xff] }
 0x17e   : > { %1541 = vadd.xlane.f32.xlu0 %v1540_v13  ;;  %v1560_v10 = vadd.f32 %v1559_v20, %v1411_v7  ;;  %v1564_v37 = vadd.f32 %v1563_v19, %v1414_v62  ;;  %v1419_v30 = vmul.f32 %v5343_v59, %v4128_v28  ;;  %v1422_v0 = vmul.f32 %v5339_v25, %v4148_v21  ;;  %v5425_v7 = vld [vmem:[#allocation63_spill] sm:$0xff] }
 0x17f   : > { %v1569_v31 = vadd.f32 %v1568_v46, %v1418_v58  ;;  %v1573_v33 = vadd.f32 %v1421_v15, %v1420_v17  ;;  %v1424_v26 = vmul.f32 %v5335_v57, %v4165_v54  ;;  %v1425_v52 = vmul.f32 %v5337_v5, %v4171_v51  ;;  %v5431_v58 = vld [vmem:[#allocation74_spill] sm:$0xff]  ;;  %v1158_v15 = vpop.xlane.xlu0 %1157 }
 0x180   : > { %v1565_v22 = vadd.f32 %v1564_v37, %v1415_v38  ;;  %v1423_v4 = vmul.f32 %v5343_v59, %v4153_v44  ;;  %v1426_v13 = vmul.f32 %v5339_v25, %v4175_v2  ;;  %v1428_v28 = vmul.f32 %v5335_v57, %v4190_v39 }
 0x181   : > { %1546 = vadd.xlane.f32.xlu1 %v1545_v14  ;;  %v1570_v21 = vadd.f32 %v1569_v31, %v1419_v30  ;;  %v1574_v23 = vadd.f32 %v1573_v33, %v1422_v0  ;;  %v1578_v53 = vadd.f32 %v1425_v52, %v1424_v26  ;;  %v1429_v54 = vmul.f32 %v5337_v5, %v4196_v41 }
 0x182   : > { %1551 = vadd.xlane.f32.xlu0 %v1550_v9  ;;  %v1427_v51 = vmul.f32 %v5343_v59, %v4178_v32  ;;  %v1430_v44 = vmul.f32 %v5339_v25, %v4200_v1  ;;  %v1432_v2 = vmul.f32 %v5335_v57, %v4215_v47  ;;  %v1433_v39 = vmul.f32 %v5337_v5, %v4221_v50 }
 0x183   : > { %v1575_v56 = vadd.f32 %v1574_v23, %v1423_v4  ;;  %v1579_v14 = vadd.f32 %v1578_v53, %v1426_v13  ;;  %v1431_v45 = vmul.f32 %v5343_v59, %v4203_v12  ;;  %v1583_v61 = vadd.f32 %v1429_v54, %v1428_v28 }
 0x184   : > { %v1434_v41 = vmul.f32 %v5339_v25, %v4225_v11  ;;  %v1588_v29 = vadd.f32 %v1433_v39, %v1432_v2  ;;  %v1436_v32 = vmul.f32 %v5335_v57, %v4240_v42  ;;  %v1437_v1 = vmul.f32 %v5337_v5, %v4246_v27  ;;  %v5424_v42 = vld [vmem:[#allocation72_spill] sm:$0xff] }
 0x185   : > { %1556 = vadd.xlane.f32.xlu1 %v1555_v16  ;;  %v1580_v47 = vadd.f32 %v1579_v14, %v1427_v51  ;;  %v1584_v35 = vadd.f32 %v1583_v61, %v1430_v44  ;;  %v1435_v50 = vmul.f32 %v5343_v59, %v4228_v18  ;;  %v1438_v12 = vmul.f32 %v5339_v25, %v4250_v3  ;;  %v5429_v16 = vld [vmem:[#allocation69_spill] sm:$0xff] }
 0x186   : > { %1561 = vadd.xlane.f32.xlu0 %v1560_v10  ;;  %v1589_v43 = vadd.f32 %v1588_v29, %v1434_v41  ;;  %v1593_v11 = vadd.f32 %v1437_v1, %v1436_v32  ;;  %v1440_v34 = vmul.f32 %v5335_v57, %v4265_v63  ;;  %v1441_v48 = vmul.f32 %v5337_v5, %v5424_v42  ;;  %v1148_v63 = vpop.xlane.xlu1 %1147 }
 0x187   : > { %v1585_v27 = vadd.f32 %v1584_v35, %v1431_v45  ;;  %v1439_v60 = vmul.f32 %v5343_v59, %v5425_v7  ;;  %v1442_v18 = vmul.f32 %v5339_v25, %v5426_v6  ;;  %v1444_v3 = vmul.f32 %v5335_v57, %v5427_v55 }
 0x188   : > { %v1590_v9 = vadd.f32 %v1589_v43, %v1435_v50  ;;  %v1594_v8 = vadd.f32 %v1593_v11, %v1438_v12  ;;  %v1598_v62 = vadd.f32 %v1441_v48, %v1440_v34  ;;  %v1445_v49 = vmul.f32 %v5337_v5, %v5428_v40  ;;  %v2446_v48 = vld [vmem:[%s2553_s23 + $0x10] sm:$0xff] }
 0x189   : > { %1566 = vadd.xlane.f32.xlu1 %v1565_v22  ;;  %v1446_v20 = vmul.f32 %v5339_v25, %v5429_v16  ;;  %v1447_v38 = vmul.f32 %v5343_v59, %v5430_v36  ;;  %v1443_v46 = vmul.f32 %v5343_v59, %v5431_v58  ;;  %v1168_v25 = vpop.xlane.xlu0 %1167  ;;  %v2444_v22 = vld [vmem:[%s2553_s23 + $0x8] sm:$0xff]  ;;  %v2450_v36 = vld [vmem:[%s2553_s23 + $0x30] sm:$0xff] }
 0x18a   : > { %1571 = vadd.xlane.f32.xlu0 %v1570_v21  ;;  %v1595_v19 = vadd.f32 %v1594_v8, %v1439_v60  ;;  %v1599_v57 = vadd.f32 %v1598_v62, %v1442_v18  ;;  %v1603_v17 = vadd.f32 %v1445_v49, %v1444_v3  ;;  %v1163_v30 = vpop.xlane.xlu1 %1162  ;;  %v1610_v4 = vmul.f32 %v2444_v22, %v1153_v24  ;;  %v2445_v21 = vld [vmem:[%s2553_s23] sm:$0xff]  ;;  %v2447_v18 = vld [vmem:[%s2553_s23 + $0x18] sm:$0xff] }
 0x18b   : > { %v1609_v23 = vmul.f32 %v2445_v21, %v1148_v63  ;;  %v1612_v55 = vmul.f32 %v2447_v18, %v1163_v30  ;;  %v2449_v63 = vld [vmem:[%s2553_s23 + $0x28] sm:$0xff] }
 0x18c   : > { %v1600_v10 = vadd.f32 %v1599_v57, %v1443_v46  ;;  %v1604_v37 = vadd.f32 %v1603_v17, %v1446_v20  ;;  %v2451_v57 = vld [vmem:[%s2553_s23 + $0x38] sm:$0xff] }
 0x18d   : > { %1576 = vadd.xlane.f32.xlu1 %v1575_v56  ;;  %v4573_v31 = vpop.xlane.xlu0 %1177 }
 0x18e   : > { %1581 = vadd.xlane.f32.xlu0 %v1580_v47  ;;  %v1605_v5 = vadd.f32 %v1604_v37, %v1447_v38  ;;  %v4571_v0 = vpop.xlane.xlu1 %1172  ;;  %v1615_v38 = vmul.f32 %v2450_v36, %v4573_v31 }
 0x18f   : > { %v1614_v16 = vmul.f32 %v2449_v63, %v4571_v0 }
 0x191   : > { %1586 = vadd.xlane.f32.xlu1 %v1585_v27  ;;  %v4577_v33 = vpop.xlane.xlu0 %1187  ;;  %v1611_v27 = vmul.f32 %v2446_v48, %v1158_v15 }
 0x192   : > { %1591 = vadd.xlane.f32.xlu0 %v1590_v9  ;;  %v4575_v59 = vpop.xlane.xlu1 %1182  ;;  %v2448_v9 = vld [vmem:[%s2553_s23 + $0x20] sm:$0xff] }
 0x193   : > { %v1613_v8 = vmul.f32 %v2448_v9, %v1168_v25  ;;  %v1616_v17 = vmul.f32 %v2451_v57, %v4575_v59  ;;  %v2453_v59 = vld [vmem:[%s2553_s23 + $0x48] sm:$0xff] }
 0x195   : > { %1596 = vadd.xlane.f32.xlu1 %v1595_v19  ;;  %v4581_v52 = vpop.xlane.xlu0 %1197 }
 0x196   : > { %1601 = vadd.xlane.f32.xlu0 %v1600_v10  ;;  %v4579_v26 = vpop.xlane.xlu1 %1192 }
 0x199   : > { %1606 = vadd.xlane.f32.xlu1 %v1605_v5  ;;  %v2452_v5 = vld [vmem:[%s2553_s23 + $0x40] sm:$0xff] }
 0x19a   : > { %v4584_v13 = vpop.xlane.xlu1 %1202  ;;  %v4586_v28 = vpop.xlane.xlu0 %1207  ;;  %v1617_v30 = vmul.f32 %v2452_v5, %v4577_v33 }
 0x19e   : > { %v4591_v53 = vpop.xlane.xlu1 %1212 }
 0x1a3   : > { %v4593_v54 = vpop.xlane.xlu0 %1217 }
 0x1a5   : > { %v4595_v51 = vpop.xlane.xlu1 %1222 }
 0x1aa   : > { %1675 = vrot.lane.b32.xlu1 %v1610_v4, %s2502_s6 }
 0x1ab   : > { %v4597_v44 = vpop.xlane.xlu0 %1227 }
 0x1ac   : > { %1673 = vrot.lane.b32.xlu0 %v1609_v23, %s2502_s6  ;;  %v2454_v23 = vld [vmem:[%s2553_s23 + $0x50] sm:$0xff] }
 0x1ae   : > { %v4599_v2 = vpop.xlane.xlu1 %1232 }
 0x1b4   : > { %v4601_v39 = vpop.xlane.xlu0 %1237 }
 0x1b6   : > { %v4603_v56 = vpop.xlane.xlu1 %1242 }
 0x1bb   : > { %v4605_v14 = vpop.xlane.xlu0 %1247 }
 0x1bf   : > { %v4607_v45 = vpop.xlane.xlu1 %1252 }
 0x1c4   : > { %v4609_v61 = vpop.xlane.xlu0 %1257 }
 0x1c7   : > { %v4611_v41 = vpop.xlane.xlu1 %1262 }
 0x1cc   : > { %v4613_v29 = vpop.xlane.xlu0 %1267 }
 0x1ce   : > { %v4615_v32 = vpop.xlane.xlu1 %1272 }
 0x1d1   : > { %v4617_v1 = vpop.xlane.xlu0 %1277 }
 0x1d5   : > { %v4619_v47 = vpop.xlane.xlu1 %1282 }
 0x1d8   : > { %v4621_v35 = vpop.xlane.xlu0 %1287 }
 0x1db   : > { %v4623_v50 = vpop.xlane.xlu1 %1292 }
 0x1de   : > { %v4625_v12 = vpop.xlane.xlu0 %1297 }
 0x1e2   : > { %v4627_v24 = vpop.xlane.xlu1 %1302  ;;  %v1452_v43 = vpop.xlane.xlu0 %1451 }
 0x1e3   : > { %v1846_v11 = vmul.f32 %v2445_v21, %v1452_v43  ;;  %v1619_v43 = vmul.f32 %v2454_v23, %v4581_v52 }
 0x1e5   : > { %1910 = vrot.lane.b32.xlu1 %v1846_v11, %s2503_s7 }
 0x1e6   : > { %v1457_v34 = vpop.xlane.xlu1 %1456  ;;  %v1462_v7 = vpop.xlane.xlu0 %1461 }
 0x1e7   : > { %v1847_v42 = vmul.f32 %v2444_v22, %v1457_v34  ;;  %v1848_v60 = vmul.f32 %v2446_v48, %v1462_v7  ;;  %v1618_v22 = vmul.f32 %v2453_v59, %v4579_v26  ;;  %v2455_v26 = vld [vmem:[%s2553_s23 + $0x58] sm:$0xff] }
 0x1e8   : > { %v1620_v48 = vmul.f32 %v2455_v26, %v4584_v13  ;;  %v2457_v13 = vld [vmem:[%s2553_s23 + $0x68] sm:$0xff] }
 0x1e9   : > { %1912 = vrot.lane.b32.xlu0 %v1847_v42, %s2503_s7  ;;  %2082 = vrot.lane.b32.xlu1 %v1846_v11, %s2502_s6 }
 0x1ea   : > { %v1467_v6 = vpop.xlane.xlu1 %1466 }
 0x1eb   : > { %v1849_v3 = vmul.f32 %v2447_v18, %v1467_v6  ;;  %v1472_v62 = vpop.xlane.xlu0 %1471 }
 0x1ec   : > { %v1850_v40 = vmul.f32 %v2448_v9, %v1472_v62  ;;  %v1622_v9 = vmul.f32 %v2457_v13, %v4591_v53 }
 0x1ed   : > { %2084 = vrot.lane.b32.xlu0 %v1847_v42, %s2502_s6  ;;  %1677 = vrot.lane.b32.xlu1 %v1611_v27, %s2502_s6 }
 0x1ee   : > { %v1477_v49 = vpop.xlane.xlu1 %1476 }
 0x1ef   : > { %v1851_v20 = vmul.f32 %v2449_v63, %v1477_v49  ;;  %v1482_v19 = vpop.xlane.xlu0 %1481 }
 0x1f0   : > { %v1852_v46 = vmul.f32 %v2450_v36, %v1482_v19 }
 0x1f1   : > { %1914 = vrot.lane.b32.xlu0 %v1848_v60, %s2503_s7  ;;  %2086 = vrot.lane.b32.xlu1 %v1848_v60, %s2502_s6  ;;  %v2456_v60 = vld [vmem:[%s2553_s23 + $0x60] sm:$0xff] }
 0x1f2   : > { %v1487_v58 = vpop.xlane.xlu1 %1486  ;;  %v1621_v6 = vmul.f32 %v2456_v60, %v4586_v28 }
 0x1f3   : > { %v1853_v15 = vmul.f32 %v2451_v57, %v1487_v58  ;;  %v1492_v37 = vpop.xlane.xlu0 %1491  ;;  %v2460_v58 = vld [vmem:[%s2553_s23 + $0x80] sm:$0xff] }
 0x1f4   : > { %v1854_v0 = vmul.f32 %v2452_v5, %v1492_v37 }
 0x1f5   : > { %1679 = vrot.lane.b32.xlu0 %v1612_v55, %s2502_s6  ;;  %1916 = vrot.lane.b32.xlu1 %v1849_v3, %s2503_s7 }
 0x1f6   : > { %v1497_v10 = vpop.xlane.xlu1 %1496 }
 0x1f7   : > { %v1502_v31 = vpop.xlane.xlu0 %1501  ;;  %v1855_v4 = vmul.f32 %v2453_v59, %v1497_v10  ;;  %v2463_v59 = vld [vmem:[%s2553_s23 + $0x98] sm:$0xff] }
 0x1f8   : > { %v1856_v34 = vmul.f32 %v2454_v23, %v1502_v31 }
 0x1f9   : > { %2088 = vrot.lane.b32.xlu0 %v1849_v3, %s2502_s6  ;;  %1681 = vrot.lane.b32.xlu1 %v1613_v8, %s2502_s6 }
 0x1fa   : > { %v1507_v25 = vpop.xlane.xlu1 %1506 }
 0x1fb   : > { %v1512_v33 = vpop.xlane.xlu0 %1511  ;;  %v1857_v27 = vmul.f32 %v2455_v26, %v1507_v25 }
 0x1fc   : > { %v1858_v55 = vmul.f32 %v2456_v60, %v1512_v33  ;;  %v2464_v33 = vld [vmem:[%s2553_s23 + $0xa0] sm:$0xff] }
 0x1fd   : > { %1918 = vrot.lane.b32.xlu0 %v1850_v40, %s2503_s7  ;;  %2090 = vrot.lane.b32.xlu1 %v1850_v40, %s2502_s6  ;;  %v2458_v40 = vld [vmem:[%s2553_s23 + $0x70] sm:$0xff]  ;;  %v1629_v23 = vmul.f32 %v2464_v33, %v4605_v14 }
 0x1fe   : > { %v1517_v21 = vpop.xlane.xlu1 %1516  ;;  %v1623_v49 = vmul.f32 %v2458_v40, %v4593_v54 }
 0x1ff   : > { %v1522_v42 = vpop.xlane.xlu0 %1521  ;;  %v1859_v8 = vmul.f32 %v2457_v13, %v1517_v21 }
 0x201   : > { %1683 = vrot.lane.b32.xlu0 %v1614_v16, %s2502_s6  ;;  %1920 = vrot.lane.b32.xlu1 %v1851_v20, %s2503_s7  ;;  %v1860_v16 = vmul.f32 %v2458_v40, %v1522_v42 }
 0x202   : > { %v1527_v11 = vpop.xlane.xlu1 %1526 }
 0x203   : > { %v1532_v52 = vpop.xlane.xlu0 %1531 }
 0x205   : > { %2092 = vrot.lane.b32.xlu0 %v1851_v20, %s2502_s6  ;;  %1685 = vrot.lane.b32.xlu1 %v1615_v38, %s2502_s6  ;;  %v2459_v20 = vld [vmem:[%s2553_s23 + $0x78] sm:$0xff] }
 0x206   : > { %v1537_v7 = vpop.xlane.xlu1 %1536  ;;  %v1624_v36 = vmul.f32 %v2459_v20, %v4595_v51  ;;  %v1861_v38 = vmul.f32 %v2459_v20, %v1527_v11  ;;  %v1862_v51 = vmul.f32 %v2460_v58, %v1532_v52  ;;  %v2465_v52 = vld [vmem:[%s2553_s23 + $0xa8] sm:$0xff] }
 0x207   : > { %v1542_v3 = vpop.xlane.xlu0 %1541  ;;  %v1630_v60 = vmul.f32 %v2465_v52, %v4607_v45 }
 0x209   : > { %1922 = vrot.lane.b32.xlu0 %v1852_v46, %s2503_s7  ;;  %2094 = vrot.lane.b32.xlu1 %v1852_v46, %s2502_s6  ;;  %v1625_v46 = vmul.f32 %v2460_v58, %v4597_v44 }
 0x20a   : > { %v1547_v18 = vpop.xlane.xlu1 %1546 }
 0x20b   : > { %v1552_v28 = vpop.xlane.xlu0 %1551 }
 0x20d   : > { %1687 = vrot.lane.b32.xlu0 %v1616_v17, %s2502_s6  ;;  %1924 = vrot.lane.b32.xlu1 %v1853_v15, %s2503_s7 }
 0x20e   : > { %v4687_v62 = vpop.xlane.xlu1 %1556 }
 0x20f   : > { %v4697_v53 = vpop.xlane.xlu0 %1561 }
 0x211   : > { %2096 = vrot.lane.b32.xlu0 %v1853_v15, %s2502_s6  ;;  %1689 = vrot.lane.b32.xlu1 %v1617_v30, %s2502_s6  ;;  %v2461_v15 = vld [vmem:[%s2553_s23 + $0x88] sm:$0xff]  ;;  %v2462_v30 = vld [vmem:[%s2553_s23 + $0x90] sm:$0xff] }
 0x212   : > { %v4694_v63 = vpop.xlane.xlu1 %1566  ;;  %v1626_v10 = vmul.f32 %v2461_v15, %v4599_v2  ;;  %v1863_v37 = vmul.f32 %v2461_v15, %v1537_v7  ;;  %v1627_v25 = vmul.f32 %v2462_v30, %v4601_v39  ;;  %v1864_v2 = vmul.f32 %v2462_v30, %v1542_v3  ;;  %v2467_v30 = vld [vmem:[%s2553_s23 + $0xb8] sm:$0xff] }
 0x213   : > { %v4707_v54 = vpop.xlane.xlu0 %1571 }
 0x215   : > { %1926 = vrot.lane.b32.xlu0 %v1854_v0, %s2503_s7  ;;  %2098 = vrot.lane.b32.xlu1 %v1854_v0, %s2502_s6 }
 0x216   : > { %v4703_v19 = vpop.xlane.xlu1 %1576 }
 0x217   : > { %v4715_v17 = vpop.xlane.xlu0 %1581 }
 0x219   : > { %1691 = vrot.lane.b32.xlu0 %v1618_v22, %s2502_s6  ;;  %1928 = vrot.lane.b32.xlu1 %v1855_v4, %s2503_s7  ;;  %v1628_v22 = vmul.f32 %v2463_v59, %v4603_v56  ;;  %v1866_v56 = vmul.f32 %v2464_v33, %v1552_v28 }
 0x21a   : > { %v4712_v57 = vpop.xlane.xlu1 %1586 }
 0x21b   : > { %v4725_v44 = vpop.xlane.xlu0 %1591 }
 0x21d   : > { %2100 = vrot.lane.b32.xlu0 %v1855_v4, %s2502_s6  ;;  %1693 = vrot.lane.b32.xlu1 %v1619_v43, %s2502_s6  ;;  %v1865_v4 = vmul.f32 %v2463_v59, %v1547_v18  ;;  %v1867_v18 = vmul.f32 %v2465_v52, %v4687_v62  ;;  %v1869_v59 = vmul.f32 %v2467_v30, %v4694_v63  ;;  %v2469_v52 = vld [vmem:[%s2553_s23 + $0xc8] sm:$0xff] }
 0x21e   : > { %v4721_v5 = vpop.xlane.xlu1 %1596 }
 0x21f   : > { %v4733_v31 = vpop.xlane.xlu0 %1601 }
 0x221   : > { %1930 = vrot.lane.b32.xlu0 %v1856_v34, %s2503_s7  ;;  %2102 = vrot.lane.b32.xlu1 %v1856_v34, %s2502_s6 }
 0x222   : > { %v4730_v0 = vpop.xlane.xlu1 %1606 }
 0x223   : > { %v1674_v39 = vpop.permute.xlu0 %1673 }
 0x225   : > { %1695 = vrot.lane.b32.xlu0 %v1620_v48, %s2502_s6  ;;  %1932 = vrot.lane.b32.xlu1 %v1857_v27, %s2503_s7 }
 0x226   : > { %v1676_v21 = vpop.permute.xlu1 %1675 }
 0x227   : > { %v1771_v48 = vsel %vm1769_vm0, %v1676_v21, 0.0 }
 0x229   : > { %2104 = vrot.lane.b32.xlu0 %v1857_v27, %s2502_s6  ;;  %1697 = vrot.lane.b32.xlu1 %v1621_v6, %s2502_s6  ;;  %v1770_v27 = vsel %vm1769_vm0, %v1674_v39, 0.0 }
 0x22d   : > { %1934 = vrot.lane.b32.xlu0 %v1858_v55, %s2503_s7  ;;  %2106 = vrot.lane.b32.xlu1 %v1858_v55, %s2502_s6  ;;  %v1772_v55 = vadd.f32 %v1771_v48, %v1770_v27 }
 0x231   : > { %1699 = vrot.lane.b32.xlu0 %v1622_v9, %s2502_s6  ;;  %1936 = vrot.lane.b32.xlu1 %v1859_v8, %s2503_s7 }
 0x235   : > { %2108 = vrot.lane.b32.xlu0 %v1859_v8, %s2502_s6  ;;  %1701 = vrot.lane.b32.xlu1 %v1623_v49, %s2502_s6  ;;  %v2466_v49 = vld [vmem:[%s2553_s23 + $0xb0] sm:$0xff] }
 0x236   : > { %v1868_v58 = vmul.f32 %v2466_v49, %v4697_v53 }
 0x239   : > { %1938 = vrot.lane.b32.xlu0 %v1860_v16, %s2503_s7  ;;  %2110 = vrot.lane.b32.xlu1 %v1860_v16, %s2502_s6  ;;  %v1631_v16 = vmul.f32 %v2466_v49, %v4609_v61 }
 0x23d   : > { %1703 = vrot.lane.b32.xlu0 %v1624_v36, %s2502_s6  ;;  %1940 = vrot.lane.b32.xlu1 %v1861_v38, %s2503_s7 }
 0x241   : > { %2112 = vrot.lane.b32.xlu0 %v1861_v38, %s2502_s6  ;;  %1705 = vrot.lane.b32.xlu1 %v1625_v46, %s2502_s6 }
 0x245   : > { %1942 = vrot.lane.b32.xlu0 %v1862_v51, %s2503_s7  ;;  %2114 = vrot.lane.b32.xlu1 %v1862_v51, %s2502_s6 }
 0x249   : > { %1707 = vrot.lane.b32.xlu0 %v1626_v10, %s2502_s6  ;;  %1944 = vrot.lane.b32.xlu1 %v1863_v37, %s2503_s7 }
 0x24d   : > { %2116 = vrot.lane.b32.xlu0 %v1863_v37, %s2502_s6  ;;  %1709 = vrot.lane.b32.xlu1 %v1627_v25, %s2502_s6  ;;  %v1632_v25 = vmul.f32 %v2467_v30, %v4611_v41 }
 0x251   : > { %1946 = vrot.lane.b32.xlu0 %v1864_v2, %s2503_s7  ;;  %2118 = vrot.lane.b32.xlu1 %v1864_v2, %s2502_s6 }
 0x255   : > { %1711 = vrot.lane.b32.xlu0 %v1628_v22, %s2502_s6  ;;  %1948 = vrot.lane.b32.xlu1 %v1865_v4, %s2503_s7 }
 0x257   : > { %v1911_v43 = vpop.permute.xlu1 %1910 }
 0x258   : > { %v2006_v11 = vsel %vm1769_vm0, %v1911_v43, 0.0 }
 0x259   : > { %2120 = vrot.lane.b32.xlu0 %v1865_v4, %s2502_s6  ;;  %1713 = vrot.lane.b32.xlu1 %v1629_v23, %s2502_s6  ;;  %v2468_v23 = vld [vmem:[%s2553_s23 + $0xc0] sm:$0xff] }
 0x25a   : > { %v1633_v43 = vmul.f32 %v2468_v23, %v4613_v29 }
 0x25b   : > { %v1913_v34 = vpop.permute.xlu0 %1912  ;;  %v2083_v26 = vpop.permute.xlu1 %2082 }
 0x25c   : > { %v2007_v42 = vsel %vm1769_vm0, %v1913_v34, 0.0  ;;  %v2178_v14 = vsel %vm1769_vm0, %v2083_v26, 0.0 }
 0x25d   : > { %v2008_v7 = vadd.f32 %v2007_v42, %v2006_v11  ;;  %1950 = vrot.lane.b32.xlu0 %v1866_v56, %s2503_s7  ;;  %2122 = vrot.lane.b32.xlu1 %v1866_v56, %s2502_s6  ;;  %v1870_v42 = vmul.f32 %v2468_v23, %v4707_v54 }
 0x25f   : > { %v2085_v6 = vpop.permute.xlu0 %2084  ;;  %v1678_v13 = vpop.permute.xlu1 %1677 }
 0x260   : > { %v2179_v3 = vsel %vm1769_vm0, %v2085_v6, 0.0  ;;  %v1773_v8 = vsel %vm1769_vm0, %v1678_v13, 0.0 }
 0x261   : > { %v2180_v9 = vadd.f32 %v2179_v3, %v2178_v14  ;;  %1715 = vrot.lane.b32.xlu0 %v1630_v60, %s2502_s6  ;;  %v1774_v28 = vadd.f32 %v1773_v8, %v1772_v55  ;;  %1952 = vrot.lane.b32.xlu1 %v1867_v18, %s2503_s7  ;;  %v1634_v60 = vmul.f32 %v2469_v52, %v4615_v32 }
 0x263   : > { %v1915_v40 = vpop.permute.xlu0 %1914  ;;  %v2087_v62 = vpop.permute.xlu1 %2086 }
 0x264   : > { %v2009_v45 = vsel %vm1769_vm0, %v1915_v40, 0.0  ;;  %v2181_v36 = vsel %vm1769_vm0, %v2087_v62, 0.0 }
 0x265   : > { %v2010_v20 = vadd.f32 %v2009_v45, %v2008_v7  ;;  %2124 = vrot.lane.b32.xlu0 %v1867_v18, %s2502_s6  ;;  %v2182_v38 = vadd.f32 %v2181_v36, %v2180_v9  ;;  %1717 = vrot.lane.b32.xlu1 %v1631_v16, %s2502_s6  ;;  %v1871_v18 = vmul.f32 %v2469_v52, %v4703_v19  ;;  %v2474_v52 = vld [vmem:[%s2553_s23 + $0xf0] sm:$0xff] }
 0x267   : > { %v1680_v46 = vpop.permute.xlu0 %1679  ;;  %v1917_v15 = vpop.permute.xlu1 %1916 }
 0x268   : > { %v1775_v51 = vsel %vm1769_vm0, %v1680_v46, 0.0  ;;  %v2011_v61 = vsel %vm1769_vm0, %v1917_v15, 0.0 }
 0x269   : > { %v1776_v10 = vadd.f32 %v1775_v51, %v1774_v28  ;;  %1954 = vrot.lane.b32.xlu0 %v1868_v58, %s2503_s7  ;;  %v2012_v37 = vadd.f32 %v2011_v61, %v2010_v20  ;;  %2126 = vrot.lane.b32.xlu1 %v1868_v58, %s2502_s6  ;;  %v2470_v28 = vld [vmem:[%s2553_s23 + $0xd0] sm:$0xff]  ;;  %v2471_v51 = vld [vmem:[%s2553_s23 + $0xd8] sm:$0xff] }
 0x26a   : > { %v1635_v40 = vmul.f32 %v2470_v28, %v4617_v1  ;;  %v1872_v62 = vmul.f32 %v2470_v28, %v4715_v17  ;;  %v1636_v15 = vmul.f32 %v2471_v51, %v4619_v47  ;;  %v1873_v61 = vmul.f32 %v2471_v51, %v4712_v57 }
 0x26b   : > { %v2089_v2 = vpop.permute.xlu0 %2088  ;;  %v1682_v22 = vpop.permute.xlu1 %1681 }
 0x26c   : > { %v2183_v53 = vsel %vm1769_vm0, %v2089_v2, 0.0  ;;  %v1777_v21 = vsel %vm1769_vm0, %v1682_v22, 0.0 }
 0x26d   : > { %v2184_v4 = vadd.f32 %v2183_v53, %v2182_v38  ;;  %1719 = vrot.lane.b32.xlu0 %v1632_v25, %s2502_s6  ;;  %v1778_v39 = vadd.f32 %v1777_v21, %v1776_v10  ;;  %1956 = vrot.lane.b32.xlu1 %v1869_v59, %s2503_s7  ;;  %v2472_v53 = vld [vmem:[%s2553_s23 + $0xe0] sm:$0xff] }
 0x26e   : > { %v1637_v22 = vmul.f32 %v2472_v53, %v4621_v35 }
 0x26f   : > { %v1919_v33 = vpop.permute.xlu0 %1918  ;;  %v2091_v11 = vpop.permute.xlu1 %2090 }
 0x270   : > { %v2013_v41 = vsel %vm1769_vm0, %v1919_v33, 0.0  ;;  %v2185_v56 = vsel %vm1769_vm0, %v2091_v11, 0.0  ;;  %v1874_v33 = vmul.f32 %v2472_v53, %v4725_v44 }
 0x271   : > { %v2014_v63 = vadd.f32 %v2013_v41, %v2012_v37  ;;  %2128 = vrot.lane.b32.xlu0 %v1869_v59, %s2502_s6  ;;  %v2186_v34 = vadd.f32 %v2185_v56, %v2184_v4  ;;  %1721 = vrot.lane.b32.xlu1 %v1633_v43, %s2502_s6  ;;  %v2473_v56 = vld [vmem:[%s2553_s23 + $0xe8] sm:$0xff] }
 0x273   : > { %v1684_v26 = vpop.permute.xlu0 %1683  ;;  %v1921_v27 = vpop.permute.xlu1 %1920 }
 0x274   : > { %v1779_v48 = vsel %vm1769_vm0, %v1684_v26, 0.0  ;;  %v2015_v29 = vsel %vm1769_vm0, %v1921_v27, 0.0  ;;  %v1875_v26 = vmul.f32 %v2473_v56, %v4721_v5 }
 0x275   : > { %v1780_v7 = vadd.f32 %v1779_v48, %v1778_v39  ;;  %1958 = vrot.lane.b32.xlu0 %v1870_v42, %s2503_s7  ;;  %v2016_v14 = vadd.f32 %v2015_v29, %v2014_v63  ;;  %2130 = vrot.lane.b32.xlu1 %v1870_v42, %s2502_s6 }
 0x277   : > { %v2093_v6 = vpop.permute.xlu0 %2092  ;;  %v1686_v55 = vpop.permute.xlu1 %1685 }
 0x278   : > { %v2187_v54 = vsel %vm1769_vm0, %v2093_v6, 0.0  ;;  %v1781_v13 = vsel %vm1769_vm0, %v1686_v55, 0.0  ;;  %v1876_v55 = vmul.f32 %v2474_v52, %v4733_v31 }
 0x279   : > { %v2188_v3 = vadd.f32 %v2187_v54, %v2186_v34  ;;  %1723 = vrot.lane.b32.xlu0 %v1634_v60, %s2502_s6  ;;  %v1782_v9 = vadd.f32 %v1781_v13, %v1780_v7  ;;  %1960 = vrot.lane.b32.xlu1 %v1871_v18, %s2503_s7  ;;  %v1638_v34 = vmul.f32 %v2473_v56, %v4623_v50 }
 0x27a   : > { %v1639_v60 = vmul.f32 %v2474_v52, %v4625_v12 }
 0x27b   : > { %v1923_v8 = vpop.permute.xlu0 %1922  ;;  %v2095_v49 = vpop.permute.xlu1 %2094 }
 0x27c   : > { %v2017_v32 = vsel %vm1769_vm0, %v1923_v8, 0.0  ;;  %v2189_v16 = vsel %vm1769_vm0, %v2095_v49, 0.0 }
 0x27d   : > { %v2018_v19 = vadd.f32 %v2017_v32, %v2016_v14  ;;  %2132 = vrot.lane.b32.xlu0 %v1871_v18, %s2502_s6  ;;  %v2190_v45 = vadd.f32 %v2189_v16, %v2188_v3  ;;  %1725 = vrot.lane.b32.xlu1 %v1635_v40, %s2502_s6  ;;  %v2475_v40 = vld [vmem:[%s2553_s23 + $0xf8] sm:$0xff] }
 0x27e   : > { %v1640_v32 = vmul.f32 %v2475_v40, %v4627_v24 }
 0x27f   : > { %v1688_v20 = vpop.permute.xlu0 %1687  ;;  %v1925_v38 = vpop.permute.xlu1 %1924 }
 0x280   : > { %v1783_v36 = vsel %vm1769_vm0, %v1688_v20, 0.0  ;;  %v2019_v1 = vsel %vm1769_vm0, %v1925_v38, 0.0 }
 0x281   : > { %v1784_v58 = vadd.f32 %v1783_v36, %v1782_v9  ;;  %1962 = vrot.lane.b32.xlu0 %v1872_v62, %s2503_s7  ;;  %v2020_v46 = vadd.f32 %v2019_v1, %v2018_v19  ;;  %2134 = vrot.lane.b32.xlu1 %v1872_v62, %s2502_s6  ;;  %v1877_v19 = vmul.f32 %v2475_v40, %v4730_v0 }
 0x283   : > { %v2097_v10 = vpop.permute.xlu0 %2096  ;;  %v1690_v37 = vpop.permute.xlu1 %1689 }
 0x284   : > { %v2191_v17 = vsel %vm1769_vm0, %v2097_v10, 0.0  ;;  %v1785_v25 = vsel %vm1769_vm0, %v1690_v37, 0.0 }
 0x285   : > { %v2192_v30 = vadd.f32 %v2191_v17, %v2190_v45  ;;  %1727 = vrot.lane.b32.xlu0 %v1636_v15, %s2502_s6  ;;  %v1786_v2 = vadd.f32 %v1785_v25, %v1784_v58  ;;  %1964 = vrot.lane.b32.xlu1 %v1873_v61, %s2503_s7 }
 0x287   : > { %v1927_v59 = vpop.permute.xlu0 %1926  ;;  %v2099_v4 = vpop.permute.xlu1 %2098 }
 0x288   : > { %v2021_v47 = vsel %vm1769_vm0, %v1927_v59, 0.0  ;;  %v2193_v21 = vsel %vm1769_vm0, %v2099_v4, 0.0 }
 0x289   : > { %v2022_v57 = vadd.f32 %v2021_v47, %v2020_v46  ;;  %2136 = vrot.lane.b32.xlu0 %v1873_v61, %s2502_s6  ;;  %v2194_v39 = vadd.f32 %v2193_v21, %v2192_v30  ;;  %1729 = vrot.lane.b32.xlu1 %v1637_v22, %s2502_s6 }
 0x28b   : > { %v1692_v23 = vpop.permute.xlu0 %1691  ;;  %v1929_v41 = vpop.permute.xlu1 %1928 }
 0x28c   : > { %v1787_v43 = vsel %vm1769_vm0, %v1692_v23, 0.0  ;;  %v2023_v35 = vsel %vm1769_vm0, %v1929_v41, 0.0 }
 0x28d   : > { %v1788_v11 = vadd.f32 %v1787_v43, %v1786_v2  ;;  %1966 = vrot.lane.b32.xlu0 %v1874_v33, %s2503_s7  ;;  %v2024_v63 = vadd.f32 %v2023_v35, %v2022_v57  ;;  %2138 = vrot.lane.b32.xlu1 %v1874_v33, %s2502_s6 }
 0x28f   : > { %v2101_v42 = vpop.permute.xlu0 %2100  ;;  %v1694_v48 = vpop.permute.xlu1 %1693 }
 0x290   : > { %v2195_v44 = vsel %vm1769_vm0, %v2101_v42, 0.0  ;;  %v1789_v7 = vsel %vm1769_vm0, %v1694_v48, 0.0 }
 0x291   : > { %v2196_v27 = vadd.f32 %v2195_v44, %v2194_v39  ;;  %1731 = vrot.lane.b32.xlu0 %v1638_v34, %s2502_s6  ;;  %v1790_v29 = vadd.f32 %v1789_v7, %v1788_v11  ;;  %1968 = vrot.lane.b32.xlu1 %v1875_v26, %s2503_s7 }
 0x293   : > { %v1931_v14 = vpop.permute.xlu0 %1930  ;;  %v2103_v6 = vpop.permute.xlu1 %2102 }
 0x294   : > { %v2025_v50 = vsel %vm1769_vm0, %v1931_v14, 0.0  ;;  %v2197_v18 = vsel %vm1769_vm0, %v2103_v6, 0.0 }
 0x295   : > { %v2026_v5 = vadd.f32 %v2025_v50, %v2024_v63  ;;  %2140 = vrot.lane.b32.xlu0 %v1875_v26, %s2502_s6  ;;  %v2198_v54 = vadd.f32 %v2197_v18, %v2196_v27  ;;  %1733 = vrot.lane.b32.xlu1 %v1639_v60, %s2502_s6 }
 0x297   : > { %v1696_v3 = vpop.permute.xlu0 %1695  ;;  %v1933_v9 = vpop.permute.xlu1 %1932 }
 0x298   : > { %v1791_v13 = vsel %vm1769_vm0, %v1696_v3, 0.0  ;;  %v2027_v12 = vsel %vm1769_vm0, %v1933_v9, 0.0 }
 0x299   : > { %v1792_v8 = vadd.f32 %v1791_v13, %v1790_v29  ;;  %1970 = vrot.lane.b32.xlu0 %v1876_v55, %s2503_s7  ;;  %v2028_v28 = vadd.f32 %v2027_v12, %v2026_v5  ;;  %2142 = vrot.lane.b32.xlu1 %v1876_v55, %s2502_s6 }
 0x29b   : > { %v2105_v49 = vpop.permute.xlu0 %2104  ;;  %v1698_v16 = vpop.permute.xlu1 %1697 }
 0x29c   : > { %v2199_v31 = vsel %vm1769_vm0, %v2105_v49, 0.0  ;;  %v1793_v62 = vsel %vm1769_vm0, %v1698_v16, 0.0 }
 0x29d   : > { %v2200_v45 = vadd.f32 %v2199_v31, %v2198_v54  ;;  %1735 = vrot.lane.b32.xlu0 %v1640_v32, %s2502_s6  ;;  %v1794_v20 = vadd.f32 %v1793_v62, %v1792_v8  ;;  %1972 = vrot.lane.b32.xlu1 %v1877_v19, %s2503_s7 }
 0x29f   : > { %v1935_v36 = vpop.permute.xlu0 %1934  ;;  %v2107_v58 = vpop.permute.xlu1 %2106 }
 0x2a0   : > { %v2029_v38 = vsel %vm1769_vm0, %v1935_v36, 0.0  ;;  %v2201_v24 = vsel %vm1769_vm0, %v2107_v58, 0.0 }
 0x2a1   : > { %v2030_v1 = vadd.f32 %v2029_v38, %v2028_v28  ;;  %2144 = vrot.lane.b32.xlu0 %v1877_v19, %s2502_s6  ;;  %v2202_v0 = vadd.f32 %v2201_v24, %v2200_v45 }
 0x2a3   : > { %v1700_v46 = vpop.permute.xlu0 %1699  ;;  %v1937_v15 = vpop.permute.xlu1 %1936 }
 0x2a4   : > { %v1795_v51 = vsel %vm1769_vm0, %v1700_v46, 0.0  ;;  %v2031_v61 = vsel %vm1769_vm0, %v1937_v15, 0.0 }
 0x2a5   : > { %v1796_v10 = vadd.f32 %v1795_v51, %v1794_v20  ;;  %v2032_v17 = vadd.f32 %v2031_v61, %v2030_v1 }
 0x2a7   : > { %v2109_v37 = vpop.permute.xlu0 %2108  ;;  %v1702_v25 = vpop.permute.xlu1 %1701 }
 0x2a8   : > { %v2203_v30 = vsel %vm1769_vm0, %v2109_v37, 0.0  ;;  %v1797_v59 = vsel %vm1769_vm0, %v1702_v25, 0.0 }
 0x2a9   : > { %v2204_v2 = vadd.f32 %v2203_v30, %v2202_v0  ;;  %v1798_v53 = vadd.f32 %v1797_v59, %v1796_v10 }
 0x2ab   : > { %v1939_v22 = vpop.permute.xlu0 %1938  ;;  %v2111_v4 = vpop.permute.xlu1 %2110 }
 0x2ac   : > { %v2033_v47 = vsel %vm1769_vm0, %v1939_v22, 0.0  ;;  %v2205_v21 = vsel %vm1769_vm0, %v2111_v4, 0.0 }
 0x2ad   : > { %v2034_v57 = vadd.f32 %v2033_v47, %v2032_v17  ;;  %v2206_v39 = vadd.f32 %v2205_v21, %v2204_v2 }
 0x2af   : > { %v1704_v33 = vpop.permute.xlu0 %1703  ;;  %v1941_v43 = vpop.permute.xlu1 %1940 }
 0x2b0   : > { %v1799_v23 = vsel %vm1769_vm0, %v1704_v33, 0.0  ;;  %v2035_v11 = vsel %vm1769_vm0, %v1941_v43, 0.0 }
 0x2b1   : > { %v1800_v41 = vadd.f32 %v1799_v23, %v1798_v53  ;;  %v2036_v35 = vadd.f32 %v2035_v11, %v2034_v57 }
 0x2b3   : > { %v2113_v63 = vpop.permute.xlu0 %2112  ;;  %v1706_v34 = vpop.permute.xlu1 %1705 }
 0x2b4   : > { %v2207_v56 = vsel %vm1769_vm0, %v2113_v63, 0.0  ;;  %v1801_v20 = vsel %vm1769_vm0, %v1706_v34, 0.0 }
 0x2b5   : > { %v2208_v42 = vadd.f32 %v2207_v56, %v2206_v39  ;;  %v1802_v1 = vadd.f32 %v1801_v20, %v1800_v41 }
 0x2b7   : > { %v1943_v26 = vpop.permute.xlu0 %1942  ;;  %v2115_v44 = vpop.permute.xlu1 %2114 }
 0x2b8   : > { %v2037_v38 = vsel %vm1769_vm0, %v1943_v26, 0.0  ;;  %v2209_v10 = vsel %vm1769_vm0, %v2115_v44, 0.0 }
 0x2b9   : > { %v2038_v46 = vadd.f32 %v2037_v38, %v2036_v35  ;;  %v2210_v22 = vadd.f32 %v2209_v10, %v2208_v42 }
 0x2bb   : > { %v1708_v48 = vpop.permute.xlu0 %1707  ;;  %v1945_v27 = vpop.permute.xlu1 %1944 }
 0x2bc   : > { %v1803_v58 = vsel %vm1769_vm0, %v1708_v48, 0.0  ;;  %v2039_v24 = vsel %vm1769_vm0, %v1945_v27, 0.0 }
 0x2bd   : > { %v1804_v61 = vadd.f32 %v1803_v58, %v1802_v1  ;;  %v2040_v37 = vadd.f32 %v2039_v24, %v2038_v46 }
 0x2bf   : > { %v2117_v7 = vpop.permute.xlu0 %2116  ;;  %v1710_v29 = vpop.permute.xlu1 %1709 }
 0x2c0   : > { %v1805_v51 = vsel %vm1769_vm0, %v1710_v29, 0.0  ;;  %v2211_v25 = vsel %vm1769_vm0, %v2117_v7, 0.0 }
 0x2c1   : > { %v1806_v2 = vadd.f32 %v1805_v51, %v1804_v61  ;;  %v2212_v23 = vadd.f32 %v2211_v25, %v2210_v22 }
 0x2c3   : > { %v1947_v14 = vpop.permute.xlu0 %1946  ;;  %v2119_v52 = vpop.permute.xlu1 %2118 }
 0x2c4   : > { %v2041_v17 = vsel %vm1769_vm0, %v1947_v14, 0.0  ;;  %v2213_v21 = vsel %vm1769_vm0, %v2119_v52, 0.0 }
 0x2c5   : > { %v2042_v47 = vadd.f32 %v2041_v17, %v2040_v37  ;;  %v2214_v34 = vadd.f32 %v2213_v21, %v2212_v23 }
 0x2c7   : > { %v1712_v60 = vpop.permute.xlu0 %1711  ;;  %v1949_v50 = vpop.permute.xlu1 %1948 }
 0x2c8   : > { %v1807_v30 = vsel %vm1769_vm0, %v1712_v60, 0.0  ;;  %v2043_v59 = vsel %vm1769_vm0, %v1949_v50, 0.0 }
 0x2c9   : > { %v1808_v39 = vadd.f32 %v1807_v30, %v1806_v2  ;;  %v2044_v43 = vadd.f32 %v2043_v59, %v2042_v47 }
 0x2cb   : > { %v2121_v6 = vpop.permute.xlu0 %2120  ;;  %v1714_v5 = vpop.permute.xlu1 %1713 }
 0x2cc   : > { %v1809_v4 = vsel %vm1769_vm0, %v1714_v5, 0.0  ;;  %v2215_v11 = vsel %vm1769_vm0, %v2121_v6, 0.0 }
 0x2cd   : > { %v1810_v35 = vadd.f32 %v1809_v4, %v1808_v39  ;;  %v2216_v29 = vadd.f32 %v2215_v11, %v2214_v34 }
 0x2cf   : > { %v1951_v18 = vpop.permute.xlu0 %1950  ;;  %v2123_v54 = vpop.permute.xlu1 %2122 }
 0x2d0   : > { %v2045_v33 = vsel %vm1769_vm0, %v1951_v18, 0.0  ;;  %v2217_v48 = vsel %vm1769_vm0, %v2123_v54, 0.0 }
 0x2d1   : > { %v2046_v42 = vadd.f32 %v2045_v33, %v2044_v43  ;;  %v2218_v18 = vadd.f32 %v2217_v48, %v2216_v29 }
 0x2d3   : > { %v1716_v55 = vpop.permute.xlu0 %1715  ;;  %v1953_v3 = vpop.permute.xlu1 %1952 }
 0x2d4   : > { %v1811_v41 = vsel %vm1769_vm0, %v1716_v55, 0.0  ;;  %v2047_v63 = vsel %vm1769_vm0, %v1953_v3, 0.0 }
 0x2d5   : > { %v1812_v27 = vadd.f32 %v1811_v41, %v1810_v35  ;;  %v2048_v14 = vadd.f32 %v2047_v63, %v2046_v42 }
 0x2d7   : > { %v2125_v13 = vpop.permute.xlu0 %2124  ;;  %v1718_v9 = vpop.permute.xlu1 %1717 }
 0x2d8   : > { %v1813_v26 = vsel %vm1769_vm0, %v1718_v9, 0.0  ;;  %v2219_v60 = vsel %vm1769_vm0, %v2125_v13, 0.0 }
 0x2d9   : > { %v1814_v50 = vadd.f32 %v1813_v26, %v1812_v27  ;;  %v2220_v38 = vadd.f32 %v2219_v60, %v2218_v18 }
 0x2db   : > { %v1955_v8 = vpop.permute.xlu0 %1954  ;;  %v2127_v12 = vpop.permute.xlu1 %2126 }
 0x2dc   : > { %v2049_v7 = vsel %vm1769_vm0, %v1955_v8, 0.0  ;;  %v2221_v54 = vsel %vm1769_vm0, %v2127_v12, 0.0 }
 0x2dd   : > { %v2050_v55 = vadd.f32 %v2049_v7, %v2048_v14  ;;  %v2222_v46 = vadd.f32 %v2221_v54, %v2220_v38 }
 0x2df   : > { %v1720_v28 = vpop.permute.xlu0 %1719  ;;  %v1957_v40 = vpop.permute.xlu1 %1956 }
 0x2e0   : > { %v1815_v52 = vsel %vm1769_vm0, %v1720_v28, 0.0  ;;  %v2051_v6 = vsel %vm1769_vm0, %v1957_v40, 0.0 }
 0x2e1   : > { %v1816_v20 = vadd.f32 %v1815_v52, %v1814_v50  ;;  %v2052_v58 = vadd.f32 %v2051_v6, %v2050_v55 }
 0x2e3   : > { %v4861_v32 = vpop.permute.xlu0 %2128  ;;  %v1722_v49 = vpop.permute.xlu1 %1721 }
 0x2e4   : > { %v1817_v3 = vsel %vm1769_vm0, %v1722_v49, 0.0  ;;  %v2223_v13 = vsel %vm1769_vm0, %v4861_v32, 0.0 }
 0x2e5   : > { %v1818_v1 = vadd.f32 %v1817_v3, %v1816_v20  ;;  %v2224_v17 = vadd.f32 %v2223_v13, %v2222_v46 }
 0x2e7   : > { %v1959_v19 = vpop.permute.xlu0 %1958  ;;  %v4863_v31 = vpop.permute.xlu1 %2130 }
 0x2e8   : > { %v2053_v8 = vsel %vm1769_vm0, %v1959_v19, 0.0  ;;  %v2225_v12 = vsel %vm1769_vm0, %v4863_v31, 0.0 }
 0x2e9   : > { %v2054_v51 = vadd.f32 %v2053_v8, %v2052_v58  ;;  %v2226_v2 = vadd.f32 %v2225_v12, %v2224_v17 }
 0x2eb   : > { %v1724_v16 = vpop.permute.xlu0 %1723  ;;  %v1961_v45 = vpop.permute.xlu1 %1960 }
 0x2ec   : > { %v1819_v28 = vsel %vm1769_vm0, %v1724_v16, 0.0  ;;  %v2055_v40 = vsel %vm1769_vm0, %v1961_v45, 0.0 }
 0x2ed   : > { %v1820_v19 = vadd.f32 %v1819_v28, %v1818_v1  ;;  %v2056_v16 = vadd.f32 %v2055_v40, %v2054_v51 }
 0x2ef   : > { %v4865_v62 = vpop.permute.xlu0 %2132  ;;  %v1726_v36 = vpop.permute.xlu1 %1725 }
 0x2f0   : > { %v1821_v49 = vsel %vm1769_vm0, %v1726_v36, 0.0  ;;  %v2227_v32 = vsel %vm1769_vm0, %v4865_v62, 0.0 }
 0x2f1   : > { %v1822_v45 = vadd.f32 %v1821_v49, %v1820_v19  ;;  %v2228_v4 = vadd.f32 %v2227_v32, %v2226_v2 }
 0x2f3   : > { %v1963_v0 = vpop.permute.xlu0 %1962  ;;  %v4872_v15 = vpop.permute.xlu1 %2134 }
 0x2f4   : > { %v2057_v61 = vsel %vm1769_vm0, %v1963_v0, 0.0  ;;  %v2229_v31 = vsel %vm1769_vm0, %v4872_v15, 0.0 }
 0x2f5   : > { %v2058_v36 = vadd.f32 %v2057_v61, %v2056_v16  ;;  %v2230_v23 = vadd.f32 %v2229_v31, %v2228_v4 }
 0x2f7   : > { %v1728_v53 = vpop.permute.xlu0 %1727  ;;  %v1965_v57 = vpop.permute.xlu1 %1964 }
 0x2f8   : > { %v1823_v37 = vsel %vm1769_vm0, %v1728_v53, 0.0  ;;  %v2059_v30 = vsel %vm1769_vm0, %v1965_v57, 0.0 }
 0x2f9   : > { %v1824_v0 = vadd.f32 %v1823_v37, %v1822_v45  ;;  %v2060_v53 = vadd.f32 %v2059_v30, %v2058_v36 }
 0x2fb   : > { %v2137_v56 = vpop.permute.xlu0 %2136  ;;  %v1730_v44 = vpop.permute.xlu1 %1729 }
 0x2fc   : > { %v1825_v59 = vsel %vm1769_vm0, %v1730_v44, 0.0  ;;  %v2231_v62 = vsel %vm1769_vm0, %v2137_v56, 0.0 }
 0x2fd   : > { %v1826_v39 = vadd.f32 %v1825_v59, %v1824_v0  ;;  %v2232_v34 = vadd.f32 %v2231_v62, %v2230_v23 }
 0x2ff   : > { %v1967_v5 = vpop.permute.xlu0 %1966  ;;  %v2139_v9 = vpop.permute.xlu1 %2138 }
 0x300   : > { %v2061_v47 = vsel %vm1769_vm0, %v1967_v5, 0.0  ;;  %v2233_v15 = vsel %vm1769_vm0, %v2139_v9, 0.0 }
 0x301   : > { %v2062_v43 = vadd.f32 %v2061_v47, %v2060_v53  ;;  %v2234_v48 = vadd.f32 %v2233_v15, %v2232_v34 }
 0x303   : > { %v1732_v24 = vpop.permute.xlu0 %1731  ;;  %v1969_v10 = vpop.permute.xlu1 %1968 }
 0x304   : > { %v1827_v21 = vsel %vm1769_vm0, %v1732_v24, 0.0  ;;  %v2063_v57 = vsel %vm1769_vm0, %v1969_v10, 0.0 }
 0x305   : > { %v1828_v35 = vadd.f32 %v1827_v21, %v1826_v39  ;;  %v2064_v42 = vadd.f32 %v2063_v57, %v2062_v43 }
 0x307   : > { %v2141_v25 = vpop.permute.xlu0 %2140  ;;  %v1734_v22 = vpop.permute.xlu1 %1733 }
 0x308   : > { %v1829_v41 = vsel %vm1769_vm0, %v1734_v22, 0.0  ;;  %v2235_v26 = vsel %vm1769_vm0, %v2141_v25, 0.0 }
 0x309   : > { %v1830_v44 = vadd.f32 %v1829_v41, %v1828_v35  ;;  %v2236_v50 = vadd.f32 %v2235_v26, %v2234_v48 }
 0x30b   : > { %v1971_v33 = vpop.permute.xlu0 %1970  ;;  %v2143_v11 = vpop.permute.xlu1 %2142 }
 0x30c   : > { %v2065_v63 = vsel %vm1769_vm0, %v1971_v33, 0.0  ;;  %v2237_v14 = vsel %vm1769_vm0, %v2143_v11, 0.0 }
 0x30d   : > { %v2066_v27 = vadd.f32 %v2065_v63, %v2064_v42  ;;  %v2238_v18 = vadd.f32 %v2237_v14, %v2236_v50 }
 0x30f   : > { %v1736_v56 = vpop.permute.xlu0 %1735  ;;  %v1973_v29 = vpop.permute.xlu1 %1972 }
 0x310   : > { %v1831_v7 = vsel %vm1769_vm0, %v1736_v56, 0.0  ;;  %v2067_v60 = vsel %vm1769_vm0, %v1973_v29, 0.0 }
 0x311   : > { %v1832_v52 = vadd.f32 %v1831_v7, %v1830_v44  ;;  %v2068_v6 = vadd.f32 %v2067_v60, %v2066_v27 }
 0x313   : > { %1833 = vadd.xlane.f32.xlu1 %v1832_v52  ;;  %v2145_v5 = vpop.permute.xlu0 %2144  ;;  %2069 = vadd.xlane.f32.xlu0 %v2068_v6 }
 0x314   : > { %v2239_v55 = vsel %vm1769_vm0, %v2145_v5, 0.0 }
 0x315   : > { %v2240_v3 = vadd.f32 %v2239_v55, %v2238_v18 }
 0x317   : > { %2241 = vadd.xlane.f32.xlu0 %v2240_v3 }
 0x39c   : > { %v1834_v9 = vpop.xlane.xlu1 %1833  ;;  %v2070_v20 = vpop.xlane.xlu0 %2069 }
 0x39d   : > { %v1835_v54 = vrot.slane %v1834_v9, 4  ;;  %v2071_v8 = vrot.slane %v2070_v20, 4 }
 0x39f   : > { %v1836_v38 = vadd.f32 %v1835_v54, %v1834_v9  ;;  %v2072_v58 = vadd.f32 %v2071_v8, %v2070_v20 }
 0x3a0   : > { %v2242_v13 = vpop.xlane.xlu0 %2241 }
 0x3a1   : > { %v1837_v28 = vrot.slane %v1836_v38, 2  ;;  %v2073_v1 = vrot.slane %v2072_v58, 2  ;;  %v2243_v40 = vrot.slane %v2242_v13, 4 }
 0x3a3   : > { %v1838_v24 = vadd.f32 %v1837_v28, %v1836_v38  ;;  %v2244_v46 = vadd.f32 %v2243_v40, %v2242_v13  ;;  %v2074_v51 = vadd.f32 %v2073_v1, %v2072_v58 }
 0x3a5   : > { %v1839_v49 = vrot.slane %v1838_v24, 1  ;;  %v2245_v10 = vrot.slane %v2244_v46, 2  ;;  %v2075_v12 = vrot.slane %v2074_v51, 1 }
 0x3a7   : > { %v1840_v19 = vadd.f32 %v1839_v49, %v1838_v24  ;;  %v2246_v61 = vadd.f32 %v2245_v10, %v2244_v46  ;;  %v2076_v17 = vadd.f32 %v2075_v12, %v2074_v51 }
 0x3a9   : > { %2405 = vpush %v1840_v19  ;;  %v2247_v16 = vrot.slane %v2246_v61, 1 }
 0x3aa   : > { %2407 = vpush %v2076_v17 }
 0x3ab   : > { %v2248_v37 = vadd.f32 %v2247_v16, %v2246_v61 }
 0x3ad   : > { %2409 = vpush %v2248_v37 }
 0x3da   : > { %s2406_s9 = spop %2405 }
 0x3db   : > { %v1842_v32 = vstv %s2406_s9  ;;  %s2408_s13 = spop %2407 }
 0x3dc   : > { %v2078_v45 = vstv %s2408_s13  ;;  %1844 = vst [vmem:[%s244_s12] sm:$0xff] %v1842_v32 }
 0x3dd   : > { %2080 = vst [vmem:[%s248_s20] sm:$0xff] %v2078_v45 }
 0x3de   : > { %s2410_s21 = spop %2409 }
 0x3df   : > { %v2250_v30 = vstv %s2410_s21 }
 0x3e0   : > { %2252 = vst [vmem:[%s252_s24] sm:$0xff] %v2250_v30 }
 0x3e1 PF: > { %s15_s17 = sadd.s32 1, %s2498_s17   ;;  %s5432_s15 = smov %s2494_s16 }
 0x3e2   : > { %p12_p6 = scmp.ge.s32.totalorder %s15_s17, 4   ;;  %s5433_s16 = smov %s5435_s18 }
 0x3e4   :  { %14 = sbr.rel (!%p12_p6) target bundleno = 2 (0x2), region = 89 }

</bundles_post_ra>
